<compile_context>
chip_gen: v7x
topology: tpu7x:2x2x1
jax: 0.10.0
libtpu: 0.0.40
codegen_flags: <defaults>
</compile_context>

<pallas_src>
import functools

import jax
import jax.numpy as jnp
from jax.experimental import pallas as pl
from jax.experimental.pallas import tpu as pltpu

LN_EPS = 1e-5  # nn.LayerNorm default


def _gru_ln_kernel(*refs, num_layers, hidden, chunk_t, compute_dtype):
    """One grid step: a (chunk_t, tb) tile of the sequence through all GRU layers + LN."""
    x_ref, h0_ref = refs[0], refs[1]
    w_refs = refs[2:2 + 4 * num_layers]
    gamma_ref = refs[2 + 4 * num_layers]
    beta_ref = refs[3 + 4 * num_layers]
    y_ref = refs[4 + 4 * num_layers]
    hn_ref = refs[5 + 4 * num_layers]
    h_scr = refs[6 + 4 * num_layers]     # (num_layers, tb, H) f32, carried over time
    gi_scr = refs[7 + 4 * num_layers]    # (chunk_t*tb, 3H)    input->gates staging
    act_scr = refs[8 + 4 * num_layers]   # (chunk_t*tb, H)     layer output / next input

    H = hidden
    tb = x_ref.shape[1]
    t_idx = pl.program_id(1)

    def mxu_dot(a, b):
        if compute_dtype is not None:    # optional bf16 feed, f32 accumulate
            a = a.astype(compute_dtype)
            b = b.astype(compute_dtype)
        return jnp.dot(a, b, preferred_element_type=jnp.float32)

    # Initialize the carried hidden state from hxs at the first time chunk of
    # each batch tile.  (Relies on grid=(nb, nt) with time innermost.)
    @pl.when(t_idx == 0)
    def _init():
        h_scr[...] = h0_ref[...].astype(jnp.float32)

    # (chunk_t, tb, D) -> (chunk_t*tb, D): the input projection of the whole
    # time chunk is done in one matmul (M = chunk_t*tb rows for the MXU).
    x_cat = x_ref[...].reshape(chunk_t * tb, x_ref.shape[2])

    for l in range(num_layers):
        w_ih = w_refs[4 * l][...]        # (D_in, 3H)
        w_hh = w_refs[4 * l + 1][...]    # (H,   3H)
        b_ih = w_refs[4 * l + 2][...]    # (1,   3H)
        b_hh = w_refs[4 * l + 3][...]    # (1,   3H)

        # Input->gates for every timestep in the chunk in one matmul; staged in
        # VMEM scratch so per-step slices don't keep the whole thing in vregs.
        layer_in = x_cat if l == 0 else act_scr[...]
        gi_scr[...] = mxu_dot(layer_in, w_ih) + b_ih

        b_hh_b = jnp.broadcast_to(b_hh, (tb, 3 * H))   # hoisted out of the ti loop
        h = h_scr[l]                                    # (tb, H)
        for ti in range(chunk_t):        # recurrence is sequential by nature
            gi = gi_scr[pl.ds(ti * tb, tb), :]
            gh = mxu_dot(h, w_hh) + b_hh_b
            r = jax.lax.logistic(gi[:, 0:H] + gh[:, 0:H])
            z = jax.lax.logistic(gi[:, H:2 * H] + gh[:, H:2 * H])
            n = jnp.tanh(gi[:, 2 * H:3 * H] + r * gh[:, 2 * H:3 * H])
            h = (1.0 - z) * n + z * h
            act_scr[pl.ds(ti * tb, tb), :] = h          # becomes next layer's input
        h_scr[l] = h                      # carry to next time chunk

    # LayerNorm over the feature axis, whole chunk at once.
    out = act_scr[...]
    mean = jnp.mean(out, axis=-1, keepdims=True)
    cent = out - mean
    var = jnp.mean(cent * cent, axis=-1, keepdims=True)
    y = cent * jax.lax.rsqrt(var + LN_EPS) * gamma_ref[...] + beta_ref[...]
    y_ref[...] = y.reshape(chunk_t, tb, H).astype(y_ref.dtype)

    # Final (un-normalized) hidden state of layer 0 only (what the module returns).
    @pl.when(t_idx == pl.num_programs(1) - 1)
    def _final():
        hn_ref[0] = h_scr[0].astype(hn_ref.dtype)


def _largest_divisor_leq(n, cap):
    d = max(1, min(cap, n))
    while n % d != 0:
        d -= 1
    return d


def _pick_batch_tile(batch, cap, prefer_two_tiles):
    """Largest multiple-of-8 divisor of `batch` <= cap; full batch as fallback."""
    d = min(cap, batch)
    d -= d % 8
    tb = None
    while d >= 8:
        if batch % d == 0:
            tb = d
            break
        d -= 8
    if tb is None:
        tb = batch                      # small / ragged batch: single full tile
    # v7x megacore: prefer >=2 batch tiles on the "parallel" axis when the
    # batch allows an even, sublane-aligned split.
    if prefer_two_tiles and tb == batch and batch % 16 == 0:
        tb = batch // 2
    return tb


def rnn_layer_forward(x, hxs, params, *, block_b=128, block_t=8,
                      compute_dtype=None, prefer_two_batch_tiles=True):
    """x: (T, B, D) f32, hxs: (num_layers, B, H) f32. Returns (LayerNorm(y), hxs[0])."""
    layers = params["layers"]
    gamma, beta = params["gamma"], params["beta"]
    num_layers = len(layers)
    T, B, D = x.shape
    H = gamma.shape[-1]

    tb = _pick_batch_tile(B, block_b, prefer_two_batch_tiles)
    tt = _largest_divisor_leq(T, block_t)
    nb = B // tb
    nt = T // tt

    def const_spec(shape):               # grid-invariant operand
        return pl.BlockSpec(shape, lambda b, t: (0,) * len(shape))

    in_specs = [
        pl.BlockSpec((tt, tb, D), lambda b, t: (t, b, 0)),           # x time-chunk
        pl.BlockSpec((num_layers, tb, H), lambda b, t: (0, b, 0)),   # initial hidden
    ]
    flat_args = [x, hxs]
    for (w_ih, w_hh, b_ih, b_hh) in layers:
        in_specs += [const_spec(w_ih.shape), const_spec(w_hh.shape),
                     const_spec(b_ih.shape), const_spec(b_hh.shape)]
        flat_args += [w_ih, w_hh, b_ih, b_hh]
    in_specs += [const_spec(gamma.shape), const_spec(beta.shape)]
    flat_args += [gamma, beta]

    out_specs = (
        pl.BlockSpec((tt, tb, H), lambda b, t: (t, b, 0)),           # LayerNorm(output)
        pl.BlockSpec((1, tb, H), lambda b, t: (0, b, 0)),            # layer-0 final hidden
    )
    out_shape = (
        jax.ShapeDtypeStruct((T, B, H), jnp.float32),
        jax.ShapeDtypeStruct((1, B, H), jnp.float32),
    )

    scratch_shapes = [
        pltpu.VMEM((num_layers, tb, H), jnp.float32),   # carried hidden state
        pltpu.VMEM((tt * tb, 3 * H), jnp.float32),      # input->gates staging
        pltpu.VMEM((tt * tb, H), jnp.float32),          # layer output / next input
    ]

    # VMEM budget: double-buffered x/y/h0/hn tiles + (double-buffered) weights +
    # scratch; 2x headroom, clamped to [32 MiB, 64 MiB] so the same setting is
    # valid on v5e (16 MiB scoped default), v6e (128 MiB) and v7x (64 MiB phys).
    f32b = 4
    weight_bytes = sum(int(a.size) * f32b for layer in layers for a in layer)
    vmem_est = (
        2 * tt * tb * D * f32b + 2 * tt * tb * H * f32b
        + 2 * num_layers * tb * H * f32b + 2 * tb * H * f32b
        + 2 * weight_bytes + 2 * 2 * H * f32b
        + (num_layers * tb * H + tt * tb * 3 * H + tt * tb * H) * f32b
    )
    vmem_limit = int(min(max(2 * vmem_est, 32 * 1024 * 1024), 64 * 1024 * 1024))

    kernel = functools.partial(
        _gru_ln_kernel,
        num_layers=num_layers, hidden=H, chunk_t=tt, compute_dtype=compute_dtype)

    y, h_n = pl.pallas_call(
        kernel,
        out_shape=out_shape,
        grid_spec=pltpu.PrefetchScalarGridSpec(
            num_scalar_prefetch=0,
            grid=(nb, nt),
            in_specs=in_specs,
            out_specs=out_specs,
            scratch_shapes=scratch_shapes,
        ),
        compiler_params=pltpu.CompilerParams(
            dimension_semantics=("parallel", "arbitrary"),
            vmem_limit_bytes=vmem_limit,
        ),
    )(*flat_args)
    # Module returns (LayerNorm(gru_out), hxs[0, :, :])
    return y, h_n[0]


def rnn_layer_reference(x, hxs, params):
    """Pure-JAX reference (lax.scan GRU stack + LayerNorm) for correctness checks."""
    H = params["gamma"].shape[-1]
    seq = x
    final0 = None
    for l, (w_ih, w_hh, b_ih, b_hh) in enumerate(params["layers"]):
        def step(h_prev, x_t, w_ih=w_ih, w_hh=w_hh, b_ih=b_ih, b_hh=b_hh):
            gi = x_t @ w_ih + b_ih
            gh = h_prev @ w_hh + b_hh
            r = jax.nn.sigmoid(gi[:, :H] + gh[:, :H])
            z = jax.nn.sigmoid(gi[:, H:2 * H] + gh[:, H:2 * H])
            n = jnp.tanh(gi[:, 2 * H:] + r * gh[:, 2 * H:])
            h_new = (1.0 - z) * n + z * h_prev
            return h_new, h_new
        h_final, seq = jax.lax.scan(step, hxs[l], seq)
        if l == 0:
            final0 = h_final
    mean = jnp.mean(seq, axis=-1, keepdims=True)
    cent = seq - mean
    var = jnp.mean(cent * cent, axis=-1, keepdims=True)
    y = cent * jax.lax.rsqrt(var + LN_EPS) * params["gamma"] + params["beta"]
    return y, final0


def _orthogonal(key, shape):
    """Orthogonal init matching torch.nn.init.orthogonal_ (gain=1)."""
    rows, cols = shape
    a = jax.random.normal(key, (max(rows, cols), min(rows, cols)), dtype=jnp.float32)
    q, r = jnp.linalg.qr(a)
    d = jnp.diagonal(r)
    q = q * jnp.where(d == 0, 1.0, jnp.sign(d))
    if rows < cols:
        q = q.T
    return q[:rows, :cols]


def make_rnn_layer_params(key, inputs_dim, outputs_dim, recurrent_N, use_orthogonal=True):
    """GRU weights stored transposed (in, 3H); biases zero; LN affine defaults."""
    H = outputs_dim
    layers = []
    for layer in range(recurrent_N):
        d_in = inputs_dim if layer == 0 else H
        key, k1, k2 = jax.random.split(key, 3)
        if use_orthogonal:
            w_ih_t = _orthogonal(k1, (3 * H, d_in))   # torch layout (3H, d_in)
            w_hh_t = _orthogonal(k2, (3 * H, H))
        else:  # xavier_uniform_
            lim_ih = (6.0 / (3 * H + d_in)) ** 0.5
            lim_hh = (6.0 / (3 * H + H)) ** 0.5
            w_ih_t = jax.random.uniform(k1, (3 * H, d_in), jnp.float32, -lim_ih, lim_ih)
            w_hh_t = jax.random.uniform(k2, (3 * H, H), jnp.float32, -lim_hh, lim_hh)
        layers.append((
            w_ih_t.T,                                  # (d_in, 3H)
            w_hh_t.T,                                  # (H, 3H)
            jnp.zeros((1, 3 * H), jnp.float32),        # b_ih (constant_(0))
            jnp.zeros((1, 3 * H), jnp.float32),        # b_hh (constant_(0))
        ))
    return {
        "layers": tuple(layers),
        "gamma": jnp.ones((1, H), jnp.float32),        # LayerNorm weight
        "beta": jnp.zeros((1, H), jnp.float32),        # LayerNorm bias
    }


if __name__ == "__main__":
    # RNNLayer(inputs_dim=64, outputs_dim=128, recurrent_N=2, use_orthogonal=True)
    # H=128 keeps the feature axis lane-dense; batch=16 splits into 2 batch
    # tiles on the "parallel" grid axis (both v7x TensorCores); T=8 fits in one
    # time chunk so the whole sequence's input projection is a single matmul.
    inputs_dim = 64
    outputs_dim = 128
    recurrent_N = 2
    seq = 8
    batch = 16

    key = jax.random.PRNGKey(0)
    kx, kh, kp = jax.random.split(key, 3)
    x = jax.random.normal(kx, (seq, batch, inputs_dim), dtype=jnp.float32)
    hxs = jax.random.normal(kh, (recurrent_N, batch, outputs_dim), dtype=jnp.float32)
    params = make_rnn_layer_params(kp, inputs_dim, outputs_dim, recurrent_N,
                                   use_orthogonal=True)

    # TODO(synk): rnn.flatten_parameters() is a cuDNN memory-layout hint with no
    # TPU/Pallas equivalent; it does not affect forward semantics.
    fwd = jax.jit(rnn_layer_forward)
    y, h_out = fwd(x, hxs, params)
    jax.block_until_ready((y, h_out))

    assert y.shape == (seq, batch, outputs_dim)
    assert h_out.shape == (batch, outputs_dim)
    assert bool(jnp.all(jnp.isfinite(y))) and bool(jnp.all(jnp.isfinite(h_out)))

    # Correctness vs. a pure-JAX reference (f32 path).
    y_ref, h_ref = jax.jit(rnn_layer_reference)(x, hxs, params)
    jax.block_until_ready((y_ref, h_ref))
    assert float(jnp.max(jnp.abs(y - y_ref))) < 1e-1
    assert float(jnp.max(jnp.abs(h_out - h_ref))) < 1e-1

    # bf16 MXU feed (recommended on v6e/v7x); f32 accumulation, f32 gate/LN math.
    fwd_bf16 = jax.jit(functools.partial(rnn_layer_forward, compute_dtype=jnp.bfloat16))
    y_bf, h_bf = fwd_bf16(x, hxs, params)
    jax.block_until_ready((y_bf, h_bf))
    assert bool(jnp.all(jnp.isfinite(y_bf))) and bool(jnp.all(jnp.isfinite(h_bf)))

    print("KERNEL_OK")
</pallas_src>

<mosaic_0001>
module attributes {stable_mosaic.version = 11 : i64} {
  func.func @_gru_ln_kernel(%arg0: i32, %arg1: i32, %arg2: memref<8x8x64xf32, #tpu.memory_space<vmem>>, %arg3: memref<2x8x128xf32, #tpu.memory_space<vmem>>, %arg4: memref<64x384xf32, #tpu.memory_space<vmem>>, %arg5: memref<128x384xf32, #tpu.memory_space<vmem>>, %arg6: memref<1x384xf32, #tpu.memory_space<vmem>>, %arg7: memref<1x384xf32, #tpu.memory_space<vmem>>, %arg8: memref<128x384xf32, #tpu.memory_space<vmem>>, %arg9: memref<128x384xf32, #tpu.memory_space<vmem>>, %arg10: memref<1x384xf32, #tpu.memory_space<vmem>>, %arg11: memref<1x384xf32, #tpu.memory_space<vmem>>, %arg12: memref<1x128xf32, #tpu.memory_space<vmem>>, %arg13: memref<1x128xf32, #tpu.memory_space<vmem>>, %arg14: memref<8x8x128xf32, #tpu.memory_space<vmem>>, %arg15: memref<1x8x128xf32, #tpu.memory_space<vmem>>, %arg16: memref<2x8x128xf32, #tpu.memory_space<vmem>>, %arg17: memref<64x384xf32, #tpu.memory_space<vmem>>, %arg18: memref<64x128xf32, #tpu.memory_space<vmem>>) attributes {dimension_semantics = [#tpu.dimension_semantics<parallel>, #tpu.dimension_semantics<arbitrary>], iteration_bounds = array<i64: 2, 1>, scalar_prefetch = 0 : i64, scratch_operands = 3 : i64, tpu.core_type = #tpu.core_type<tc>, window_params = [{transform_indices = @transform_0, window_bounds = array<i64: 8, 8, 64>}, {transform_indices = @transform_1, window_bounds = array<i64: 2, 8, 128>}, {pipeline_mode = #tpu.pipeline_mode<synchronous>, transform_indices = @transform_2, window_bounds = array<i64: 64, 384>}, {pipeline_mode = #tpu.pipeline_mode<synchronous>, transform_indices = @transform_3, window_bounds = array<i64: 128, 384>}, {pipeline_mode = #tpu.pipeline_mode<synchronous>, transform_indices = @transform_4, window_bounds = array<i64: 1, 384>}, {pipeline_mode = #tpu.pipeline_mode<synchronous>, transform_indices = @transform_5, window_bounds = array<i64: 1, 384>}, {pipeline_mode = #tpu.pipeline_mode<synchronous>, transform_indices = @transform_6, window_bounds = array<i64: 128, 384>}, {pipeline_mode = #tpu.pipeline_mode<synchronous>, transform_indices = @transform_7, window_bounds = array<i64: 128, 384>}, {pipeline_mode = #tpu.pipeline_mode<synchronous>, transform_indices = @transform_8, window_bounds = array<i64: 1, 384>}, {pipeline_mode = #tpu.pipeline_mode<synchronous>, transform_indices = @transform_9, window_bounds = array<i64: 1, 384>}, {pipeline_mode = #tpu.pipeline_mode<synchronous>, transform_indices = @transform_10, window_bounds = array<i64: 1, 128>}, {pipeline_mode = #tpu.pipeline_mode<synchronous>, transform_indices = @transform_11, window_bounds = array<i64: 1, 128>}, {transform_indices = @transform_12, window_bounds = array<i64: 8, 8, 128>}, {transform_indices = @transform_13, window_bounds = array<i64: 1, 8, 128>}]} {
    %c0_i32 = arith.constant 0 : i32
    %0 = arith.cmpi eq, %arg1, %c0_i32 : i32
    %1 = arith.extui %0 : i1 to i32
    %c0_i32_0 = arith.constant 0 : i32
    %2 = arith.cmpi ne, %1, %c0_i32_0 : i32
    scf.if %2 {
      %c0_174 = arith.constant 0 : index
      %c0_175 = arith.constant 0 : index
      %c0_176 = arith.constant 0 : index
      %544 = vector.load %arg3[%c0_174, %c0_175, %c0_176] : memref<2x8x128xf32, #tpu.memory_space<vmem>>, vector<2x8x128xf32>
      %c0_177 = arith.constant 0 : index
      %c0_178 = arith.constant 0 : index
      %c0_179 = arith.constant 0 : index
      %545 = vector.load %arg16[%c0_177, %c0_178, %c0_179] : memref<2x8x128xf32, #tpu.memory_space<vmem>>, vector<2x8x128xf32>
      tpu.vector_store %arg16[%c0_177, %c0_178, %c0_179], %544 {strides = array<i32>} : memref<2x8x128xf32, #tpu.memory_space<vmem>>, vector<2x8x128xf32>,
    } else {
    }
    %c0 = arith.constant 0 : index
    %c0_1 = arith.constant 0 : index
    %c0_2 = arith.constant 0 : index
    %3 = vector.load %arg2[%c0, %c0_1, %c0_2] : memref<8x8x64xf32, #tpu.memory_space<vmem>>, vector<8x8x64xf32>
    %4 = vector.shape_cast %3 : vector<8x8x64xf32> to vector<64x64xf32>
    %c0_3 = arith.constant 0 : index
    %c0_4 = arith.constant 0 : index
    %5 = vector.load %arg4[%c0_3, %c0_4] : memref<64x384xf32, #tpu.memory_space<vmem>>, vector<64x384xf32>
    %c0_5 = arith.constant 0 : index
    %c0_6 = arith.constant 0 : index
    %6 = vector.load %arg5[%c0_5, %c0_6] : memref<128x384xf32, #tpu.memory_space<vmem>>, vector<128x384xf32>
    %c0_7 = arith.constant 0 : index
    %c0_8 = arith.constant 0 : index
    %7 = vector.load %arg6[%c0_7, %c0_8] : memref<1x384xf32, #tpu.memory_space<vmem>>, vector<1x384xf32>
    %c0_9 = arith.constant 0 : index
    %c0_10 = arith.constant 0 : index
    %8 = vector.load %arg7[%c0_9, %c0_10] : memref<1x384xf32, #tpu.memory_space<vmem>>, vector<1x384xf32>
    %cst = arith.constant dense<0.000000e+00> : vector<64x384xf32>
    %9 = tpu.matmul %4, %5, %cst {dimension_numbers = #tpu.dot_dimension_numbers<[1], [0], [0], [1], [0, 0, 1, 1], [], []>} : vector<64x64xf32>, vector<64x384xf32>, vector<64x384xf32> -> vector<64x384xf32>
    %10 = vector.broadcast %7 : vector<1x384xf32> to vector<64x384xf32>
    %11 = arith.addf %9, %10 : vector<64x384xf32>
    %c0_11 = arith.constant 0 : index
    %c0_12 = arith.constant 0 : index
    %12 = vector.load %arg17[%c0_11, %c0_12] : memref<64x384xf32, #tpu.memory_space<vmem>>, vector<64x384xf32>
    tpu.vector_store %arg17[%c0_11, %c0_12], %11 {strides = array<i32>} : memref<64x384xf32, #tpu.memory_space<vmem>>, vector<64x384xf32>,
    %13 = vector.shape_cast %8 : vector<1x384xf32> to vector<1x384xf32>
    %14 = vector.broadcast %13 : vector<1x384xf32> to vector<8x384xf32>
    %c0_13 = arith.constant 0 : index
    %c0_14 = arith.constant 0 : index
    %c0_15 = arith.constant 0 : index
    %15 = vector.load %arg16[%c0_13, %c0_14, %c0_15] : memref<2x8x128xf32, #tpu.memory_space<vmem>>, vector<1x8x128xf32>
    %16 = vector.shape_cast %15 : vector<1x8x128xf32> to vector<8x128xf32>
    %c0_16 = arith.constant 0 : index
    %c0_17 = arith.constant 0 : index
    %17 = vector.load %arg17[%c0_16, %c0_17] : memref<64x384xf32, #tpu.memory_space<vmem>>, vector<8x384xf32>
    %cst_18 = arith.constant dense<0.000000e+00> : vector<8x384xf32>
    %18 = tpu.matmul %16, %6, %cst_18 {dimension_numbers = #tpu.dot_dimension_numbers<[1], [0], [0], [1], [0, 0, 1, 1], [], []>} : vector<8x128xf32>, vector<128x384xf32>, vector<8x384xf32> -> vector<8x384xf32>
    %19 = arith.addf %18, %14 : vector<8x384xf32>
    %20 = vector.extract_strided_slice %17 {offsets = [0, 0], sizes = [8, 128], strides = [1, 1]} : vector<8x384xf32> to vector<8x128xf32>
    %21 = vector.extract_strided_slice %19 {offsets = [0, 0], sizes = [8, 128], strides = [1, 1]} : vector<8x384xf32> to vector<8x128xf32>
    %22 = arith.addf %20, %21 : vector<8x128xf32>
    %23 = arith.negf %22 : vector<8x128xf32>
    %24 = math.exp %23 : vector<8x128xf32>
    %cst_19 = arith.constant 1.000000e+00 : f32
    %25 = vector.broadcast %cst_19 : f32 to vector<8x128xf32>
    %26 = arith.addf %25, %24 : vector<8x128xf32>
    %27 = arith.divf %25, %26 : vector<8x128xf32>
    %28 = vector.extract_strided_slice %17 {offsets = [0, 128], sizes = [8, 128], strides = [1, 1]} : vector<8x384xf32> to vector<8x128xf32>
    %29 = vector.extract_strided_slice %19 {offsets = [0, 128], sizes = [8, 128], strides = [1, 1]} : vector<8x384xf32> to vector<8x128xf32>
    %30 = arith.addf %28, %29 : vector<8x128xf32>
    %31 = arith.negf %30 : vector<8x128xf32>
    %32 = math.exp %31 : vector<8x128xf32>
    %cst_20 = arith.constant 1.000000e+00 : f32
    %33 = vector.broadcast %cst_20 : f32 to vector<8x128xf32>
    %34 = arith.addf %33, %32 : vector<8x128xf32>
    %35 = arith.divf %33, %34 : vector<8x128xf32>
    %36 = vector.extract_strided_slice %17 {offsets = [0, 256], sizes = [8, 128], strides = [1, 1]} : vector<8x384xf32> to vector<8x128xf32>
    %37 = vector.extract_strided_slice %19 {offsets = [0, 256], sizes = [8, 128], strides = [1, 1]} : vector<8x384xf32> to vector<8x128xf32>
    %38 = arith.mulf %27, %37 : vector<8x128xf32>
    %39 = arith.addf %36, %38 : vector<8x128xf32>
    %40 = math.tanh %39 : vector<8x128xf32>
    %cst_21 = arith.constant 1.000000e+00 : f32
    %41 = vector.broadcast %cst_21 : f32 to vector<8x128xf32>
    %42 = arith.subf %41, %35 : vector<8x128xf32>
    %43 = arith.mulf %42, %40 : vector<8x128xf32>
    %44 = arith.mulf %35, %16 : vector<8x128xf32>
    %45 = arith.addf %43, %44 : vector<8x128xf32>
    %c0_22 = arith.constant 0 : index
    %c0_23 = arith.constant 0 : index
    %46 = vector.load %arg18[%c0_22, %c0_23] : memref<64x128xf32, #tpu.memory_space<vmem>>, vector<8x128xf32>
    tpu.vector_store %arg18[%c0_22, %c0_23], %45 {strides = array<i32>} : memref<64x128xf32, #tpu.memory_space<vmem>>, vector<8x128xf32>,
    %c8 = arith.constant 8 : index
    %c0_24 = arith.constant 0 : index
    %47 = vector.load %arg17[%c8, %c0_24] : memref<64x384xf32, #tpu.memory_space<vmem>>, vector<8x384xf32>
    %cst_25 = arith.constant dense<0.000000e+00> : vector<8x384xf32>
    %48 = tpu.matmul %45, %6, %cst_25 {dimension_numbers = #tpu.dot_dimension_numbers<[1], [0], [0], [1], [0, 0, 1, 1], [], []>} : vector<8x128xf32>, vector<128x384xf32>, vector<8x384xf32> -> vector<8x384xf32>
    %49 = arith.addf %48, %14 : vector<8x384xf32>
    %50 = vector.extract_strided_slice %47 {offsets = [0, 0], sizes = [8, 128], strides = [1, 1]} : vector<8x384xf32> to vector<8x128xf32>
    %51 = vector.extract_strided_slice %49 {offsets = [0, 0], sizes = [8, 128], strides = [1, 1]} : vector<8x384xf32> to vector<8x128xf32>
    %52 = arith.addf %50, %51 : vector<8x128xf32>
    %53 = arith.negf %52 : vector<8x128xf32>
    %54 = math.exp %53 : vector<8x128xf32>
    %cst_26 = arith.constant 1.000000e+00 : f32
    %55 = vector.broadcast %cst_26 : f32 to vector<8x128xf32>
    %56 = arith.addf %55, %54 : vector<8x128xf32>
    %57 = arith.divf %55, %56 : vector<8x128xf32>
    %58 = vector.extract_strided_slice %47 {offsets = [0, 128], sizes = [8, 128], strides = [1, 1]} : vector<8x384xf32> to vector<8x128xf32>
    %59 = vector.extract_strided_slice %49 {offsets = [0, 128], sizes = [8, 128], strides = [1, 1]} : vector<8x384xf32> to vector<8x128xf32>
    %60 = arith.addf %58, %59 : vector<8x128xf32>
    %61 = arith.negf %60 : vector<8x128xf32>
    %62 = math.exp %61 : vector<8x128xf32>
    %cst_27 = arith.constant 1.000000e+00 : f32
    %63 = vector.broadcast %cst_27 : f32 to vector<8x128xf32>
    %64 = arith.addf %63, %62 : vector<8x128xf32>
    %65 = arith.divf %63, %64 : vector<8x128xf32>
    %66 = vector.extract_strided_slice %47 {offsets = [0, 256], sizes = [8, 128], strides = [1, 1]} : vector<8x384xf32> to vector<8x128xf32>
    %67 = vector.extract_strided_slice %49 {offsets = [0, 256], sizes = [8, 128], strides = [1, 1]} : vector<8x384xf32> to vector<8x128xf32>
    %68 = arith.mulf %57, %67 : vector<8x128xf32>
    %69 = arith.addf %66, %68 : vector<8x128xf32>
    %70 = math.tanh %69 : vector<8x128xf32>
    %cst_28 = arith.constant 1.000000e+00 : f32
    %71 = vector.broadcast %cst_28 : f32 to vector<8x128xf32>
    %72 = arith.subf %71, %65 : vector<8x128xf32>
    %73 = arith.mulf %72, %70 : vector<8x128xf32>
    %74 = arith.mulf %65, %45 : vector<8x128xf32>
    %75 = arith.addf %73, %74 : vector<8x128xf32>
    %c8_29 = arith.constant 8 : index
    %c0_30 = arith.constant 0 : index
    %76 = vector.load %arg18[%c8_29, %c0_30] : memref<64x128xf32, #tpu.memory_space<vmem>>, vector<8x128xf32>
    tpu.vector_store %arg18[%c8_29, %c0_30], %75 {strides = array<i32>} : memref<64x128xf32, #tpu.memory_space<vmem>>, vector<8x128xf32>,
    %c16 = arith.constant 16 : index
    %c0_31 = arith.constant 0 : index
    %77 = vector.load %arg17[%c16, %c0_31] : memref<64x384xf32, #tpu.memory_space<vmem>>, vector<8x384xf32>
    %cst_32 = arith.constant dense<0.000000e+00> : vector<8x384xf32>
    %78 = tpu.matmul %75, %6, %cst_32 {dimension_numbers = #tpu.dot_dimension_numbers<[1], [0], [0], [1], [0, 0, 1, 1], [], []>} : vector<8x128xf32>, vector<128x384xf32>, vector<8x384xf32> -> vector<8x384xf32>
    %79 = arith.addf %78, %14 : vector<8x384xf32>
    %80 = vector.extract_strided_slice %77 {offsets = [0, 0], sizes = [8, 128], strides = [1, 1]} : vector<8x384xf32> to vector<8x128xf32>
    %81 = vector.extract_strided_slice %79 {offsets = [0, 0], sizes = [8, 128], strides = [1, 1]} : vector<8x384xf32> to vector<8x128xf32>
    %82 = arith.addf %80, %81 : vector<8x128xf32>
    %83 = arith.negf %82 : vector<8x128xf32>
    %84 = math.exp %83 : vector<8x128xf32>
    %cst_33 = arith.constant 1.000000e+00 : f32
    %85 = vector.broadcast %cst_33 : f32 to vector<8x128xf32>
    %86 = arith.addf %85, %84 : vector<8x128xf32>
    %87 = arith.divf %85, %86 : vector<8x128xf32>
    %88 = vector.extract_strided_slice %77 {offsets = [0, 128], sizes = [8, 128], strides = [1, 1]} : vector<8x384xf32> to vector<8x128xf32>
    %89 = vector.extract_strided_slice %79 {offsets = [0, 128], sizes = [8, 128], strides = [1, 1]} : vector<8x384xf32> to vector<8x128xf32>
    %90 = arith.addf %88, %89 : vector<8x128xf32>
    %91 = arith.negf %90 : vector<8x128xf32>
    %92 = math.exp %91 : vector<8x128xf32>
    %cst_34 = arith.constant 1.000000e+00 : f32
    %93 = vector.broadcast %cst_34 : f32 to vector<8x128xf32>
    %94 = arith.addf %93, %92 : vector<8x128xf32>
    %95 = arith.divf %93, %94 : vector<8x128xf32>
    %96 = vector.extract_strided_slice %77 {offsets = [0, 256], sizes = [8, 128], strides = [1, 1]} : vector<8x384xf32> to vector<8x128xf32>
    %97 = vector.extract_strided_slice %79 {offsets = [0, 256], sizes = [8, 128], strides = [1, 1]} : vector<8x384xf32> to vector<8x128xf32>
    %98 = arith.mulf %87, %97 : vector<8x128xf32>
    %99 = arith.addf %96, %98 : vector<8x128xf32>
    %100 = math.tanh %99 : vector<8x128xf32>
    %cst_35 = arith.constant 1.000000e+00 : f32
    %101 = vector.broadcast %cst_35 : f32 to vector<8x128xf32>
    %102 = arith.subf %101, %95 : vector<8x128xf32>
    %103 = arith.mulf %102, %100 : vector<8x128xf32>
    %104 = arith.mulf %95, %75 : vector<8x128xf32>
    %105 = arith.addf %103, %104 : vector<8x128xf32>
    %c16_36 = arith.constant 16 : index
    %c0_37 = arith.constant 0 : index
    %106 = vector.load %arg18[%c16_36, %c0_37] : memref<64x128xf32, #tpu.memory_space<vmem>>, vector<8x128xf32>
    tpu.vector_store %arg18[%c16_36, %c0_37], %105 {strides = array<i32>} : memref<64x128xf32, #tpu.memory_space<vmem>>, vector<8x128xf32>,
    %c24 = arith.constant 24 : index
    %c0_38 = arith.constant 0 : index
    %107 = vector.load %arg17[%c24, %c0_38] : memref<64x384xf32, #tpu.memory_space<vmem>>, vector<8x384xf32>
    %cst_39 = arith.constant dense<0.000000e+00> : vector<8x384xf32>
    %108 = tpu.matmul %105, %6, %cst_39 {dimension_numbers = #tpu.dot_dimension_numbers<[1], [0], [0], [1], [0, 0, 1, 1], [], []>} : vector<8x128xf32>, vector<128x384xf32>, vector<8x384xf32> -> vector<8x384xf32>
    %109 = arith.addf %108, %14 : vector<8x384xf32>
    %110 = vector.extract_strided_slice %107 {offsets = [0, 0], sizes = [8, 128], strides = [1, 1]} : vector<8x384xf32> to vector<8x128xf32>
    %111 = vector.extract_strided_slice %109 {offsets = [0, 0], sizes = [8, 128], strides = [1, 1]} : vector<8x384xf32> to vector<8x128xf32>
    %112 = arith.addf %110, %111 : vector<8x128xf32>
    %113 = arith.negf %112 : vector<8x128xf32>
    %114 = math.exp %113 : vector<8x128xf32>
    %cst_40 = arith.constant 1.000000e+00 : f32
    %115 = vector.broadcast %cst_40 : f32 to vector<8x128xf32>
    %116 = arith.addf %115, %114 : vector<8x128xf32>
    %117 = arith.divf %115, %116 : vector<8x128xf32>
    %118 = vector.extract_strided_slice %107 {offsets = [0, 128], sizes = [8, 128], strides = [1, 1]} : vector<8x384xf32> to vector<8x128xf32>
    %119 = vector.extract_strided_slice %109 {offsets = [0, 128], sizes = [8, 128], strides = [1, 1]} : vector<8x384xf32> to vector<8x128xf32>
    %120 = arith.addf %118, %119 : vector<8x128xf32>
    %121 = arith.negf %120 : vector<8x128xf32>
    %122 = math.exp %121 : vector<8x128xf32>
    %cst_41 = arith.constant 1.000000e+00 : f32
    %123 = vector.broadcast %cst_41 : f32 to vector<8x128xf32>
    %124 = arith.addf %123, %122 : vector<8x128xf32>
    %125 = arith.divf %123, %124 : vector<8x128xf32>
    %126 = vector.extract_strided_slice %107 {offsets = [0, 256], sizes = [8, 128], strides = [1, 1]} : vector<8x384xf32> to vector<8x128xf32>
    %127 = vector.extract_strided_slice %109 {offsets = [0, 256], sizes = [8, 128], strides = [1, 1]} : vector<8x384xf32> to vector<8x128xf32>
    %128 = arith.mulf %117, %127 : vector<8x128xf32>
    %129 = arith.addf %126, %128 : vector<8x128xf32>
    %130 = math.tanh %129 : vector<8x128xf32>
    %cst_42 = arith.constant 1.000000e+00 : f32
    %131 = vector.broadcast %cst_42 : f32 to vector<8x128xf32>
    %132 = arith.subf %131, %125 : vector<8x128xf32>
    %133 = arith.mulf %132, %130 : vector<8x128xf32>
    %134 = arith.mulf %125, %105 : vector<8x128xf32>
    %135 = arith.addf %133, %134 : vector<8x128xf32>
    %c24_43 = arith.constant 24 : index
    %c0_44 = arith.constant 0 : index
    %136 = vector.load %arg18[%c24_43, %c0_44] : memref<64x128xf32, #tpu.memory_space<vmem>>, vector<8x128xf32>
    tpu.vector_store %arg18[%c24_43, %c0_44], %135 {strides = array<i32>} : memref<64x128xf32, #tpu.memory_space<vmem>>, vector<8x128xf32>,
    %c32 = arith.constant 32 : index
    %c0_45 = arith.constant 0 : index
    %137 = vector.load %arg17[%c32, %c0_45] : memref<64x384xf32, #tpu.memory_space<vmem>>, vector<8x384xf32>
    %cst_46 = arith.constant dense<0.000000e+00> : vector<8x384xf32>
    %138 = tpu.matmul %135, %6, %cst_46 {dimension_numbers = #tpu.dot_dimension_numbers<[1], [0], [0], [1], [0, 0, 1, 1], [], []>} : vector<8x128xf32>, vector<128x384xf32>, vector<8x384xf32> -> vector<8x384xf32>
    %139 = arith.addf %138, %14 : vector<8x384xf32>
    %140 = vector.extract_strided_slice %137 {offsets = [0, 0], sizes = [8, 128], strides = [1, 1]} : vector<8x384xf32> to vector<8x128xf32>
    %141 = vector.extract_strided_slice %139 {offsets = [0, 0], sizes = [8, 128], strides = [1, 1]} : vector<8x384xf32> to vector<8x128xf32>
    %142 = arith.addf %140, %141 : vector<8x128xf32>
    %143 = arith.negf %142 : vector<8x128xf32>
    %144 = math.exp %143 : vector<8x128xf32>
    %cst_47 = arith.constant 1.000000e+00 : f32
    %145 = vector.broadcast %cst_47 : f32 to vector<8x128xf32>
    %146 = arith.addf %145, %144 : vector<8x128xf32>
    %147 = arith.divf %145, %146 : vector<8x128xf32>
    %148 = vector.extract_strided_slice %137 {offsets = [0, 128], sizes = [8, 128], strides = [1, 1]} : vector<8x384xf32> to vector<8x128xf32>
    %149 = vector.extract_strided_slice %139 {offsets = [0, 128], sizes = [8, 128], strides = [1, 1]} : vector<8x384xf32> to vector<8x128xf32>
    %150 = arith.addf %148, %149 : vector<8x128xf32>
    %151 = arith.negf %150 : vector<8x128xf32>
    %152 = math.exp %151 : vector<8x128xf32>
    %cst_48 = arith.constant 1.000000e+00 : f32
    %153 = vector.broadcast %cst_48 : f32 to vector<8x128xf32>
    %154 = arith.addf %153, %152 : vector<8x128xf32>
    %155 = arith.divf %153, %154 : vector<8x128xf32>
    %156 = vector.extract_strided_slice %137 {offsets = [0, 256], sizes = [8, 128], strides = [1, 1]} : vector<8x384xf32> to vector<8x128xf32>
    %157 = vector.extract_strided_slice %139 {offsets = [0, 256], sizes = [8, 128], strides = [1, 1]} : vector<8x384xf32> to vector<8x128xf32>
    %158 = arith.mulf %147, %157 : vector<8x128xf32>
    %159 = arith.addf %156, %158 : vector<8x128xf32>
    %160 = math.tanh %159 : vector<8x128xf32>
    %cst_49 = arith.constant 1.000000e+00 : f32
    %161 = vector.broadcast %cst_49 : f32 to vector<8x128xf32>
    %162 = arith.subf %161, %155 : vector<8x128xf32>
    %163 = arith.mulf %162, %160 : vector<8x128xf32>
    %164 = arith.mulf %155, %135 : vector<8x128xf32>
    %165 = arith.addf %163, %164 : vector<8x128xf32>
    %c32_50 = arith.constant 32 : index
    %c0_51 = arith.constant 0 : index
    %166 = vector.load %arg18[%c32_50, %c0_51] : memref<64x128xf32, #tpu.memory_space<vmem>>, vector<8x128xf32>
    tpu.vector_store %arg18[%c32_50, %c0_51], %165 {strides = array<i32>} : memref<64x128xf32, #tpu.memory_space<vmem>>, vector<8x128xf32>,
    %c40 = arith.constant 40 : index
    %c0_52 = arith.constant 0 : index
    %167 = vector.load %arg17[%c40, %c0_52] : memref<64x384xf32, #tpu.memory_space<vmem>>, vector<8x384xf32>
    %cst_53 = arith.constant dense<0.000000e+00> : vector<8x384xf32>
    %168 = tpu.matmul %165, %6, %cst_53 {dimension_numbers = #tpu.dot_dimension_numbers<[1], [0], [0], [1], [0, 0, 1, 1], [], []>} : vector<8x128xf32>, vector<128x384xf32>, vector<8x384xf32> -> vector<8x384xf32>
    %169 = arith.addf %168, %14 : vector<8x384xf32>
    %170 = vector.extract_strided_slice %167 {offsets = [0, 0], sizes = [8, 128], strides = [1, 1]} : vector<8x384xf32> to vector<8x128xf32>
    %171 = vector.extract_strided_slice %169 {offsets = [0, 0], sizes = [8, 128], strides = [1, 1]} : vector<8x384xf32> to vector<8x128xf32>
    %172 = arith.addf %170, %171 : vector<8x128xf32>
    %173 = arith.negf %172 : vector<8x128xf32>
    %174 = math.exp %173 : vector<8x128xf32>
    %cst_54 = arith.constant 1.000000e+00 : f32
    %175 = vector.broadcast %cst_54 : f32 to vector<8x128xf32>
    %176 = arith.addf %175, %174 : vector<8x128xf32>
    %177 = arith.divf %175, %176 : vector<8x128xf32>
    %178 = vector.extract_strided_slice %167 {offsets = [0, 128], sizes = [8, 128], strides = [1, 1]} : vector<8x384xf32> to vector<8x128xf32>
    %179 = vector.extract_strided_slice %169 {offsets = [0, 128], sizes = [8, 128], strides = [1, 1]} : vector<8x384xf32> to vector<8x128xf32>
    %180 = arith.addf %178, %179 : vector<8x128xf32>
    %181 = arith.negf %180 : vector<8x128xf32>
    %182 = math.exp %181 : vector<8x128xf32>
    %cst_55 = arith.constant 1.000000e+00 : f32
    %183 = vector.broadcast %cst_55 : f32 to vector<8x128xf32>
    %184 = arith.addf %183, %182 : vector<8x128xf32>
    %185 = arith.divf %183, %184 : vector<8x128xf32>
    %186 = vector.extract_strided_slice %167 {offsets = [0, 256], sizes = [8, 128], strides = [1, 1]} : vector<8x384xf32> to vector<8x128xf32>
    %187 = vector.extract_strided_slice %169 {offsets = [0, 256], sizes = [8, 128], strides = [1, 1]} : vector<8x384xf32> to vector<8x128xf32>
    %188 = arith.mulf %177, %187 : vector<8x128xf32>
    %189 = arith.addf %186, %188 : vector<8x128xf32>
    %190 = math.tanh %189 : vector<8x128xf32>
    %cst_56 = arith.constant 1.000000e+00 : f32
    %191 = vector.broadcast %cst_56 : f32 to vector<8x128xf32>
    %192 = arith.subf %191, %185 : vector<8x128xf32>
    %193 = arith.mulf %192, %190 : vector<8x128xf32>
    %194 = arith.mulf %185, %165 : vector<8x128xf32>
    %195 = arith.addf %193, %194 : vector<8x128xf32>
    %c40_57 = arith.constant 40 : index
    %c0_58 = arith.constant 0 : index
    %196 = vector.load %arg18[%c40_57, %c0_58] : memref<64x128xf32, #tpu.memory_space<vmem>>, vector<8x128xf32>
    tpu.vector_store %arg18[%c40_57, %c0_58], %195 {strides = array<i32>} : memref<64x128xf32, #tpu.memory_space<vmem>>, vector<8x128xf32>,
    %c48 = arith.constant 48 : index
    %c0_59 = arith.constant 0 : index
    %197 = vector.load %arg17[%c48, %c0_59] : memref<64x384xf32, #tpu.memory_space<vmem>>, vector<8x384xf32>
    %cst_60 = arith.constant dense<0.000000e+00> : vector<8x384xf32>
    %198 = tpu.matmul %195, %6, %cst_60 {dimension_numbers = #tpu.dot_dimension_numbers<[1], [0], [0], [1], [0, 0, 1, 1], [], []>} : vector<8x128xf32>, vector<128x384xf32>, vector<8x384xf32> -> vector<8x384xf32>
    %199 = arith.addf %198, %14 : vector<8x384xf32>
    %200 = vector.extract_strided_slice %197 {offsets = [0, 0], sizes = [8, 128], strides = [1, 1]} : vector<8x384xf32> to vector<8x128xf32>
    %201 = vector.extract_strided_slice %199 {offsets = [0, 0], sizes = [8, 128], strides = [1, 1]} : vector<8x384xf32> to vector<8x128xf32>
    %202 = arith.addf %200, %201 : vector<8x128xf32>
    %203 = arith.negf %202 : vector<8x128xf32>
    %204 = math.exp %203 : vector<8x128xf32>
    %cst_61 = arith.constant 1.000000e+00 : f32
    %205 = vector.broadcast %cst_61 : f32 to vector<8x128xf32>
    %206 = arith.addf %205, %204 : vector<8x128xf32>
    %207 = arith.divf %205, %206 : vector<8x128xf32>
    %208 = vector.extract_strided_slice %197 {offsets = [0, 128], sizes = [8, 128], strides = [1, 1]} : vector<8x384xf32> to vector<8x128xf32>
    %209 = vector.extract_strided_slice %199 {offsets = [0, 128], sizes = [8, 128], strides = [1, 1]} : vector<8x384xf32> to vector<8x128xf32>
    %210 = arith.addf %208, %209 : vector<8x128xf32>
    %211 = arith.negf %210 : vector<8x128xf32>
    %212 = math.exp %211 : vector<8x128xf32>
    %cst_62 = arith.constant 1.000000e+00 : f32
    %213 = vector.broadcast %cst_62 : f32 to vector<8x128xf32>
    %214 = arith.addf %213, %212 : vector<8x128xf32>
    %215 = arith.divf %213, %214 : vector<8x128xf32>
    %216 = vector.extract_strided_slice %197 {offsets = [0, 256], sizes = [8, 128], strides = [1, 1]} : vector<8x384xf32> to vector<8x128xf32>
    %217 = vector.extract_strided_slice %199 {offsets = [0, 256], sizes = [8, 128], strides = [1, 1]} : vector<8x384xf32> to vector<8x128xf32>
    %218 = arith.mulf %207, %217 : vector<8x128xf32>
    %219 = arith.addf %216, %218 : vector<8x128xf32>
    %220 = math.tanh %219 : vector<8x128xf32>
    %cst_63 = arith.constant 1.000000e+00 : f32
    %221 = vector.broadcast %cst_63 : f32 to vector<8x128xf32>
    %222 = arith.subf %221, %215 : vector<8x128xf32>
    %223 = arith.mulf %222, %220 : vector<8x128xf32>
    %224 = arith.mulf %215, %195 : vector<8x128xf32>
    %225 = arith.addf %223, %224 : vector<8x128xf32>
    %c48_64 = arith.constant 48 : index
    %c0_65 = arith.constant 0 : index
    %226 = vector.load %arg18[%c48_64, %c0_65] : memref<64x128xf32, #tpu.memory_space<vmem>>, vector<8x128xf32>
    tpu.vector_store %arg18[%c48_64, %c0_65], %225 {strides = array<i32>} : memref<64x128xf32, #tpu.memory_space<vmem>>, vector<8x128xf32>,
    %c56 = arith.constant 56 : index
    %c0_66 = arith.constant 0 : index
    %227 = vector.load %arg17[%c56, %c0_66] : memref<64x384xf32, #tpu.memory_space<vmem>>, vector<8x384xf32>
    %cst_67 = arith.constant dense<0.000000e+00> : vector<8x384xf32>
    %228 = tpu.matmul %225, %6, %cst_67 {dimension_numbers = #tpu.dot_dimension_numbers<[1], [0], [0], [1], [0, 0, 1, 1], [], []>} : vector<8x128xf32>, vector<128x384xf32>, vector<8x384xf32> -> vector<8x384xf32>
    %229 = arith.addf %228, %14 : vector<8x384xf32>
    %230 = vector.extract_strided_slice %227 {offsets = [0, 0], sizes = [8, 128], strides = [1, 1]} : vector<8x384xf32> to vector<8x128xf32>
    %231 = vector.extract_strided_slice %229 {offsets = [0, 0], sizes = [8, 128], strides = [1, 1]} : vector<8x384xf32> to vector<8x128xf32>
    %232 = arith.addf %230, %231 : vector<8x128xf32>
    %233 = arith.negf %232 : vector<8x128xf32>
    %234 = math.exp %233 : vector<8x128xf32>
    %cst_68 = arith.constant 1.000000e+00 : f32
    %235 = vector.broadcast %cst_68 : f32 to vector<8x128xf32>
    %236 = arith.addf %235, %234 : vector<8x128xf32>
    %237 = arith.divf %235, %236 : vector<8x128xf32>
    %238 = vector.extract_strided_slice %227 {offsets = [0, 128], sizes = [8, 128], strides = [1, 1]} : vector<8x384xf32> to vector<8x128xf32>
    %239 = vector.extract_strided_slice %229 {offsets = [0, 128], sizes = [8, 128], strides = [1, 1]} : vector<8x384xf32> to vector<8x128xf32>
    %240 = arith.addf %238, %239 : vector<8x128xf32>
    %241 = arith.negf %240 : vector<8x128xf32>
    %242 = math.exp %241 : vector<8x128xf32>
    %cst_69 = arith.constant 1.000000e+00 : f32
    %243 = vector.broadcast %cst_69 : f32 to vector<8x128xf32>
    %244 = arith.addf %243, %242 : vector<8x128xf32>
    %245 = arith.divf %243, %244 : vector<8x128xf32>
    %246 = vector.extract_strided_slice %227 {offsets = [0, 256], sizes = [8, 128], strides = [1, 1]} : vector<8x384xf32> to vector<8x128xf32>
    %247 = vector.extract_strided_slice %229 {offsets = [0, 256], sizes = [8, 128], strides = [1, 1]} : vector<8x384xf32> to vector<8x128xf32>
    %248 = arith.mulf %237, %247 : vector<8x128xf32>
    %249 = arith.addf %246, %248 : vector<8x128xf32>
    %250 = math.tanh %249 : vector<8x128xf32>
    %cst_70 = arith.constant 1.000000e+00 : f32
    %251 = vector.broadcast %cst_70 : f32 to vector<8x128xf32>
    %252 = arith.subf %251, %245 : vector<8x128xf32>
    %253 = arith.mulf %252, %250 : vector<8x128xf32>
    %254 = arith.mulf %245, %225 : vector<8x128xf32>
    %255 = arith.addf %253, %254 : vector<8x128xf32>
    %c56_71 = arith.constant 56 : index
    %c0_72 = arith.constant 0 : index
    %256 = vector.load %arg18[%c56_71, %c0_72] : memref<64x128xf32, #tpu.memory_space<vmem>>, vector<8x128xf32>
    tpu.vector_store %arg18[%c56_71, %c0_72], %255 {strides = array<i32>} : memref<64x128xf32, #tpu.memory_space<vmem>>, vector<8x128xf32>,
    %c0_73 = arith.constant 0 : index
    %c0_74 = arith.constant 0 : index
    %c0_75 = arith.constant 0 : index
    %257 = vector.load %arg16[%c0_73, %c0_74, %c0_75] : memref<2x8x128xf32, #tpu.memory_space<vmem>>, vector<1x8x128xf32>
    %258 = vector.shape_cast %257 : vector<1x8x128xf32> to vector<8x128xf32>
    %259 = vector.shape_cast %255 : vector<8x128xf32> to vector<1x8x128xf32>
    tpu.vector_store %arg16[%c0_73, %c0_74, %c0_75], %259 {strides = array<i32>} : memref<2x8x128xf32, #tpu.memory_space<vmem>>, vector<1x8x128xf32>,
    %c0_76 = arith.constant 0 : index
    %c0_77 = arith.constant 0 : index
    %260 = vector.load %arg8[%c0_76, %c0_77] : memref<128x384xf32, #tpu.memory_space<vmem>>, vector<128x384xf32>
    %c0_78 = arith.constant 0 : index
    %c0_79 = arith.constant 0 : index
    %261 = vector.load %arg9[%c0_78, %c0_79] : memref<128x384xf32, #tpu.memory_space<vmem>>, vector<128x384xf32>
    %c0_80 = arith.constant 0 : index
    %c0_81 = arith.constant 0 : index
    %262 = vector.load %arg10[%c0_80, %c0_81] : memref<1x384xf32, #tpu.memory_space<vmem>>, vector<1x384xf32>
    %c0_82 = arith.constant 0 : index
    %c0_83 = arith.constant 0 : index
    %263 = vector.load %arg11[%c0_82, %c0_83] : memref<1x384xf32, #tpu.memory_space<vmem>>, vector<1x384xf32>
    %c0_84 = arith.constant 0 : index
    %c0_85 = arith.constant 0 : index
    %264 = vector.load %arg18[%c0_84, %c0_85] : memref<64x128xf32, #tpu.memory_space<vmem>>, vector<64x128xf32>
    %cst_86 = arith.constant dense<0.000000e+00> : vector<64x384xf32>
    %265 = tpu.matmul %264, %260, %cst_86 {dimension_numbers = #tpu.dot_dimension_numbers<[1], [0], [0], [1], [0, 0, 1, 1], [], []>} : vector<64x128xf32>, vector<128x384xf32>, vector<64x384xf32> -> vector<64x384xf32>
    %266 = vector.broadcast %262 : vector<1x384xf32> to vector<64x384xf32>
    %267 = arith.addf %265, %266 : vector<64x384xf32>
    %c0_87 = arith.constant 0 : index
    %c0_88 = arith.constant 0 : index
    %268 = vector.load %arg17[%c0_87, %c0_88] : memref<64x384xf32, #tpu.memory_space<vmem>>, vector<64x384xf32>
    tpu.vector_store %arg17[%c0_87, %c0_88], %267 {strides = array<i32>} : memref<64x384xf32, #tpu.memory_space<vmem>>, vector<64x384xf32>,
    %269 = vector.shape_cast %263 : vector<1x384xf32> to vector<1x384xf32>
    %270 = vector.broadcast %269 : vector<1x384xf32> to vector<8x384xf32>
    %c1 = arith.constant 1 : index
    %c0_89 = arith.constant 0 : index
    %c0_90 = arith.constant 0 : index
    %271 = vector.load %arg16[%c1, %c0_89, %c0_90] : memref<2x8x128xf32, #tpu.memory_space<vmem>>, vector<1x8x128xf32>
    %272 = vector.shape_cast %271 : vector<1x8x128xf32> to vector<8x128xf32>
    %c0_91 = arith.constant 0 : index
    %c0_92 = arith.constant 0 : index
    %273 = vector.load %arg17[%c0_91, %c0_92] : memref<64x384xf32, #tpu.memory_space<vmem>>, vector<8x384xf32>
    %cst_93 = arith.constant dense<0.000000e+00> : vector<8x384xf32>
    %274 = tpu.matmul %272, %261, %cst_93 {dimension_numbers = #tpu.dot_dimension_numbers<[1], [0], [0], [1], [0, 0, 1, 1], [], []>} : vector<8x128xf32>, vector<128x384xf32>, vector<8x384xf32> -> vector<8x384xf32>
    %275 = arith.addf %274, %270 : vector<8x384xf32>
    %276 = vector.extract_strided_slice %273 {offsets = [0, 0], sizes = [8, 128], strides = [1, 1]} : vector<8x384xf32> to vector<8x128xf32>
    %277 = vector.extract_strided_slice %275 {offsets = [0, 0], sizes = [8, 128], strides = [1, 1]} : vector<8x384xf32> to vector<8x128xf32>
    %278 = arith.addf %276, %277 : vector<8x128xf32>
    %279 = arith.negf %278 : vector<8x128xf32>
    %280 = math.exp %279 : vector<8x128xf32>
    %cst_94 = arith.constant 1.000000e+00 : f32
    %281 = vector.broadcast %cst_94 : f32 to vector<8x128xf32>
    %282 = arith.addf %281, %280 : vector<8x128xf32>
    %283 = arith.divf %281, %282 : vector<8x128xf32>
    %284 = vector.extract_strided_slice %273 {offsets = [0, 128], sizes = [8, 128], strides = [1, 1]} : vector<8x384xf32> to vector<8x128xf32>
    %285 = vector.extract_strided_slice %275 {offsets = [0, 128], sizes = [8, 128], strides = [1, 1]} : vector<8x384xf32> to vector<8x128xf32>
    %286 = arith.addf %284, %285 : vector<8x128xf32>
    %287 = arith.negf %286 : vector<8x128xf32>
    %288 = math.exp %287 : vector<8x128xf32>
    %cst_95 = arith.constant 1.000000e+00 : f32
    %289 = vector.broadcast %cst_95 : f32 to vector<8x128xf32>
    %290 = arith.addf %289, %288 : vector<8x128xf32>
    %291 = arith.divf %289, %290 : vector<8x128xf32>
    %292 = vector.extract_strided_slice %273 {offsets = [0, 256], sizes = [8, 128], strides = [1, 1]} : vector<8x384xf32> to vector<8x128xf32>
    %293 = vector.extract_strided_slice %275 {offsets = [0, 256], sizes = [8, 128], strides = [1, 1]} : vector<8x384xf32> to vector<8x128xf32>
    %294 = arith.mulf %283, %293 : vector<8x128xf32>
    %295 = arith.addf %292, %294 : vector<8x128xf32>
    %296 = math.tanh %295 : vector<8x128xf32>
    %cst_96 = arith.constant 1.000000e+00 : f32
    %297 = vector.broadcast %cst_96 : f32 to vector<8x128xf32>
    %298 = arith.subf %297, %291 : vector<8x128xf32>
    %299 = arith.mulf %298, %296 : vector<8x128xf32>
    %300 = arith.mulf %291, %272 : vector<8x128xf32>
    %301 = arith.addf %299, %300 : vector<8x128xf32>
    %c0_97 = arith.constant 0 : index
    %c0_98 = arith.constant 0 : index
    %302 = vector.load %arg18[%c0_97, %c0_98] : memref<64x128xf32, #tpu.memory_space<vmem>>, vector<8x128xf32>
    tpu.vector_store %arg18[%c0_97, %c0_98], %301 {strides = array<i32>} : memref<64x128xf32, #tpu.memory_space<vmem>>, vector<8x128xf32>,
    %c8_99 = arith.constant 8 : index
    %c0_100 = arith.constant 0 : index
    %303 = vector.load %arg17[%c8_99, %c0_100] : memref<64x384xf32, #tpu.memory_space<vmem>>, vector<8x384xf32>
    %cst_101 = arith.constant dense<0.000000e+00> : vector<8x384xf32>
    %304 = tpu.matmul %301, %261, %cst_101 {dimension_numbers = #tpu.dot_dimension_numbers<[1], [0], [0], [1], [0, 0, 1, 1], [], []>} : vector<8x128xf32>, vector<128x384xf32>, vector<8x384xf32> -> vector<8x384xf32>
    %305 = arith.addf %304, %270 : vector<8x384xf32>
    %306 = vector.extract_strided_slice %303 {offsets = [0, 0], sizes = [8, 128], strides = [1, 1]} : vector<8x384xf32> to vector<8x128xf32>
    %307 = vector.extract_strided_slice %305 {offsets = [0, 0], sizes = [8, 128], strides = [1, 1]} : vector<8x384xf32> to vector<8x128xf32>
    %308 = arith.addf %306, %307 : vector<8x128xf32>
    %309 = arith.negf %308 : vector<8x128xf32>
    %310 = math.exp %309 : vector<8x128xf32>
    %cst_102 = arith.constant 1.000000e+00 : f32
    %311 = vector.broadcast %cst_102 : f32 to vector<8x128xf32>
    %312 = arith.addf %311, %310 : vector<8x128xf32>
    %313 = arith.divf %311, %312 : vector<8x128xf32>
    %314 = vector.extract_strided_slice %303 {offsets = [0, 128], sizes = [8, 128], strides = [1, 1]} : vector<8x384xf32> to vector<8x128xf32>
    %315 = vector.extract_strided_slice %305 {offsets = [0, 128], sizes = [8, 128], strides = [1, 1]} : vector<8x384xf32> to vector<8x128xf32>
    %316 = arith.addf %314, %315 : vector<8x128xf32>
    %317 = arith.negf %316 : vector<8x128xf32>
    %318 = math.exp %317 : vector<8x128xf32>
    %cst_103 = arith.constant 1.000000e+00 : f32
    %319 = vector.broadcast %cst_103 : f32 to vector<8x128xf32>
    %320 = arith.addf %319, %318 : vector<8x128xf32>
    %321 = arith.divf %319, %320 : vector<8x128xf32>
    %322 = vector.extract_strided_slice %303 {offsets = [0, 256], sizes = [8, 128], strides = [1, 1]} : vector<8x384xf32> to vector<8x128xf32>
    %323 = vector.extract_strided_slice %305 {offsets = [0, 256], sizes = [8, 128], strides = [1, 1]} : vector<8x384xf32> to vector<8x128xf32>
    %324 = arith.mulf %313, %323 : vector<8x128xf32>
    %325 = arith.addf %322, %324 : vector<8x128xf32>
    %326 = math.tanh %325 : vector<8x128xf32>
    %cst_104 = arith.constant 1.000000e+00 : f32
    %327 = vector.broadcast %cst_104 : f32 to vector<8x128xf32>
    %328 = arith.subf %327, %321 : vector<8x128xf32>
    %329 = arith.mulf %328, %326 : vector<8x128xf32>
    %330 = arith.mulf %321, %301 : vector<8x128xf32>
    %331 = arith.addf %329, %330 : vector<8x128xf32>
    %c8_105 = arith.constant 8 : index
    %c0_106 = arith.constant 0 : index
    %332 = vector.load %arg18[%c8_105, %c0_106] : memref<64x128xf32, #tpu.memory_space<vmem>>, vector<8x128xf32>
    tpu.vector_store %arg18[%c8_105, %c0_106], %331 {strides = array<i32>} : memref<64x128xf32, #tpu.memory_space<vmem>>, vector<8x128xf32>,
    %c16_107 = arith.constant 16 : index
    %c0_108 = arith.constant 0 : index
    %333 = vector.load %arg17[%c16_107, %c0_108] : memref<64x384xf32, #tpu.memory_space<vmem>>, vector<8x384xf32>
    %cst_109 = arith.constant dense<0.000000e+00> : vector<8x384xf32>
    %334 = tpu.matmul %331, %261, %cst_109 {dimension_numbers = #tpu.dot_dimension_numbers<[1], [0], [0], [1], [0, 0, 1, 1], [], []>} : vector<8x128xf32>, vector<128x384xf32>, vector<8x384xf32> -> vector<8x384xf32>
    %335 = arith.addf %334, %270 : vector<8x384xf32>
    %336 = vector.extract_strided_slice %333 {offsets = [0, 0], sizes = [8, 128], strides = [1, 1]} : vector<8x384xf32> to vector<8x128xf32>
    %337 = vector.extract_strided_slice %335 {offsets = [0, 0], sizes = [8, 128], strides = [1, 1]} : vector<8x384xf32> to vector<8x128xf32>
    %338 = arith.addf %336, %337 : vector<8x128xf32>
    %339 = arith.negf %338 : vector<8x128xf32>
    %340 = math.exp %339 : vector<8x128xf32>
    %cst_110 = arith.constant 1.000000e+00 : f32
    %341 = vector.broadcast %cst_110 : f32 to vector<8x128xf32>
    %342 = arith.addf %341, %340 : vector<8x128xf32>
    %343 = arith.divf %341, %342 : vector<8x128xf32>
    %344 = vector.extract_strided_slice %333 {offsets = [0, 128], sizes = [8, 128], strides = [1, 1]} : vector<8x384xf32> to vector<8x128xf32>
    %345 = vector.extract_strided_slice %335 {offsets = [0, 128], sizes = [8, 128], strides = [1, 1]} : vector<8x384xf32> to vector<8x128xf32>
    %346 = arith.addf %344, %345 : vector<8x128xf32>
    %347 = arith.negf %346 : vector<8x128xf32>
    %348 = math.exp %347 : vector<8x128xf32>
    %cst_111 = arith.constant 1.000000e+00 : f32
    %349 = vector.broadcast %cst_111 : f32 to vector<8x128xf32>
    %350 = arith.addf %349, %348 : vector<8x128xf32>
    %351 = arith.divf %349, %350 : vector<8x128xf32>
    %352 = vector.extract_strided_slice %333 {offsets = [0, 256], sizes = [8, 128], strides = [1, 1]} : vector<8x384xf32> to vector<8x128xf32>
    %353 = vector.extract_strided_slice %335 {offsets = [0, 256], sizes = [8, 128], strides = [1, 1]} : vector<8x384xf32> to vector<8x128xf32>
    %354 = arith.mulf %343, %353 : vector<8x128xf32>
    %355 = arith.addf %352, %354 : vector<8x128xf32>
    %356 = math.tanh %355 : vector<8x128xf32>
    %cst_112 = arith.constant 1.000000e+00 : f32
    %357 = vector.broadcast %cst_112 : f32 to vector<8x128xf32>
    %358 = arith.subf %357, %351 : vector<8x128xf32>
    %359 = arith.mulf %358, %356 : vector<8x128xf32>
    %360 = arith.mulf %351, %331 : vector<8x128xf32>
    %361 = arith.addf %359, %360 : vector<8x128xf32>
    %c16_113 = arith.constant 16 : index
    %c0_114 = arith.constant 0 : index
    %362 = vector.load %arg18[%c16_113, %c0_114] : memref<64x128xf32, #tpu.memory_space<vmem>>, vector<8x128xf32>
    tpu.vector_store %arg18[%c16_113, %c0_114], %361 {strides = array<i32>} : memref<64x128xf32, #tpu.memory_space<vmem>>, vector<8x128xf32>,
    %c24_115 = arith.constant 24 : index
    %c0_116 = arith.constant 0 : index
    %363 = vector.load %arg17[%c24_115, %c0_116] : memref<64x384xf32, #tpu.memory_space<vmem>>, vector<8x384xf32>
    %cst_117 = arith.constant dense<0.000000e+00> : vector<8x384xf32>
    %364 = tpu.matmul %361, %261, %cst_117 {dimension_numbers = #tpu.dot_dimension_numbers<[1], [0], [0], [1], [0, 0, 1, 1], [], []>} : vector<8x128xf32>, vector<128x384xf32>, vector<8x384xf32> -> vector<8x384xf32>
    %365 = arith.addf %364, %270 : vector<8x384xf32>
    %366 = vector.extract_strided_slice %363 {offsets = [0, 0], sizes = [8, 128], strides = [1, 1]} : vector<8x384xf32> to vector<8x128xf32>
    %367 = vector.extract_strided_slice %365 {offsets = [0, 0], sizes = [8, 128], strides = [1, 1]} : vector<8x384xf32> to vector<8x128xf32>
    %368 = arith.addf %366, %367 : vector<8x128xf32>
    %369 = arith.negf %368 : vector<8x128xf32>
    %370 = math.exp %369 : vector<8x128xf32>
    %cst_118 = arith.constant 1.000000e+00 : f32
    %371 = vector.broadcast %cst_118 : f32 to vector<8x128xf32>
    %372 = arith.addf %371, %370 : vector<8x128xf32>
    %373 = arith.divf %371, %372 : vector<8x128xf32>
    %374 = vector.extract_strided_slice %363 {offsets = [0, 128], sizes = [8, 128], strides = [1, 1]} : vector<8x384xf32> to vector<8x128xf32>
    %375 = vector.extract_strided_slice %365 {offsets = [0, 128], sizes = [8, 128], strides = [1, 1]} : vector<8x384xf32> to vector<8x128xf32>
    %376 = arith.addf %374, %375 : vector<8x128xf32>
    %377 = arith.negf %376 : vector<8x128xf32>
    %378 = math.exp %377 : vector<8x128xf32>
    %cst_119 = arith.constant 1.000000e+00 : f32
    %379 = vector.broadcast %cst_119 : f32 to vector<8x128xf32>
    %380 = arith.addf %379, %378 : vector<8x128xf32>
    %381 = arith.divf %379, %380 : vector<8x128xf32>
    %382 = vector.extract_strided_slice %363 {offsets = [0, 256], sizes = [8, 128], strides = [1, 1]} : vector<8x384xf32> to vector<8x128xf32>
    %383 = vector.extract_strided_slice %365 {offsets = [0, 256], sizes = [8, 128], strides = [1, 1]} : vector<8x384xf32> to vector<8x128xf32>
    %384 = arith.mulf %373, %383 : vector<8x128xf32>
    %385 = arith.addf %382, %384 : vector<8x128xf32>
    %386 = math.tanh %385 : vector<8x128xf32>
    %cst_120 = arith.constant 1.000000e+00 : f32
    %387 = vector.broadcast %cst_120 : f32 to vector<8x128xf32>
    %388 = arith.subf %387, %381 : vector<8x128xf32>
    %389 = arith.mulf %388, %386 : vector<8x128xf32>
    %390 = arith.mulf %381, %361 : vector<8x128xf32>
    %391 = arith.addf %389, %390 : vector<8x128xf32>
    %c24_121 = arith.constant 24 : index
    %c0_122 = arith.constant 0 : index
    %392 = vector.load %arg18[%c24_121, %c0_122] : memref<64x128xf32, #tpu.memory_space<vmem>>, vector<8x128xf32>
    tpu.vector_store %arg18[%c24_121, %c0_122], %391 {strides = array<i32>} : memref<64x128xf32, #tpu.memory_space<vmem>>, vector<8x128xf32>,
    %c32_123 = arith.constant 32 : index
    %c0_124 = arith.constant 0 : index
    %393 = vector.load %arg17[%c32_123, %c0_124] : memref<64x384xf32, #tpu.memory_space<vmem>>, vector<8x384xf32>
    %cst_125 = arith.constant dense<0.000000e+00> : vector<8x384xf32>
    %394 = tpu.matmul %391, %261, %cst_125 {dimension_numbers = #tpu.dot_dimension_numbers<[1], [0], [0], [1], [0, 0, 1, 1], [], []>} : vector<8x128xf32>, vector<128x384xf32>, vector<8x384xf32> -> vector<8x384xf32>
    %395 = arith.addf %394, %270 : vector<8x384xf32>
    %396 = vector.extract_strided_slice %393 {offsets = [0, 0], sizes = [8, 128], strides = [1, 1]} : vector<8x384xf32> to vector<8x128xf32>
    %397 = vector.extract_strided_slice %395 {offsets = [0, 0], sizes = [8, 128], strides = [1, 1]} : vector<8x384xf32> to vector<8x128xf32>
    %398 = arith.addf %396, %397 : vector<8x128xf32>
    %399 = arith.negf %398 : vector<8x128xf32>
    %400 = math.exp %399 : vector<8x128xf32>
    %cst_126 = arith.constant 1.000000e+00 : f32
    %401 = vector.broadcast %cst_126 : f32 to vector<8x128xf32>
    %402 = arith.addf %401, %400 : vector<8x128xf32>
    %403 = arith.divf %401, %402 : vector<8x128xf32>
    %404 = vector.extract_strided_slice %393 {offsets = [0, 128], sizes = [8, 128], strides = [1, 1]} : vector<8x384xf32> to vector<8x128xf32>
    %405 = vector.extract_strided_slice %395 {offsets = [0, 128], sizes = [8, 128], strides = [1, 1]} : vector<8x384xf32> to vector<8x128xf32>
    %406 = arith.addf %404, %405 : vector<8x128xf32>
    %407 = arith.negf %406 : vector<8x128xf32>
    %408 = math.exp %407 : vector<8x128xf32>
    %cst_127 = arith.constant 1.000000e+00 : f32
    %409 = vector.broadcast %cst_127 : f32 to vector<8x128xf32>
    %410 = arith.addf %409, %408 : vector<8x128xf32>
    %411 = arith.divf %409, %410 : vector<8x128xf32>
    %412 = vector.extract_strided_slice %393 {offsets = [0, 256], sizes = [8, 128], strides = [1, 1]} : vector<8x384xf32> to vector<8x128xf32>
    %413 = vector.extract_strided_slice %395 {offsets = [0, 256], sizes = [8, 128], strides = [1, 1]} : vector<8x384xf32> to vector<8x128xf32>
    %414 = arith.mulf %403, %413 : vector<8x128xf32>
    %415 = arith.addf %412, %414 : vector<8x128xf32>
    %416 = math.tanh %415 : vector<8x128xf32>
    %cst_128 = arith.constant 1.000000e+00 : f32
    %417 = vector.broadcast %cst_128 : f32 to vector<8x128xf32>
    %418 = arith.subf %417, %411 : vector<8x128xf32>
    %419 = arith.mulf %418, %416 : vector<8x128xf32>
    %420 = arith.mulf %411, %391 : vector<8x128xf32>
    %421 = arith.addf %419, %420 : vector<8x128xf32>
    %c32_129 = arith.constant 32 : index
    %c0_130 = arith.constant 0 : index
    %422 = vector.load %arg18[%c32_129, %c0_130] : memref<64x128xf32, #tpu.memory_space<vmem>>, vector<8x128xf32>
    tpu.vector_store %arg18[%c32_129, %c0_130], %421 {strides = array<i32>} : memref<64x128xf32, #tpu.memory_space<vmem>>, vector<8x128xf32>,
    %c40_131 = arith.constant 40 : index
    %c0_132 = arith.constant 0 : index
    %423 = vector.load %arg17[%c40_131, %c0_132] : memref<64x384xf32, #tpu.memory_space<vmem>>, vector<8x384xf32>
    %cst_133 = arith.constant dense<0.000000e+00> : vector<8x384xf32>
    %424 = tpu.matmul %421, %261, %cst_133 {dimension_numbers = #tpu.dot_dimension_numbers<[1], [0], [0], [1], [0, 0, 1, 1], [], []>} : vector<8x128xf32>, vector<128x384xf32>, vector<8x384xf32> -> vector<8x384xf32>
    %425 = arith.addf %424, %270 : vector<8x384xf32>
    %426 = vector.extract_strided_slice %423 {offsets = [0, 0], sizes = [8, 128], strides = [1, 1]} : vector<8x384xf32> to vector<8x128xf32>
    %427 = vector.extract_strided_slice %425 {offsets = [0, 0], sizes = [8, 128], strides = [1, 1]} : vector<8x384xf32> to vector<8x128xf32>
    %428 = arith.addf %426, %427 : vector<8x128xf32>
    %429 = arith.negf %428 : vector<8x128xf32>
    %430 = math.exp %429 : vector<8x128xf32>
    %cst_134 = arith.constant 1.000000e+00 : f32
    %431 = vector.broadcast %cst_134 : f32 to vector<8x128xf32>
    %432 = arith.addf %431, %430 : vector<8x128xf32>
    %433 = arith.divf %431, %432 : vector<8x128xf32>
    %434 = vector.extract_strided_slice %423 {offsets = [0, 128], sizes = [8, 128], strides = [1, 1]} : vector<8x384xf32> to vector<8x128xf32>
    %435 = vector.extract_strided_slice %425 {offsets = [0, 128], sizes = [8, 128], strides = [1, 1]} : vector<8x384xf32> to vector<8x128xf32>
    %436 = arith.addf %434, %435 : vector<8x128xf32>
    %437 = arith.negf %436 : vector<8x128xf32>
    %438 = math.exp %437 : vector<8x128xf32>
    %cst_135 = arith.constant 1.000000e+00 : f32
    %439 = vector.broadcast %cst_135 : f32 to vector<8x128xf32>
    %440 = arith.addf %439, %438 : vector<8x128xf32>
    %441 = arith.divf %439, %440 : vector<8x128xf32>
    %442 = vector.extract_strided_slice %423 {offsets = [0, 256], sizes = [8, 128], strides = [1, 1]} : vector<8x384xf32> to vector<8x128xf32>
    %443 = vector.extract_strided_slice %425 {offsets = [0, 256], sizes = [8, 128], strides = [1, 1]} : vector<8x384xf32> to vector<8x128xf32>
    %444 = arith.mulf %433, %443 : vector<8x128xf32>
    %445 = arith.addf %442, %444 : vector<8x128xf32>
    %446 = math.tanh %445 : vector<8x128xf32>
    %cst_136 = arith.constant 1.000000e+00 : f32
    %447 = vector.broadcast %cst_136 : f32 to vector<8x128xf32>
    %448 = arith.subf %447, %441 : vector<8x128xf32>
    %449 = arith.mulf %448, %446 : vector<8x128xf32>
    %450 = arith.mulf %441, %421 : vector<8x128xf32>
    %451 = arith.addf %449, %450 : vector<8x128xf32>
    %c40_137 = arith.constant 40 : index
    %c0_138 = arith.constant 0 : index
    %452 = vector.load %arg18[%c40_137, %c0_138] : memref<64x128xf32, #tpu.memory_space<vmem>>, vector<8x128xf32>
    tpu.vector_store %arg18[%c40_137, %c0_138], %451 {strides = array<i32>} : memref<64x128xf32, #tpu.memory_space<vmem>>, vector<8x128xf32>,
    %c48_139 = arith.constant 48 : index
    %c0_140 = arith.constant 0 : index
    %453 = vector.load %arg17[%c48_139, %c0_140] : memref<64x384xf32, #tpu.memory_space<vmem>>, vector<8x384xf32>
    %cst_141 = arith.constant dense<0.000000e+00> : vector<8x384xf32>
    %454 = tpu.matmul %451, %261, %cst_141 {dimension_numbers = #tpu.dot_dimension_numbers<[1], [0], [0], [1], [0, 0, 1, 1], [], []>} : vector<8x128xf32>, vector<128x384xf32>, vector<8x384xf32> -> vector<8x384xf32>
    %455 = arith.addf %454, %270 : vector<8x384xf32>
    %456 = vector.extract_strided_slice %453 {offsets = [0, 0], sizes = [8, 128], strides = [1, 1]} : vector<8x384xf32> to vector<8x128xf32>
    %457 = vector.extract_strided_slice %455 {offsets = [0, 0], sizes = [8, 128], strides = [1, 1]} : vector<8x384xf32> to vector<8x128xf32>
    %458 = arith.addf %456, %457 : vector<8x128xf32>
    %459 = arith.negf %458 : vector<8x128xf32>
    %460 = math.exp %459 : vector<8x128xf32>
    %cst_142 = arith.constant 1.000000e+00 : f32
    %461 = vector.broadcast %cst_142 : f32 to vector<8x128xf32>
    %462 = arith.addf %461, %460 : vector<8x128xf32>
    %463 = arith.divf %461, %462 : vector<8x128xf32>
    %464 = vector.extract_strided_slice %453 {offsets = [0, 128], sizes = [8, 128], strides = [1, 1]} : vector<8x384xf32> to vector<8x128xf32>
    %465 = vector.extract_strided_slice %455 {offsets = [0, 128], sizes = [8, 128], strides = [1, 1]} : vector<8x384xf32> to vector<8x128xf32>
    %466 = arith.addf %464, %465 : vector<8x128xf32>
    %467 = arith.negf %466 : vector<8x128xf32>
    %468 = math.exp %467 : vector<8x128xf32>
    %cst_143 = arith.constant 1.000000e+00 : f32
    %469 = vector.broadcast %cst_143 : f32 to vector<8x128xf32>
    %470 = arith.addf %469, %468 : vector<8x128xf32>
    %471 = arith.divf %469, %470 : vector<8x128xf32>
    %472 = vector.extract_strided_slice %453 {offsets = [0, 256], sizes = [8, 128], strides = [1, 1]} : vector<8x384xf32> to vector<8x128xf32>
    %473 = vector.extract_strided_slice %455 {offsets = [0, 256], sizes = [8, 128], strides = [1, 1]} : vector<8x384xf32> to vector<8x128xf32>
    %474 = arith.mulf %463, %473 : vector<8x128xf32>
    %475 = arith.addf %472, %474 : vector<8x128xf32>
    %476 = math.tanh %475 : vector<8x128xf32>
    %cst_144 = arith.constant 1.000000e+00 : f32
    %477 = vector.broadcast %cst_144 : f32 to vector<8x128xf32>
    %478 = arith.subf %477, %471 : vector<8x128xf32>
    %479 = arith.mulf %478, %476 : vector<8x128xf32>
    %480 = arith.mulf %471, %451 : vector<8x128xf32>
    %481 = arith.addf %479, %480 : vector<8x128xf32>
    %c48_145 = arith.constant 48 : index
    %c0_146 = arith.constant 0 : index
    %482 = vector.load %arg18[%c48_145, %c0_146] : memref<64x128xf32, #tpu.memory_space<vmem>>, vector<8x128xf32>
    tpu.vector_store %arg18[%c48_145, %c0_146], %481 {strides = array<i32>} : memref<64x128xf32, #tpu.memory_space<vmem>>, vector<8x128xf32>,
    %c56_147 = arith.constant 56 : index
    %c0_148 = arith.constant 0 : index
    %483 = vector.load %arg17[%c56_147, %c0_148] : memref<64x384xf32, #tpu.memory_space<vmem>>, vector<8x384xf32>
    %cst_149 = arith.constant dense<0.000000e+00> : vector<8x384xf32>
    %484 = tpu.matmul %481, %261, %cst_149 {dimension_numbers = #tpu.dot_dimension_numbers<[1], [0], [0], [1], [0, 0, 1, 1], [], []>} : vector<8x128xf32>, vector<128x384xf32>, vector<8x384xf32> -> vector<8x384xf32>
    %485 = arith.addf %484, %270 : vector<8x384xf32>
    %486 = vector.extract_strided_slice %483 {offsets = [0, 0], sizes = [8, 128], strides = [1, 1]} : vector<8x384xf32> to vector<8x128xf32>
    %487 = vector.extract_strided_slice %485 {offsets = [0, 0], sizes = [8, 128], strides = [1, 1]} : vector<8x384xf32> to vector<8x128xf32>
    %488 = arith.addf %486, %487 : vector<8x128xf32>
    %489 = arith.negf %488 : vector<8x128xf32>
    %490 = math.exp %489 : vector<8x128xf32>
    %cst_150 = arith.constant 1.000000e+00 : f32
    %491 = vector.broadcast %cst_150 : f32 to vector<8x128xf32>
    %492 = arith.addf %491, %490 : vector<8x128xf32>
    %493 = arith.divf %491, %492 : vector<8x128xf32>
    %494 = vector.extract_strided_slice %483 {offsets = [0, 128], sizes = [8, 128], strides = [1, 1]} : vector<8x384xf32> to vector<8x128xf32>
    %495 = vector.extract_strided_slice %485 {offsets = [0, 128], sizes = [8, 128], strides = [1, 1]} : vector<8x384xf32> to vector<8x128xf32>
    %496 = arith.addf %494, %495 : vector<8x128xf32>
    %497 = arith.negf %496 : vector<8x128xf32>
    %498 = math.exp %497 : vector<8x128xf32>
    %cst_151 = arith.constant 1.000000e+00 : f32
    %499 = vector.broadcast %cst_151 : f32 to vector<8x128xf32>
    %500 = arith.addf %499, %498 : vector<8x128xf32>
    %501 = arith.divf %499, %500 : vector<8x128xf32>
    %502 = vector.extract_strided_slice %483 {offsets = [0, 256], sizes = [8, 128], strides = [1, 1]} : vector<8x384xf32> to vector<8x128xf32>
    %503 = vector.extract_strided_slice %485 {offsets = [0, 256], sizes = [8, 128], strides = [1, 1]} : vector<8x384xf32> to vector<8x128xf32>
    %504 = arith.mulf %493, %503 : vector<8x128xf32>
    %505 = arith.addf %502, %504 : vector<8x128xf32>
    %506 = math.tanh %505 : vector<8x128xf32>
    %cst_152 = arith.constant 1.000000e+00 : f32
    %507 = vector.broadcast %cst_152 : f32 to vector<8x128xf32>
    %508 = arith.subf %507, %501 : vector<8x128xf32>
    %509 = arith.mulf %508, %506 : vector<8x128xf32>
    %510 = arith.mulf %501, %481 : vector<8x128xf32>
    %511 = arith.addf %509, %510 : vector<8x128xf32>
    %c56_153 = arith.constant 56 : index
    %c0_154 = arith.constant 0 : index
    %512 = vector.load %arg18[%c56_153, %c0_154] : memref<64x128xf32, #tpu.memory_space<vmem>>, vector<8x128xf32>
    tpu.vector_store %arg18[%c56_153, %c0_154], %511 {strides = array<i32>} : memref<64x128xf32, #tpu.memory_space<vmem>>, vector<8x128xf32>,
    %c1_155 = arith.constant 1 : index
    %c0_156 = arith.constant 0 : index
    %c0_157 = arith.constant 0 : index
    %513 = vector.load %arg16[%c1_155, %c0_156, %c0_157] : memref<2x8x128xf32, #tpu.memory_space<vmem>>, vector<1x8x128xf32>
    %514 = vector.shape_cast %513 : vector<1x8x128xf32> to vector<8x128xf32>
    %515 = vector.shape_cast %511 : vector<8x128xf32> to vector<1x8x128xf32>
    tpu.vector_store %arg16[%c1_155, %c0_156, %c0_157], %515 {strides = array<i32>} : memref<2x8x128xf32, #tpu.memory_space<vmem>>, vector<1x8x128xf32>,
    %c0_158 = arith.constant 0 : index
    %c0_159 = arith.constant 0 : index
    %516 = vector.load %arg18[%c0_158, %c0_159] : memref<64x128xf32, #tpu.memory_space<vmem>>, vector<64x128xf32>
    %cst_160 = arith.constant dense<0.000000e+00> : vector<64xf32>
    %517 = vector.multi_reduction <add>, %516, %cst_160 [1] : vector<64x128xf32> to vector<64xf32>
    %518 = vector.shape_cast %517 : vector<64xf32> to vector<64x1xf32>
    %cst_161 = arith.constant 1.280000e+02 : f32
    %519 = vector.broadcast %cst_161 : f32 to vector<64x1xf32>
    %520 = arith.divf %518, %519 : vector<64x1xf32>
    %521 = vector.broadcast %520 : vector<64x1xf32> to vector<64x128xf32>
    %522 = arith.subf %516, %521 : vector<64x128xf32>
    %523 = arith.mulf %522, %522 : vector<64x128xf32>
    %cst_162 = arith.constant dense<0.000000e+00> : vector<64xf32>
    %524 = vector.multi_reduction <add>, %523, %cst_162 [1] : vector<64x128xf32> to vector<64xf32>
    %525 = vector.shape_cast %524 : vector<64xf32> to vector<64x1xf32>
    %cst_163 = arith.constant 1.280000e+02 : f32
    %526 = vector.broadcast %cst_163 : f32 to vector<64x1xf32>
    %527 = arith.divf %525, %526 : vector<64x1xf32>
    %cst_164 = arith.constant 9.99999974E-6 : f32
    %528 = vector.broadcast %cst_164 : f32 to vector<64x1xf32>
    %529 = arith.addf %527, %528 : vector<64x1xf32>
    %530 = math.rsqrt %529 : vector<64x1xf32>
    %531 = vector.broadcast %530 : vector<64x1xf32> to vector<64x128xf32>
    %532 = arith.mulf %522, %531 : vector<64x128xf32>
    %c0_165 = arith.constant 0 : index
    %c0_166 = arith.constant 0 : index
    %533 = vector.load %arg12[%c0_165, %c0_166] : memref<1x128xf32, #tpu.memory_space<vmem>>, vector<1x128xf32>
    %534 = vector.broadcast %533 : vector<1x128xf32> to vector<64x128xf32>
    %535 = arith.mulf %532, %534 : vector<64x128xf32>
    %c0_167 = arith.constant 0 : index
    %c0_168 = arith.constant 0 : index
    %536 = vector.load %arg13[%c0_167, %c0_168] : memref<1x128xf32, #tpu.memory_space<vmem>>, vector<1x128xf32>
    %537 = vector.broadcast %536 : vector<1x128xf32> to vector<64x128xf32>
    %538 = arith.addf %535, %537 : vector<64x128xf32>
    %539 = vector.shape_cast %538 : vector<64x128xf32> to vector<8x8x128xf32>
    %c0_169 = arith.constant 0 : index
    %c0_170 = arith.constant 0 : index
    %c0_171 = arith.constant 0 : index
    %540 = vector.load %arg14[%c0_169, %c0_170, %c0_171] : memref<8x8x128xf32, #tpu.memory_space<vmem>>, vector<8x8x128xf32>
    tpu.vector_store %arg14[%c0_169, %c0_170, %c0_171], %539 {strides = array<i32>} : memref<8x8x128xf32, #tpu.memory_space<vmem>>, vector<8x8x128xf32>,
    %c0_i32_172 = arith.constant 0 : i32
    %541 = arith.cmpi eq, %arg1, %c0_i32_172 : i32
    %542 = arith.extui %541 : i1 to i32
    %c0_i32_173 = arith.constant 0 : i32
    %543 = arith.cmpi ne, %542, %c0_i32_173 : i32
    scf.if %543 {
      %c0_174 = arith.constant 0 : index
      %c0_175 = arith.constant 0 : index
      %c0_176 = arith.constant 0 : index
      %544 = vector.load %arg16[%c0_174, %c0_175, %c0_176] : memref<2x8x128xf32, #tpu.memory_space<vmem>>, vector<1x8x128xf32>
      %545 = vector.shape_cast %544 : vector<1x8x128xf32> to vector<8x128xf32>
      %c0_177 = arith.constant 0 : index
      %c0_178 = arith.constant 0 : index
      %c0_179 = arith.constant 0 : index
      %546 = vector.load %arg15[%c0_177, %c0_178, %c0_179] : memref<1x8x128xf32, #tpu.memory_space<vmem>>, vector<1x8x128xf32>
      %547 = vector.shape_cast %546 : vector<1x8x128xf32> to vector<8x128xf32>
      %548 = vector.shape_cast %545 : vector<8x128xf32> to vector<1x8x128xf32>
      tpu.vector_store %arg15[%c0_177, %c0_178, %c0_179], %548 {strides = array<i32>} : memref<1x8x128xf32, #tpu.memory_space<vmem>>, vector<1x8x128xf32>,
    } else {
    }
    return
  }
  func.func @transform_0(%arg0: i32, %arg1: i32) -> (i32, i32, i32) {
    %c0_i32 = arith.constant 0 : i32
    %c0_i32_0 = arith.constant 0 : i32
    return %arg1, %arg0, %c0_i32 : i32, i32, i32
  }
  func.func @transform_1(%arg0: i32, %arg1: i32) -> (i32, i32, i32) {
    %c0_i32 = arith.constant 0 : i32
    %c0_i32_0 = arith.constant 0 : i32
    %c0_i32_1 = arith.constant 0 : i32
    return %c0_i32, %arg0, %c0_i32_0 : i32, i32, i32
  }
  func.func @transform_2(%arg0: i32, %arg1: i32) -> (i32, i32) {
    %c0_i32 = arith.constant 0 : i32
    %c0_i32_0 = arith.constant 0 : i32
    %c0_i32_1 = arith.constant 0 : i32
    return %c0_i32, %c0_i32_0 : i32, i32
  }
  func.func @transform_3(%arg0: i32, %arg1: i32) -> (i32, i32) {
    %c0_i32 = arith.constant 0 : i32
    %c0_i32_0 = arith.constant 0 : i32
    %c0_i32_1 = arith.constant 0 : i32
    return %c0_i32, %c0_i32_0 : i32, i32
  }
  func.func @transform_4(%arg0: i32, %arg1: i32) -> (i32, i32) {
    %c0_i32 = arith.constant 0 : i32
    %c0_i32_0 = arith.constant 0 : i32
    %c0_i32_1 = arith.constant 0 : i32
    return %c0_i32, %c0_i32_0 : i32, i32
  }
  func.func @transform_5(%arg0: i32, %arg1: i32) -> (i32, i32) {
    %c0_i32 = arith.constant 0 : i32
    %c0_i32_0 = arith.constant 0 : i32
    %c0_i32_1 = arith.constant 0 : i32
    return %c0_i32, %c0_i32_0 : i32, i32
  }
  func.func @transform_6(%arg0: i32, %arg1: i32) -> (i32, i32) {
    %c0_i32 = arith.constant 0 : i32
    %c0_i32_0 = arith.constant 0 : i32
    %c0_i32_1 = arith.constant 0 : i32
    return %c0_i32, %c0_i32_0 : i32, i32
  }
  func.func @transform_7(%arg0: i32, %arg1: i32) -> (i32, i32) {
    %c0_i32 = arith.constant 0 : i32
    %c0_i32_0 = arith.constant 0 : i32
    %c0_i32_1 = arith.constant 0 : i32
    return %c0_i32, %c0_i32_0 : i32, i32
  }
  func.func @transform_8(%arg0: i32, %arg1: i32) -> (i32, i32) {
    %c0_i32 = arith.constant 0 : i32
    %c0_i32_0 = arith.constant 0 : i32
    %c0_i32_1 = arith.constant 0 : i32
    return %c0_i32, %c0_i32_0 : i32, i32
  }
  func.func @transform_9(%arg0: i32, %arg1: i32) -> (i32, i32) {
    %c0_i32 = arith.constant 0 : i32
    %c0_i32_0 = arith.constant 0 : i32
    %c0_i32_1 = arith.constant 0 : i32
    return %c0_i32, %c0_i32_0 : i32, i32
  }
  func.func @transform_10(%arg0: i32, %arg1: i32) -> (i32, i32) {
    %c0_i32 = arith.constant 0 : i32
    %c0_i32_0 = arith.constant 0 : i32
    %c0_i32_1 = arith.constant 0 : i32
    return %c0_i32, %c0_i32_0 : i32, i32
  }
  func.func @transform_11(%arg0: i32, %arg1: i32) -> (i32, i32) {
    %c0_i32 = arith.constant 0 : i32
    %c0_i32_0 = arith.constant 0 : i32
    %c0_i32_1 = arith.constant 0 : i32
    return %c0_i32, %c0_i32_0 : i32, i32
  }
  func.func @transform_12(%arg0: i32, %arg1: i32) -> (i32, i32, i32) {
    %c0_i32 = arith.constant 0 : i32
    %c0_i32_0 = arith.constant 0 : i32
    return %arg1, %arg0, %c0_i32 : i32, i32, i32
  }
  func.func @transform_13(%arg0: i32, %arg1: i32) -> (i32, i32, i32) {
    %c0_i32 = arith.constant 0 : i32
    %c0_i32_0 = arith.constant 0 : i32
    %c0_i32_1 = arith.constant 0 : i32
    return %c0_i32, %arg0, %c0_i32_0 : i32, i32, i32
  }
}

</mosaic_0001>

<bundles_post_ra>
// kernel: rnn_layer_forward.1
= control target key start
LH: loop header
LB: loop body
LE: loop exit
PB: predicated region body
PF: predicated region fallthrough
CT: control target
= control target key end

     0   :  { %s8653_s0 = inlined_call_operand.hbm [shape: f32[8,16,64], index: 0, kind: input, shape index: {}]   ;;  %s8654_s1 = inlined_call_operand.hbm [shape: f32[2,16,128], index: 1, kind: input, shape index: {}]   ;;  %s8655_s2 = inlined_call_operand.hbm [shape: f32[64,384], index: 2, kind: input, shape index: {}]   ;;  %s8656_s3 = inlined_call_operand.hbm [shape: f32[128,384], index: 3, kind: input, shape index: {}]   ;;  %s8657_s4 = inlined_call_operand.vmem [shape: f32[1,384], index: 4, kind: input, shape index: {}]   ;;  %s8658_s5 = inlined_call_operand.vmem [shape: f32[1,384], index: 5, kind: input, shape index: {}]   ;;  %s8659_s6 = inlined_call_operand.hbm [shape: f32[128,384], index: 6, kind: input, shape index: {}]   ;;  %s8660_s7 = inlined_call_operand.hbm [shape: f32[128,384], index: 7, kind: input, shape index: {}]   ;;  %s8661_s8 = inlined_call_operand.vmem [shape: f32[1,384], index: 8, kind: input, shape index: {}]   ;;  %s8662_s9 = inlined_call_operand.vmem [shape: f32[1,384], index: 9, kind: input, shape index: {}]   ;;  %s8663_s10 = inlined_call_operand.vmem [shape: f32[1,128], index: 10, kind: input, shape index: {}]   ;;  %s8664_s11 = inlined_call_operand.hbm [shape: f32[1,128], index: 11, kind: input, shape index: {}]   ;;  %s8665_s12 = inlined_call_operand.hbm [shape: f32[8,16,128], index: 12, kind: output, shape index: {0}]   ;;  %s8666_s13 = inlined_call_operand.hbm [shape: f32[1,16,128], index: 13, kind: output, shape index: {1}]  }
   0x1   :  { %8675 = sst [smem:[#allocation30_spill]] %s8653_s0 }
   0x2   :  { %8676 = sst [smem:[#allocation31_spill]] %s8655_s2 }
   0x3   :  { %8677 = sst [smem:[#allocation32_spill]] %s8656_s3 }
   0x4   :  { %8678 = sst [smem:[#allocation33_spill]] %s8658_s5 }
   0x5   :  { %8679 = sst [smem:[#allocation34_spill]] %s8659_s6 }
   0x6   :  { %8680 = sst [smem:[#allocation35_spill]] %s8660_s7 }
   0x7   :  { %8681 = sst [smem:[#allocation36_spill]] %s8661_s8 }
   0x8   :  { %8682 = sst [smem:[#allocation37_spill]] %s8662_s9 }
   0x9   :  { %8683 = sst [smem:[#allocation38_spill]] %s8663_s10 }
   0xa   :  { %8684 = sst [smem:[#allocation39_spill]] %s8665_s12 }
   0xb   :  { %8685 = sst [smem:[#allocation40_spill]] %s8666_s13 }
   0xc   :  { %19 = vsyncpa [#allocation6], 0 }
   0xd   :  { %21 = vsyncpa [#allocation6 + $0x1], 0 }
   0xe   :  { %22 = vsyncpa [#allocation9], 0 }
   0xf   :  { %24 = vsyncpa [#allocation9 + $0x1], 0 }
  0x10   :  { %25 = vsyncpa [#allocation12], 0 }
  0x11   :  { %26 = vsyncpa [#allocation15], 0 }
  0x12   :  { %27 = vsyncpa [#allocation7], 0 }
  0x13   :  { %29 = vsyncpa [#allocation7 + $0x1], 0 }
  0x14   :  { %30 = vsyncpa [#allocation19], 0 }
  0x15   :  { %32 = vsyncpa [#allocation19 + $0x1], 0  ;;  %s7233_s25 = smov 0   ;;  %s7235_s26 = smov 0  }
  0x16   :  { %s7237_s27 = smov 0   ;;  %s7239_s28 = smov 0  }
  0x17   :  { %s7241_s29 = smov 0   ;;  %s7243_s30 = smov 0  }
  0x18 LB: > { %8686 = sst [smem:[#allocation27_spill]] %s7121_s25  ;;  %s7264_s14 = sadd.s32 4294967295, %s7141_s30   ;;  %s7141_s30 = sphi %s7243_s30, %s38_s30   ;;  %s7137_s29 = sphi %s7241_s29, %s8725_s29   ;;  %s7133_s28 = sphi %s7239_s28, %s8724_s28   ;;  %s7129_s27 = sphi %s7237_s27, %s8723_s27   ;;  %s7125_s26 = sphi %s7235_s26, %s8722_s26   ;;  %s7121_s25 = sphi %s7233_s25, %s8721_s25  }
  0x19   : > { %8687 = sst [smem:[#allocation28_spill]] %s7133_s28  ;;  %s4391_s15 = sadd.s32 4294967294, %s7141_s30  }
  0x1a   : > { %p72_p0 = scmp.ne.s32.totalorder %s7125_s26, %s7121_s25  ;;  %p8672_p1 = scmp.eq.s32.totalorder %s7264_s14, 0 }
  0x1b   : > { %p340_p3 = scmp.eq.s32.totalorder %s4391_s15, 1  ;;  %p4392_p5 = scmp.ge.s32.totalorder %s7141_s30, 1 }
  0x1c   : > { %p7273_p4 = por %p8672_p1, %p72_p0  ;;  %p373_p7 = scmp.lt.s32.totalorder %s7141_s30, 3 }
  0x1d   : > { %p7278_p6 = por %p340_p3, %p72_p0  ;;  %s7143_s19 = smov [#allocation10]  }
  0x1e   : > { %s8688_s16 = scalar_select %p7273_p4, 1, 0 }
  0x1f   : > { %s8689_s17 = scalar_select %p7278_p6, 1, 0 }
  0x20   : > { %p7283_p8 = pnand %p4392_p5, %p373_p7  ;;  %s385_s20 = sshll.u32 %s7143_s19, 4  ;;  %s7287_s20 = int_to_ptr.vmem [resolvable:$true] %s385_s20 }
  0x21   : > { %8690 = sst [smem:[#allocation29_spill]] %s8689_s17  ;;  %s7144_s22 = smov [#allocation11]  }
  0x22   : > { %s8691_s18 = scalar_select %p7283_p8, 1, 0 }
  0x23   : > { %p6529_p9 = pneg %p7283_p8  ;;  %s398_s23 = sshll.u32 %s7144_s22, 4  ;;  %s7298_s23 = int_to_ptr.vmem [resolvable:$true] %s398_s23 }
  0x24   : > { %s7145_s24 = smov [#allocation14]   ;;  %s8693_s2 = sld [smem:[#allocation31_spill]] }
  0x25   : > { %p7294_p11 = pnand %p6529_p9, %p8672_p1  ;;  %s7300_s15 = sshll.u32 %s7145_s24, 4  ;;  %s431_s15 = int_to_ptr.vmem [resolvable:$true] %s7300_s15 }
  0x27   : > { %p7310_p13 = pneg %p7294_p11 }
  0x2a   : > { %s6811_s25 = scalar_lea.hbm %s8693_s2, 3072 }
  0x2b   : > { %p6812_p12 = scmp.ne.s32.totalorder %s8693_s2, %s6811_s25  ;;  %p6818_p5 = scmp.lt.u32.totalorder %s6811_s25, %s8693_s2 }
  0x2d   : > { %p6814_p0 = pnand %p7310_p13, %p6812_p12 }
  0x2f   : > { %p6815_p3 = pneg %p6814_p0 }
  0x31   : > { %p6820_p7 = pnand %p6818_p5, %p6815_p3 }
  0x33   : > { %6823 = shalt.err (!%p6820_p7)
}
  0x34   : > { %s6824_s12 = scalar_lea.vmem %s7287_s20, 3072  ;;  %p6832_p2 = scmp.lt.s32.totalorder %s7287_s20, %s7287_s20 }
  0x35   : > { %p6825_p9 = scmp.ne.s32.totalorder %s7287_s20, %s6824_s12  ;;  %p6833_p6 = scmp.lt.s32.totalorder %s6824_s12, %s6824_s12 }
  0x37   : > { %p6827_p10 = pnand %p6825_p9, %p7310_p13  ;;  %p6834_p12 = por %p6833_p6, %p6832_p2 }
  0x39   : > { %p6828_p1 = pneg %p6827_p10 }
  0x3b   : > { %p6835_p0 = pnand %p6834_p12, %p6828_p1 }
  0x3d   : > { %6838 = shalt.err (!%p6835_p0)
}
  0x3e   : > { %s7146_s13 = smov 384   ;;  %s7147_s25 = smov 24  }
  0x3f   : > { %6532 = dma.hbm_to_vmem [thread:$0]  (!%p7294_p11), %s8693_s2, 3072, %s7287_s20, [#allocation9], %s7146_s13, %s7146_s13, %s7147_s25  }
  0x40   : > { %s8695_s3 = sld [smem:[#allocation32_spill]] }
  0x46   : > { %s6839_s12 = scalar_lea.hbm %s8695_s3, 6144 }
  0x47   : > { %p6840_p1 = scmp.ne.s32.totalorder %s8695_s3, %s6839_s12  ;;  %p6846_p10 = scmp.lt.u32.totalorder %s6839_s12, %s8695_s3 }
  0x49   : > { %p6842_p2 = pnand %p6840_p1, %p7310_p13 }
  0x4b   : > { %p6843_p6 = pneg %p6842_p2 }
  0x4d   : > { %p6848_p3 = pnand %p6846_p10, %p6843_p6 }
  0x4f   : > { %6851 = shalt.err (!%p6848_p3)
}
  0x50   : > { %s6852_s20 = scalar_lea.vmem %s7298_s23, 6144  ;;  %p6860_p12 = scmp.lt.s32.totalorder %s7298_s23, %s7298_s23 }
  0x51   : > { %p6853_p5 = scmp.ne.s32.totalorder %s7298_s23, %s6852_s20  ;;  %p6861_p0 = scmp.lt.s32.totalorder %s6852_s20, %s6852_s20 }
  0x53   : > { %p6855_p7 = pnand %p6853_p5, %p7310_p13  ;;  %p6862_p1 = por %p6861_p0, %p6860_p12 }
  0x55   : > { %p6856_p9 = pneg %p6855_p7 }
  0x57   : > { %p6863_p2 = pnand %p6862_p1, %p6856_p9 }
  0x59   : > { %6866 = shalt.err (!%p6863_p2)
}
  0x5a   : > { %6535 = dma.hbm_to_vmem [thread:$0]  (!%p7294_p11), %s8695_s3, 6144, %s7298_s23, [#allocation12], %s7146_s13, %s7146_s13, %s7147_s25  }
  0x5b   : > { %s8696_s7 = sld [smem:[#allocation35_spill]] }
  0x61   : > { %s6867_s17 = scalar_lea.hbm %s8696_s7, 6144 }
  0x62   : > { %p6868_p6 = scmp.ne.s32.totalorder %s8696_s7, %s6867_s17  ;;  %p6874_p5 = scmp.lt.u32.totalorder %s6867_s17, %s8696_s7 }
  0x64   : > { %p6870_p10 = pnand %p6868_p6, %p7310_p13 }
  0x66   : > { %p6871_p3 = pneg %p6870_p10 }
  0x68   : > { %p6876_p7 = pnand %p6874_p5, %p6871_p3 }
  0x6a   : > { %6879 = shalt.err (!%p6876_p7)
}
  0x6b   : > { %s6880_s20 = scalar_lea.vmem %s431_s15, 6144  ;;  %p6888_p1 = scmp.lt.s32.totalorder %s431_s15, %s431_s15 }
  0x6c   : > { %p6881_p9 = scmp.ne.s32.totalorder %s431_s15, %s6880_s20  ;;  %p6889_p2 = scmp.lt.s32.totalorder %s6880_s20, %s6880_s20 }
  0x6e   : > { %p6883_p12 = pnand %p6881_p9, %p7310_p13  ;;  %p6890_p4 = por %p6889_p2, %p6888_p1 }
  0x70   : > { %p6884_p0 = pneg %p6883_p12 }
  0x72   : > { %p6891_p8 = pnand %p6890_p4, %p6884_p0 }
  0x74   : > { %6894 = shalt.err (!%p6891_p8)
}
  0x75   : > { %6541 = dma.hbm_to_vmem [thread:$0]  (!%p7294_p11), %s8696_s7, 6144, %s431_s15, [#allocation15], %s7146_s13, %s7146_s13, %s7147_s25  }
  0x76   : > { %s7148_s8 = smov [#allocation13]   ;;  %s7149_s10 = smov [#allocation16]  }
  0x77   : > { %s417_s9 = sshll.u32 %s7148_s8, 4  ;;  %s453_s17 = sshll.u32 %s7149_s10, 4  ;;  %s418_s9 = int_to_ptr.vmem [resolvable:$true] %s417_s9  ;;  %s454_s17 = int_to_ptr.vmem [resolvable:$true] %s453_s17 }
  0x78   : > { %s8697_s6 = sld [smem:[#allocation34_spill]] }
  0x7e   : > { %s6895_s24 = scalar_lea.hbm %s8697_s6, 6144 }
  0x7f   : > { %p6896_p4 = scmp.ne.s32.totalorder %s8697_s6, %s6895_s24  ;;  %p6902_p10 = scmp.lt.u32.totalorder %s6895_s24, %s8697_s6 }
  0x81   : > { %p6898_p8 = pnand %p6896_p4, %p7310_p13 }
  0x83   : > { %p6899_p6 = pneg %p6898_p8 }
  0x85   : > { %p6904_p3 = pnand %p6902_p10, %p6899_p6 }
  0x87   : > { %6907 = shalt.err (!%p6904_p3)
}
  0x88   : > { %s6908_s15 = scalar_lea.vmem %s418_s9, 6144  ;;  %p6916_p12 = scmp.lt.s32.totalorder %s418_s9, %s418_s9 }
  0x89   : > { %p6909_p5 = scmp.ne.s32.totalorder %s418_s9, %s6908_s15  ;;  %p6917_p0 = scmp.lt.s32.totalorder %s6908_s15, %s6908_s15 }
  0x8b   : > { %p6911_p7 = pnand %p6909_p5, %p7310_p13  ;;  %p6918_p1 = por %p6917_p0, %p6916_p12 }
  0x8d   : > { %p6912_p9 = pneg %p6911_p7 }
  0x8f   : > { %p6919_p2 = pnand %p6918_p1, %p6912_p9 }
  0x91   : > { %6922 = shalt.err (!%p6919_p2)
}
  0x92   : > { %6538 = dma.hbm_to_vmem [thread:$0]  (!%p7294_p11), %s8697_s6, 6144, %s418_s9, [#allocation12], %s7146_s13, %s7146_s13, %s7147_s25  }
  0x93   : > { %s6923_s19 = scalar_lea.hbm %s8664_s11, 16 }
  0x94   : > { %p6924_p4 = scmp.ne.s32.totalorder %s8664_s11, %s6923_s19  ;;  %p6930_p10 = scmp.lt.u32.totalorder %s6923_s19, %s8664_s11 }
  0x96   : > { %p6926_p8 = pnand %p6924_p4, %p7310_p13 }
  0x98   : > { %p6927_p6 = pneg %p6926_p8 }
  0x9a   : > { %p6932_p3 = pnand %p6930_p10, %p6927_p6 }
  0x9c   : > { %6935 = shalt.err (!%p6932_p3)
}
  0x9d   : > { %s6936_s23 = scalar_lea.vmem %s454_s17, 16  ;;  %s6943_s13 = scalar_lea.vmem %s454_s17, 32 }
  0x9e   : > { %p6937_p5 = scmp.ne.s32.totalorder %s454_s17, %s6936_s23  ;;  %p6944_p12 = scmp.lt.s32.totalorder %s454_s17, %s454_s17 }
  0x9f   : > { %p6945_p0 = scmp.lt.s32.totalorder %s6943_s13, %s6936_s23 }
  0xa0   : > { %p6939_p7 = pnand %p6937_p5, %p7310_p13 }
  0xa1   : > { %p6946_p1 = por %p6945_p0, %p6944_p12 }
  0xa2   : > { %p6940_p9 = pneg %p6939_p7 }
  0xa4   : > { %p6947_p2 = pnand %p6946_p1, %p6940_p9 }
  0xa6   : > { %6950 = shalt.err (!%p6947_p2)
}
  0xa7   : > { %6544 = dma.hbm_to_vmem [thread:$0]  (!%p7294_p11), %s8664_s11, 16, %s454_s17, [#allocation15]  }
  0xa8   : > { %s59_s28 = sadd.s32 1, %s7129_s27  ;;  %s50_s15 = sadd.s32 1, %s7137_s29 }
  0xa9   : > { %p66_p13 = scmp.ne.s32.totalorder %s7129_s27, %s7125_s26  ;;  %p52_p4 = scmp.ge.s32.totalorder %s50_s15, 2 }
  0xaa   : > { %p67_p8 = scmp.eq.s32.totalorder %s7141_s30, 0  ;;  %p8698_p6 = scmp.eq.s32.totalorder %s7264_s14, 1 }
  0xab   : > { %p6564_p3 = scmp.lt.s32.totalorder %s7141_s30, 2  ;;  %s8727_s15 = smov (%p52_p4, %s50_s15), 0 }
  0xac   : > { %p7428_p10 = por %p8698_p6, %p66_p13  ;;  %p68_p5 = por %p67_p8, %p66_p13 }
  0xad   : > { %s7436_s2 = sand.u32 1, %s7129_s27   ;;  %s55_s17 = ssub.s32 %s7137_s29, %s8727_s15 }
  0xae   : > { %p57_p11 = scmp.eq.s32.totalorder %s55_s17, 0  ;;  %s4399_s5 = sshll.u32 %s7436_s2, 6 }
  0xaf   : > { %s4400_s8 = sshll.u32 %s7137_s29, 7  ;;  %s8700_s0 = sld [smem:[#allocation30_spill]] }
  0xb0   : > { %s7443_s10 = scalar_select %p57_p11, %s7129_s27, %s59_s28  }
  0xb1   : > { %s468_s12 = scalar_lea.vmem [#allocation5], %s4399_s5  ;;  %p7456_p7 = pnand %p6564_p3, %p68_p5 }
  0xb2   : > { %s477_s20 = sshll.u32 %s468_s12, 4  ;;  %s465_s13 = scalar_lea.sflag [#allocation6], %s7436_s2  ;;  %s7452_s20 = int_to_ptr.vmem [resolvable:$true] %s477_s20 }
  0xb3   : > { %p6953_p12 = pneg %p7456_p7 }
  0xb5   : > { %s7450_s24 = scalar_lea.hbm %s8700_s0, %s4400_s8  ;;  %s6956_s17 = scalar_lea.hbm %s8700_s0, 2048 }
  0xb6   : > { %s6951_s25 = scalar_lea.hbm %s7450_s24, 1024  ;;  %p6957_p2 = scmp.lt.u32.totalorder %s7450_s24, %s8700_s0 }
  0xb7   : > { %p6952_p9 = scmp.ne.s32.totalorder %s7450_s24, %s6951_s25  ;;  %p6958_p13 = scmp.lt.u32.totalorder %s6956_s17, %s6951_s25 }
  0xb8   : > { %p6960_p8 = scmp.lt.u32.totalorder %s6951_s25, %s7450_s24 }
  0xb9   : > { %p6954_p0 = pnand %p6953_p12, %p6952_p9  ;;  %p6959_p4 = por %p6958_p13, %p6957_p2 }
  0xbb   : > { %p6955_p1 = pneg %p6954_p0  ;;  %p6961_p6 = por %p6960_p8, %p6959_p4 }
  0xbd   : > { %p6962_p3 = pnand %p6961_p6, %p6955_p1 }
  0xbf   : > { %6965 = shalt.err (!%p6962_p3)
}
  0xc0   : > { %s6966_s22 = scalar_lea.vmem %s7452_s20, 1024  ;;  %s7150_s12 = smov [#allocation5]  }
  0xc1   : > { %p6967_p5 = scmp.ne.s32.totalorder %s7452_s20, %s6966_s22  ;;  %s6971_s9 = sshll.u32 %s7150_s12, 4  ;;  %s6972_s9 = int_to_ptr.vmem [resolvable:$false] %s6971_s9 }
  0xc2   : > { %s6973_s28 = scalar_lea.vmem %s6972_s9, 2048  ;;  %p6974_p0 = scmp.lt.s32.totalorder %s7452_s20, %s6972_s9 }
  0xc3   : > { %p6969_p11 = pnand %p6967_p5, %p6953_p12  ;;  %p6975_p2 = scmp.lt.s32.totalorder %s6973_s28, %s6966_s22 }
  0xc5   : > { %p6970_p9 = pneg %p6969_p11  ;;  %p6976_p13 = por %p6975_p2, %p6974_p0 }
  0xc7   : > { %p6977_p4 = pnand %p6976_p13, %p6970_p9 }
  0xc9   : > { %6980 = shalt.err (!%p6977_p4)
}
  0xca   : > { %s7151_s25 = smov 256   ;;  %s7152_s17 = smov 128  }
  0xcb   : > { %s7153_s5 = smov 8   ;;  %s487_s19 = sand.u32 1, %s7141_s30  }
  0xcc   : > { %6548 = dma.hbm_to_vmem [thread:$0]  (!%p7456_p7), %s7450_s24, 1024, %s7452_s20, %s465_s13, %s7151_s25, %s7152_s17, %s7153_s5  }
  0xcd   : > { %s7497_s9 = scalar_lea.hbm %s8654_s1, %s4400_s8  ;;  %s4401_s28 = sshll.u32 %s7436_s2, 4 }
  0xce   : > { %s491_s0 = scalar_lea.vmem [#allocation8], %s4401_s28  ;;  %s7502_s6 = scalar_lea.sflag [#allocation9], %s487_s19 }
  0xcf   : > { %s497_s3 = sshll.u32 %s491_s0, 4  ;;  %s6981_s7 = scalar_lea.hbm %s7497_s9, 256  ;;  %s7500_s3 = int_to_ptr.vmem [resolvable:$true] %s497_s3 }
  0xd0   : > { %p6982_p1 = scmp.ne.s32.totalorder %s7497_s9, %s6981_s7  ;;  %s6986_s20 = scalar_lea.hbm %s8654_s1, 512 }
  0xd1   : > { %p6987_p3 = scmp.lt.u32.totalorder %s7497_s9, %s8654_s1  ;;  %p6988_p5 = scmp.lt.u32.totalorder %s6986_s20, %s6981_s7 }
  0xd2   : > { %p6984_p8 = pnand %p6982_p1, %p6953_p12  ;;  %p6990_p9 = scmp.lt.u32.totalorder %s6981_s7, %s7497_s9 }
  0xd3   : > { %p6989_p11 = por %p6988_p5, %p6987_p3 }
  0xd4   : > { %p6985_p6 = pneg %p6984_p8 }
  0xd5   : > { %p6991_p0 = por %p6990_p9, %p6989_p11 }
  0xd7   : > { %p6992_p2 = pnand %p6991_p0, %p6985_p6 }
  0xd9   : > { %6995 = shalt.err (!%p6992_p2)
}
  0xda   : > { %s6996_s0 = scalar_lea.vmem %s7500_s3, 256  ;;  %s7154_s2 = smov [#allocation8]  }
  0xdb   : > { %p6997_p13 = scmp.ne.s32.totalorder %s7500_s3, %s6996_s0  ;;  %s7001_s19 = sshll.u32 %s7154_s2, 4  ;;  %s7002_s19 = int_to_ptr.vmem [resolvable:$false] %s7001_s19 }
  0xdc   : > { %s7003_s12 = scalar_lea.vmem %s7002_s19, 512  ;;  %p7004_p8 = scmp.lt.s32.totalorder %s7500_s3, %s7002_s19 }
  0xdd   : > { %p6999_p4 = pnand %p6997_p13, %p6953_p12  ;;  %p7005_p3 = scmp.lt.s32.totalorder %s7003_s12, %s6996_s0 }
  0xdf   : > { %p7000_p1 = pneg %p6999_p4  ;;  %p7006_p5 = por %p7005_p3, %p7004_p8 }
  0xe1   : > { %p7007_p11 = pnand %p7006_p5, %p7000_p1 }
  0xe3   : > { %7010 = shalt.err (!%p7007_p11)
}
  0xe4   : > { %6551 = dma.hbm_to_vmem [thread:$0]  (!%p7456_p7), %s7497_s9, 256, %s7500_s3, %s7502_s6, %s7151_s25, %s7152_s17, %s7153_s5  }
  0xe5   : > { %p8702_p12 = scmp.ne.s32.totalorder %s8691_s18, 0 }
  0xe6   : > { %s7534_s7 = sand.u32 (!%p8702_p12), 1, %s7125_s26   ;;  %p8703_p6 = scmp.ne.s32.totalorder (!%p8702_p12), %s8688_s16, 0 }
  0xe7   : > { %509 = sbr.rel (%p8702_p12) target bundleno = 4777 (0x12a9), region = 68  ;;  %s4404_s28 = sshll.u32 (!%p8702_p12), %s7534_s7, 6 }
  0xe8   : > { %s512_s24 = scalar_lea.sflag (!%p8702_p12), [#allocation6], %s7534_s7  ;;  %s7540_s23 = scalar_lea.vmem (!%p8702_p12), [#allocation5], %s4404_s28 }
  0xee   : > { %7092 = dma.done.wait (%p8703_p6), %s512_s24, 1024  }
  0xef   : > { %7094 = vsyncadd (%p8703_p6), %s512_s24, 4294966272  ;;  %s520_s3 = sand.u32 1, %s7264_s14   ;;  %s4405_s6 = sshll.u32 %s7534_s7, 4 }
  0xf0   : > { %s521_s18 = scalar_lea.sflag [#allocation9], %s520_s3  ;;  %s7548_s25 = scalar_lea.vmem [#allocation8], %s4405_s6 }
  0xf1   : > { %7096 = dma.done.wait (%p8703_p6), %s521_s18, 256  }
  0xf2   : > { %7098 = vsyncadd (%p8703_p6), %s521_s18, 4294967040  ;;  %p8704_p7 = scmp.eq.s32.totalorder %s7264_s14, 0 }
  0xf4   : > { %7100 = dma.done.wait (%p8704_p7), [#allocation9], 3072   ;;  %p8705_p9 = pmov %p8704_p7 }
  0xf5   : > { %p8706_p0 = pmov %p8704_p7 }
  0xf6   : > { %7102 = vsyncadd (%p8705_p9), [#allocation9], 4294964224 }
  0xf7   : > { %7104 = dma.done.wait (%p8706_p0), [#allocation12], 12288   ;;  %p8707_p2 = pmov %p8706_p0 }
  0xf8   : > { %p8708_p13 = pmov %p8706_p0 }
  0xf9   : > { %7106 = vsyncadd (%p8707_p2), [#allocation12], 4294955008 }
  0xfa   : > { %7108 = dma.done.wait (%p8708_p13), [#allocation15], 6160   ;;  %p8709_p4 = pmov %p8706_p0 }
  0xfb   : > { %v7155_v0 = vmov 0.0   ;;  %v616_v1 = vld [vmem:[#allocation10 + $0x8] sm:$0xff]  ;;  %v619_v2 = vld [vmem:[#allocation10 + $0x20] sm:$0xff]  ;;  %v618_v5 = vld [vmem:[#allocation10 + $0x18] sm:$0xff]  ;;  %vm705_vm0 = vcmask 523264   ;;  %vm7157_vm1 = vmmov 0  }
  0xfc   : > { %7110 = vsyncadd (%p8709_p4), [#allocation15], 4294961136  ;;  %794 = vmatprep.mubr.f32.mxu0 %v7155_v0  ;;  %v615_v3 = vld [vmem:[#allocation10] sm:$0xff]  ;;  %v5413_v4 = vpack.c.bf16 %v619_v2, %v616_v1  ;;  %v622_v6 = vld [vmem:[#allocation10 + $0x38] sm:$0xff]  ;;  %s8710_s9 = sld [smem:[#allocation33_spill]]  ;;  %s4412_s8 = sshll.u32 %s7534_s7, 3 }
  0xfd   : > { %v625_v7 = vld [vmem:[#allocation10 + $0x50] sm:$0xff]  ;;  %v5415_v8 = vpack.c.bf16 %v618_v5, %v615_v3  ;;  %v624_v11 = vld [vmem:[#allocation10 + $0x48] sm:$0xff]  ;;  %v631_v13 = vld [vmem:[#allocation10 + $0x80] sm:$0xff]  ;;  %v7156_v5 = vmov 0.0|0.0   ;;  %s8153_s20 = scalar_lea.vmem [#allocation18], %s4412_s8  ;;  %s8711_s0 = sld [smem:[#allocation37_spill]] }
  0xfe   : > { %v5417_v9 = vpack.c.bf16 %v625_v7, %v622_v6  ;;  %v621_v10 = vld [vmem:[#allocation10 + $0x30] sm:$0xff]  ;;  %v628_v12 = vld [vmem:[#allocation10 + $0x68] sm:$0xff]  ;;  %5414 = vmatprep.subr.bf16.mxu0 %v5413_v4  ;;  %v627_v16 = vld [vmem:[#allocation10 + $0x60] sm:$0xff]  ;;  %s8712_s12 = sld [smem:[#allocation36_spill]]  ;;  %s8713_s3 = sld [smem:[#allocation38_spill]] }
  0xff   : > { %5416 = vmatpush1.bf16.msra.mxu0 %v5415_v8  ;;  %v5419_v14 = vpack.c.bf16 %v624_v11, %v621_v10  ;;  %v5421_v15 = vpack.c.bf16 %v631_v13, %v628_v12  ;;  %v630_v17 = vld [vmem:[#allocation10 + $0x78] sm:$0xff]  ;;  %v607_v18 = vld [vmem:[%s7540_s23] sm:$0xff]  ;;  %v637_v20 = vld [vmem:[#allocation10 + $0xb0] sm:$0xff]  ;;  %s8529_s6 = scalar_lea.vmem [#allocation17], %s4404_s28  ;;  %s8714_s28 = sld [smem:[#allocation28_spill]] }
 0x100   : > { %5418 = vmatprep.subr.bf16.mxu0 %v5417_v9  ;;  %v634_v19 = vld [vmem:[#allocation10 + $0x98] sm:$0xff]  ;;  %4797 = vmatprep.mubr.msk.f32.mxu1 %vm705_vm0, %v607_v18  ;;  %v5423_v21 = vpack.c.bf16 %v630_v17, %v627_v16  ;;  %v633_v23 = vld [vmem:[#allocation10 + $0x90] sm:$0xff]  ;;  %v636_v24 = vld [vmem:[#allocation10 + $0xa8] sm:$0xff]  ;;  %s8715_s16 = sld [smem:[#allocation40_spill]]  ;;  %s4206_s5 = sshll.u32 %s8153_s20, 4  ;;  %s4207_s5 = int_to_ptr.vmem [resolvable:$true] %s4206_s5 }
 0x101   : > { %v5425_v22 = vpack.c.bf16 %v637_v20, %v634_v19  ;;  %v640_v25 = vld [vmem:[#allocation11 + $0x8] sm:$0xff]  ;;  %v643_v26 = vld [vmem:[#allocation11 + $0x20] sm:$0xff]  ;;  %v617_v27 = vld [vmem:[#allocation10 + $0x10] sm:$0xff]  ;;  %v5427_v30 = vpack.c.bf16 %v636_v24, %v633_v23  ;;  %s7011_s8 = scalar_lea.vmem %s4207_s5, 128  ;;  %s7158_s13 = smov [#allocation18]  }
 0x102   : > { %v620_v28 = vld [vmem:[#allocation10 + $0x28] sm:$0xff]  ;;  %v623_v31 = vld [vmem:[#allocation10 + $0x40] sm:$0xff]  ;;  %v7569_v32 = vpack.c.bf16 %v643_v26, %v640_v25  ;;  %v642_v34 = vld [vmem:[#allocation11 + $0x18] sm:$0xff]  ;;  %p7012_p1 = scmp.ne.s32.totalorder %s4207_s5, %s7011_s8  ;;  %s7015_s22 = sshll.u32 %s7158_s13, 4  ;;  %s7016_s22 = int_to_ptr.vmem [resolvable:$false] %s7015_s22 }
 0x103   : > { %5420 = vmatpush1.bf16.msra.mxu0 %v5419_v14  ;;  %v5429_v29 = vpack.c.bf16 %v620_v28, %v617_v27  ;;  %v639_v33 = vld [vmem:[#allocation11] sm:$0xff]  ;;  %v626_v35 = vld [vmem:[#allocation10 + $0x58] sm:$0xff]  ;;  %v649_v37 = vld [vmem:[#allocation11 + $0x50] sm:$0xff]  ;;  %p7018_p5 = scmp.lt.s32.totalorder %s4207_s5, %s7016_s22 }
 0x104   : > { %5422 = vmatprep.subr.bf16.mxu0 %v5421_v15  ;;  %v646_v36 = vld [vmem:[#allocation11 + $0x38] sm:$0xff]  ;;  %v5433_v38 = vpack.c.bf16 %v626_v35, %v623_v31  ;;  %v629_v39 = vld [vmem:[#allocation10 + $0x70] sm:$0xff]  ;;  %v632_v40 = vld [vmem:[#allocation10 + $0x88] sm:$0xff]  ;;  %v7571_v41 = vpack.c.bf16 %v642_v34, %v639_v33  ;;  %p7013_p8 = pnand %p7012_p1, %p7428_p10 }
 0x105   : > { %5430 = vmatprep.subr.bf16.mxu1 %v5429_v29  ;;  %v645_v42 = vld [vmem:[#allocation11 + $0x30] sm:$0xff]  ;;  %v5437_v43 = vpack.c.bf16 %v632_v40, %v629_v39  ;;  %v7574_v44 = vpack.c.bf16 %v649_v37, %v646_v36  ;;  %v648_v45 = vld [vmem:[#allocation11 + $0x48] sm:$0xff]  ;;  %v635_v46 = vld [vmem:[#allocation10 + $0xa0] sm:$0xff]  ;;  %s4465_s18 = sshll.u32 %s8714_s28, 7 }
 0x106   : > { %5432 = vmatpush3.bf16.msra.mxu1 %v5429_v29  ;;  %v638_v47 = vld [vmem:[#allocation10 + $0xb8] sm:$0xff]  ;;  %v652_v48 = vld [vmem:[#allocation11 + $0x68] sm:$0xff]  ;;  %v655_v49 = vld [vmem:[#allocation11 + $0x80] sm:$0xff]  ;;  %v7580_v52 = vpack.c.bf16 %v648_v45, %v645_v42  ;;  %s8571_s17 = scalar_lea.hbm %s8715_s16, %s4465_s18  ;;  %p7014_p3 = pneg %p7013_p8 }
 0x107   : > { %5424 = vmatpush1.bf16.msra.mxu0 %v5423_v21  ;;  %5434 = vmatprep.subr.bf16.mxu1 %v5433_v38  ;;  %v5441_v50 = vpack.c.bf16 %v638_v47, %v635_v46  ;;  %v608_v51 = vld [vmem:[%s7540_s23 + $0x8] sm:$0xff]  ;;  %v7583_v53 = vpack.c.bf16 %v655_v49, %v652_v48  ;;  %v651_v54 = vld [vmem:[#allocation11 + $0x60] sm:$0xff]  ;;  %v654_v55 = vld [vmem:[#allocation11 + $0x78] sm:$0xff] }
 0x108   : > { %5426 = vmatprep.subr.bf16.mxu0 %v5425_v22  ;;  %v658_v56 = vld [vmem:[#allocation11 + $0x98] sm:$0xff]  ;;  %v661_v57 = vld [vmem:[#allocation11 + $0xb0] sm:$0xff]  ;;  %v644_v59 = vld [vmem:[#allocation11 + $0x28] sm:$0xff]  ;;  %v7589_v61 = vpack.c.bf16 %v654_v55, %v651_v54 }
 0x109   : > { %v641_v58 = vld [vmem:[#allocation11 + $0x10] sm:$0xff]  ;;  %v7592_v62 = vpack.c.bf16 %v661_v57, %v658_v56  ;;  %v660_v1 = vld [vmem:[#allocation11 + $0xa8] sm:$0xff]  ;;  %v667_v3 = vld [vmem:[#allocation11 + $0xe0] sm:$0xff] }
 0x10a   : > { %5436 = vmatpush3.bf16.msra.mxu1 %v5433_v38  ;;  %v609_v60 = vld [vmem:[%s7540_s23 + $0x10] sm:$0xff]  ;;  %v664_v2 = vld [vmem:[#allocation11 + $0xc8] sm:$0xff]  ;;  %v7594_v4 = vpack.c.bf16 %v644_v59, %v641_v58  ;;  %v647_v6 = vld [vmem:[#allocation11 + $0x40] sm:$0xff] }
 0x10b   : > { %5428 = vmatpush1.bf16.msra.mxu0 %v5427_v30  ;;  %5438 = vmatprep.subr.bf16.mxu1 %v5437_v43  ;;  %v657_v63 = vld [vmem:[#allocation11 + $0x90] sm:$0xff]  ;;  %v650_v7 = vld [vmem:[#allocation11 + $0x58] sm:$0xff]  ;;  %v7604_v10 = vpack.c.bf16 %v667_v3, %v664_v2  ;;  %v663_v11 = vld [vmem:[#allocation11 + $0xc0] sm:$0xff] }
 0x10c   : > { %5446 = vmatprep.subr.bf16.mxu0 %v7569_v32  ;;  %v610_v8 = vld [vmem:[%s7540_s23 + $0x18] sm:$0xff]  ;;  %v7601_v9 = vpack.c.bf16 %v660_v1, %v657_v63  ;;  %v673_v14 = vld [vmem:[#allocation11 + $0x110] sm:$0xff]  ;;  %v7608_v15 = vpack.c.bf16 %v650_v7, %v647_v6  ;;  %v656_v17 = vld [vmem:[#allocation11 + $0x88] sm:$0xff]  ;;  %v690_v63 = vlaneseq }
 0x10d   : > { %v666_v12 = vld [vmem:[#allocation11 + $0xd8] sm:$0xff]  ;;  %v653_v16 = vld [vmem:[#allocation11 + $0x70] sm:$0xff]  ;;  %v672_v22 = vld [vmem:[#allocation11 + $0x108] sm:$0xff] }
 0x10e   : > { %4413 = vmatmul.mubr.msk.f32.vlgmr.msra.gmra.mrb[0].mxu0 %vm705_vm0, %v607_v18  ;;  %5440 = vmatpush3.bf16.msra.mxu1 %v5437_v43  ;;  %v670_v13 = vld [vmem:[#allocation11 + $0xf8] sm:$0xff]  ;;  %v611_v18 = vld [vmem:[%s7540_s23 + $0x20] sm:$0xff]  ;;  %v7616_v19 = vpack.c.bf16 %v666_v12, %v663_v11  ;;  %v669_v21 = vld [vmem:[#allocation11 + $0xf0] sm:$0xff]  ;;  %v7623_v25 = vpack.c.bf16 %v656_v17, %v653_v16  ;;  %v691_v1 = vshrl.u32 %v690_v63, 7 }
 0x10f   : > { %5448 = vmatpush1.bf16.msra.mxu0 %v7571_v41  ;;  %800 = vmatprep.mubr.f32.mxu0 %v7155_v0  ;;  %v7619_v20 = vpack.c.bf16 %v673_v14, %v670_v13  ;;  %v676_v23 = vld [vmem:[#allocation11 + $0x128] sm:$0xff]  ;;  %v679_v24 = vld [vmem:[#allocation11 + $0x140] sm:$0xff]  ;;  %v662_v27 = vld [vmem:[#allocation11 + $0xb8] sm:$0xff]  ;;  %v7631_v29 = vpack.c.bf16 %v672_v22, %v669_v21 }
 0x110   : > { %5450 = vmatprep.subr.bf16.mxu0 %v7574_v44  ;;  %5442 = vmatprep.subr.bf16.mxu1 %v5441_v50  ;;  %v659_v26 = vld [vmem:[#allocation11 + $0xa0] sm:$0xff]  ;;  %v612_v28 = vld [vmem:[%s7540_s23 + $0x28] sm:$0xff]  ;;  %v613_v30 = vld [vmem:[%s7540_s23 + $0x30] sm:$0xff]  ;;  %v7635_v31 = vpack.c.bf16 %v679_v24, %v676_v23  ;;  %v7723_v2 = vsub.s32 2, %v691_v1  ;;  %v7739_v23 = vsub.s32 0, %v691_v1 }
 0x111   : > { %v675_v33 = vld [vmem:[#allocation11 + $0x120] sm:$0xff]  ;;  %v678_v34 = vld [vmem:[#allocation11 + $0x138] sm:$0xff]  ;;  %v685_v36 = vld [vmem:[#allocation11 + $0x170] sm:$0xff]  ;;  %v7639_v37 = vpack.c.bf16 %v662_v27, %v659_v26 }
 0x112   : > { %4414 = vmatmul.mubr.msk.f32.gmra.mrb[2].mxu0 %vm705_vm0, %v608_v51  ;;  %5444 = vmatpush3.bf16.msra.mxu1 %v5441_v50  ;;  %v682_v35 = vld [vmem:[#allocation11 + $0x158] sm:$0xff]  ;;  %v665_v38 = vld [vmem:[#allocation11 + $0xd0] sm:$0xff]  ;;  %v668_v39 = vld [vmem:[#allocation11 + $0xe8] sm:$0xff]  ;;  %v7646_v40 = vpack.c.bf16 %v678_v34, %v675_v33 }
 0x113   : > { %5452 = vmatpush1.bf16.msra.mxu0 %v7580_v52  ;;  %806 = vmatprep.mubr.f32.mxu0 %v7155_v0  ;;  %v614_v42 = vld [vmem:[%s7540_s23 + $0x38] sm:$0xff]  ;;  %v7650_v43 = vpack.c.bf16 %v685_v36, %v682_v35  ;;  %v681_v45 = vld [vmem:[#allocation11 + $0x150] sm:$0xff]  ;;  %v684_v46 = vld [vmem:[#allocation11 + $0x168] sm:$0xff]  ;;  %v7654_v47 = vpack.c.bf16 %v668_v39, %v665_v38 }
 0x114   : > { %5454 = vmatprep.subr.bf16.mxu0 %v7583_v53  ;;  %5477 = vmatprep.subr.bf16.mxu1 %v7156_v5  ;;  %v671_v48 = vld [vmem:[#allocation11 + $0x100] sm:$0xff]  ;;  %v674_v49 = vld [vmem:[#allocation11 + $0x118] sm:$0xff]  ;;  %v7662_v50 = vpack.c.bf16 %v684_v46, %v681_v45  ;;  %v677_v54 = vld [vmem:[#allocation11 + $0x130] sm:$0xff] }
 0x115   : > { %4798 = vmatmul.mubr.msk.f32.vlgmr.msra.gmra.mrb[0].mxu1 %vm705_vm0, %v608_v51  ;;  %v7666_v51 = vpack.c.bf16 %v674_v49, %v671_v48  ;;  %v680_v55 = vld [vmem:[#allocation11 + $0x148] sm:$0xff]  ;;  %v7673_v56 = vld [vmem:[%s7548_s25] sm:$0xff]  ;;  %v686_v59 = vld [vmem:[#allocation11 + $0x178] sm:$0xff] }
 0x116   : > { %4415 = vmatmul.mubr.msk.f32.gmra.mrb[4].mxu0 %vm705_vm0, %v609_v60  ;;  %5479 = vmatpush3.bf16.msra.mxu1 %v7594_v4  ;;  %v7677_v57 = vpack.c.bf16 %v680_v55, %v677_v54  ;;  %v683_v58 = vld [vmem:[#allocation11 + $0x160] sm:$0xff] }
 0x117   : > { %5456 = vmatpush1.bf16.msra.mxu0 %v7589_v61  ;;  %812 = vmatprep.mubr.f32.mxu0 %v7155_v0  ;;  %v687_v3 = vld [vmem:[%s8657_s4] sm:$0x7] }
 0x118   : > { %5458 = vmatprep.subr.bf16.mxu0 %v7592_v62  ;;  %4800 = vmatprep.mubr.msk.f32.mxu1 %vm705_vm0, %v609_v60  ;;  %v7685_v60 = vpack.c.bf16 %v686_v59, %v683_v58  ;;  %v701_v6 = vrot.slane %v687_v3, %v7723_v2  ;;  %v688_v24 = vld [vmem:[%s8710_s9] sm:$0x7]  ;;  %v693_v34 = vrot.slane %v687_v3, %v7739_v23  ;;  %s4175_s9 = scalar_lea.sflag [#allocation19], %s7534_s7 }
 0x119   : > { %5480 = vmatprep.subr.bf16.mxu1 %v7156_v5  ;;  %4801 = vmatmul.mubr.msk.f32.gmra.mrb[2].mxu1 %vm705_vm0, %v610_v8  ;;  %v976_v35 = vrot.slane %v688_v24, %v7739_v23 }
 0x11a   : > { %4416 = vmatmul.mubr.msk.f32.gmra.mrb[6].mxu0 %vm705_vm0, %v610_v8  ;;  %5482 = vmatpush3.bf16.msra.mxu1 %v7608_v15 }
 0x11b   : > { %5460 = vmatpush1.bf16.msra.mxu0 %v7601_v9  ;;  %818 = vmatprep.mubr.f32.mxu0 %v7155_v0  ;;  %v7754_v39 = vadd.f32 %v976_v35, %v693_v34 }
 0x11c   : > { %5462 = vmatprep.subr.bf16.mxu0 %v7604_v10  ;;  %4803 = vmatprep.mubr.msk.f32.mxu1 %vm705_vm0, %v611_v18 }
 0x11d   : > { %5483 = vmatprep.subr.bf16.mxu1 %v7156_v5  ;;  %4804 = vmatmul.mubr.msk.f32.gmra.mrb[4].mxu1 %vm705_vm0, %v612_v28 }
 0x11e   : > { %4417 = vmatmul.mubr.msk.f32.gmra.mrb[8].mxu0 %vm705_vm0, %v611_v18  ;;  %5485 = vmatpush3.bf16.msra.mxu1 %v7623_v25 }
 0x11f   : > { %5464 = vmatpush1.bf16.msra.mxu0 %v7616_v19  ;;  %824 = vmatprep.mubr.f32.mxu0 %v7155_v0 }
 0x120   : > { %5466 = vmatprep.subr.bf16.mxu0 %v7619_v20  ;;  %4806 = vmatprep.mubr.msk.f32.mxu1 %vm705_vm0, %v613_v30 }
 0x121   : > { %5486 = vmatprep.subr.bf16.mxu1 %v7156_v5  ;;  %4807 = vmatmul.mubr.msk.f32.gmra.mrb[6].mxu1 %vm705_vm0, %v614_v42 }
 0x122   : > { %4418 = vmatmul.mubr.msk.f32.gmra.mrb[10].mxu0 %vm705_vm0, %v612_v28  ;;  %5488 = vmatpush3.bf16.msra.mxu1 %v7639_v37 }
 0x123   : > { %5468 = vmatpush1.bf16.msra.mxu0 %v7631_v29  ;;  %830 = vmatprep.mubr.f32.mxu0 %v7155_v0 }
 0x124   : > { %5470 = vmatprep.subr.bf16.mxu0 %v7635_v31  ;;  %4841 = vmatprep.mubr.msk.f32.mxu1 %vm7157_vm1, %v7155_v0 }
 0x125   : > { %5489 = vmatprep.subr.bf16.mxu1 %v7156_v5 }
 0x126   : > { %4419 = vmatmul.mubr.msk.f32.gmra.mrb[12].mxu0 %vm705_vm0, %v613_v30  ;;  %5491 = vmatpush3.bf16.msra.mxu1 %v7654_v47  ;;  %v7746_v30 = vsub.s32 1, %v691_v1 }
 0x127   : > { %5472 = vmatpush1.bf16.msra.mxu0 %v7646_v40  ;;  %836 = vmatprep.mubr.f32.mxu0 %v7155_v0 }
 0x128   : > { %5474 = vmatprep.subr.bf16.mxu0 %v7650_v43  ;;  %5492 = vmatprep.subr.bf16.mxu1 %v7156_v5  ;;  %v697_v36 = vrot.slane %v687_v3, %v7746_v30  ;;  %v980_v38 = vrot.slane %v688_v24, %v7746_v30  ;;  %v7761_v3 = vrot.slane %v688_v24, %v7723_v2 }
 0x12a   : > { %4420 = vmatmul.mubr.msk.f32.gmra.mrb[14].mxu0 %vm705_vm0, %v614_v42  ;;  %5494 = vmatpush3.bf16.msra.mxu1 %v7666_v51  ;;  %v7756_v45 = vadd.f32 %v980_v38, %v697_v36 }
 0x12b   : > { %5476 = vmatpush1.bf16.msra.mxu0 %v7662_v50  ;;  %1056 = vmatprep.mubr.f32.mxu0 %v7155_v0 }
 0x12c   : > { %5502 = vmatprep.subr.bf16.mxu0 %v7569_v32  ;;  %5495 = vmatprep.subr.bf16.mxu1 %v7156_v5 }
 0x12e   : > { %1057 = vmatmul.mubr.f32.vlgmr.msra.gmra.mrb[0].mxu0 %v7673_v56  ;;  %5497 = vmatpush3.bf16.msra.mxu1 %v7677_v57 }
 0x12f   : > { %5504 = vmatpush1.bf16.msra.mxu0 %v7571_v41  ;;  %1222 = vmatprep.mubr.f32.mxu0 %v7155_v0 }
 0x130   : > { %5506 = vmatprep.subr.bf16.mxu0 %v7574_v44  ;;  %5498 = vmatprep.subr.bf16.mxu1 %v7156_v5 }
 0x132   : > { %5500 = vmatpush3.bf16.msra.mxu1 %v7685_v60 }
 0x133   : > { %5508 = vmatpush1.bf16.msra.mxu0 %v7580_v52  ;;  %5533 = vmatprep.subr.bf16.mxu1 %v7156_v5 }
 0x134   : > { %5510 = vmatprep.subr.bf16.mxu0 %v7583_v53 }
 0x135   : > { %4842 = vmatmul.mubr.f32.vlgmr.msra.gmra.mrb[8].mxu1 %v7673_v56 }
 0x136   : > { %5535 = vmatpush3.bf16.msra.mxu1 %v7594_v4  ;;  %4876 = vmatprep.mubr.msk.f32.mxu1 %vm7157_vm1, %v7155_v0 }
 0x137   : > { %5512 = vmatpush1.bf16.msra.mxu0 %v7589_v61  ;;  %5536 = vmatprep.subr.bf16.mxu1 %v7156_v5 }
 0x138   : > { %5514 = vmatprep.subr.bf16.mxu0 %v7592_v62 }
 0x13a   : > { %5538 = vmatpush3.bf16.msra.mxu1 %v7608_v15 }
 0x13b   : > { %5516 = vmatpush1.bf16.msra.mxu0 %v7601_v9  ;;  %5539 = vmatprep.subr.bf16.mxu1 %v7156_v5 }
 0x13c   : > { %5518 = vmatprep.subr.bf16.mxu0 %v7604_v10 }
 0x13e   : > { %5541 = vmatpush3.bf16.msra.mxu1 %v7623_v25 }
 0x13f   : > { %5520 = vmatpush1.bf16.msra.mxu0 %v7616_v19  ;;  %5542 = vmatprep.subr.bf16.mxu1 %v7156_v5 }
 0x140   : > { %5522 = vmatprep.subr.bf16.mxu0 %v7619_v20 }
 0x142   : > { %5544 = vmatpush3.bf16.msra.mxu1 %v7639_v37 }
 0x143   : > { %5524 = vmatpush1.bf16.msra.mxu0 %v7631_v29  ;;  %5545 = vmatprep.subr.bf16.mxu1 %v7156_v5 }
 0x144   : > { %5526 = vmatprep.subr.bf16.mxu0 %v7635_v31 }
 0x146   : > { %5547 = vmatpush3.bf16.msra.mxu1 %v7654_v47 }
 0x147   : > { %5528 = vmatpush1.bf16.msra.mxu0 %v7646_v40  ;;  %5548 = vmatprep.subr.bf16.mxu1 %v7156_v5 }
 0x148   : > { %5530 = vmatprep.subr.bf16.mxu0 %v7650_v43 }
 0x14a   : > { %5550 = vmatpush3.bf16.msra.mxu1 %v7666_v51 }
 0x14b   : > { %5532 = vmatpush1.bf16.msra.mxu0 %v7662_v50  ;;  %5551 = vmatprep.subr.bf16.mxu1 %v7156_v5 }
 0x14c   : > { %5558 = vmatprep.subr.bf16.mxu0 %v7569_v32 }
 0x14e   : > { %5553 = vmatpush3.bf16.msra.mxu1 %v7677_v57 }
 0x14f   : > { %5554 = vmatprep.subr.bf16.mxu1 %v7156_v5 }
 0x152   : > { %5556 = vmatpush3.bf16.msra.mxu1 %v7685_v60 }
 0x153   : > { %5589 = vmatprep.subr.bf16.mxu1 %v7156_v5 }
 0x1e8   : > { %v4799_v7 = vpop.f32.mrb[0].mxu1 }
 0x1e9   : > { %v7729_v8 = vadd.f32 %v4799_v7, %v701_v6  ;;  %v909_v11 = vpop.f32.mrb[1].mxu1 }
 0x1ec   : > { %v4802_v12 = vpop.f32.mrb[2].mxu1 }
 0x1ed   : > { %v7731_v13 = vadd.f32 %v4802_v12, %v701_v6  ;;  %v919_v14 = vpop.f32.mrb[3].mxu1 }
 0x1ee   : > { %v7733_v16 = vadd.f32 %v919_v14, %v701_v6 }
 0x1f0   : > { %v4805_v17 = vpop.f32.mrb[4].mxu1 }
 0x1f1   : > { %v7735_v18 = vadd.f32 %v4805_v17, %v701_v6  ;;  %v929_v21 = vpop.f32.mrb[5].mxu1 }
 0x1f2   : > { %v7737_v22 = vadd.f32 %v929_v21, %v701_v6  ;;  %v910_v21 = vadd.f32 %v909_v11, %v701_v6 }
 0x1f4   : > { %v4808_v26 = vpop.f32.mrb[6].mxu1 }
 0x1f5   : > { %v7744_v27 = vadd.f32 %v4808_v26, %v701_v6  ;;  %v939_v28 = vpop.f32.mrb[7].mxu1 }
 0x1f6   : > { %v7748_v33 = vadd.f32 %v939_v28, %v701_v6 }
 0x201   : > { %v1058_v42 = vpop.f32.mrb[0].mxu0 }
 0x202   : > { %v6406_v46 = vadd.f32 %v7754_v39, %v1058_v42  ;;  %v1060_v48 = vpop.f32.mrb[1].mxu0 }
 0x203   : > { %v6408_v54 = vadd.f32 %v7756_v45, %v1060_v48 }
 0x204   : > { %v4429_v49 = vmul.f32 -1.442695, %v6406_v46 }
 0x205   : > { %v4430_v55 = vmul.f32 -1.442695, %v6408_v54 }
 0x206   : > { %6635 = vpow2.f32 %v4429_v49 }
 0x207   : > { %6637 = vpow2.f32 %v4430_v55 }
 0x208   : > { %v1129_v58 = vpop.f32.mrb[8].mxu1 }
 0x209   : > { %v4843_v59 = vpop.f32.mrb[9].mxu1  ;;  %v1130_v14 = vadd.f32 %v1129_v58, %v7761_v3 }
 0x210   : > { %v6636_v63 = vpop.eup %6635 }
 0x211   : > { %v1137_v1 = vadd.f32 1.0, %v6636_v63  ;;  %v6638_v7 = vpop.eup %6637 }
 0x212   : > { %v1144_v12 = vadd.f32 1.0, %v6638_v7 }
 0x213   : > { %6639 = vrcp.f32 %v1137_v1 }
 0x214   : > { %6641 = vrcp.f32 %v1144_v12 }
 0x21d   : > { %v6640_v17 = vpop.eup %6639 }
 0x21e   : > { %v1147_v26 = vmul.f32 %v6640_v17, %v1130_v14  ;;  %v6642_v34 = vpop.eup %6641 }
 0x21f   : > { %v1150_v35 = vsub.f32 1.0, %v6642_v34  ;;  %v1152_v42 = vmul.f32 %v6642_v34, %v7673_v56 }
 0x220   : > { %v1148_v28 = vadd.f32 %v1147_v26, %v910_v21 }
 0x222   : > { %6643 = vtanh.f32 %v1148_v28 }
 0x22c   : > { %v6644_v36 = vpop.eup %6643 }
 0x22d   : > { %v1151_v38 = vmul.f32 %v6644_v36, %v1150_v35 }
 0x22f   : > { %v7765_v46 = vadd.f32 %v1152_v42, %v1151_v38 }
 0x231   : > { %1223 = vmatmul.mubr.f32.vlgmr.msra.gmra.mrb[2].mxu0 %v7765_v46  ;;  %4877 = vmatmul.mubr.f32.vlgmr.msra.gmra.mrb[10].mxu1 %v7765_v46 }
 0x232   : > { %5560 = vmatpush1.bf16.msra.mxu0 %v7571_v41  ;;  %5591 = vmatpush3.bf16.msra.mxu1 %v7594_v4 }
 0x233   : > { %5562 = vmatprep.subr.bf16.mxu0 %v7574_v44  ;;  %5592 = vmatprep.subr.bf16.mxu1 %v7156_v5 }
 0x234   : > { %1388 = vmatprep.mubr.f32.mxu0 %v7155_v0  ;;  %4911 = vmatprep.mubr.msk.f32.mxu1 %vm7157_vm1, %v7155_v0 }
 0x236   : > { %5564 = vmatpush1.bf16.msra.mxu0 %v7580_v52  ;;  %5594 = vmatpush3.bf16.msra.mxu1 %v7608_v15 }
 0x237   : > { %5566 = vmatprep.subr.bf16.mxu0 %v7583_v53  ;;  %5595 = vmatprep.subr.bf16.mxu1 %v7156_v5 }
 0x23a   : > { %5568 = vmatpush1.bf16.msra.mxu0 %v7589_v61  ;;  %5597 = vmatpush3.bf16.msra.mxu1 %v7623_v25 }
 0x23b   : > { %5570 = vmatprep.subr.bf16.mxu0 %v7592_v62  ;;  %5598 = vmatprep.subr.bf16.mxu1 %v7156_v5 }
 0x23e   : > { %5572 = vmatpush1.bf16.msra.mxu0 %v7601_v9  ;;  %5600 = vmatpush3.bf16.msra.mxu1 %v7639_v37 }
 0x23f   : > { %5574 = vmatprep.subr.bf16.mxu0 %v7604_v10  ;;  %5601 = vmatprep.subr.bf16.mxu1 %v7156_v5 }
 0x242   : > { %5576 = vmatpush1.bf16.msra.mxu0 %v7616_v19  ;;  %5603 = vmatpush3.bf16.msra.mxu1 %v7654_v47 }
 0x243   : > { %5578 = vmatprep.subr.bf16.mxu0 %v7619_v20  ;;  %5604 = vmatprep.subr.bf16.mxu1 %v7156_v5 }
 0x246   : > { %5580 = vmatpush1.bf16.msra.mxu0 %v7631_v29  ;;  %5606 = vmatpush3.bf16.msra.mxu1 %v7666_v51 }
 0x247   : > { %5582 = vmatprep.subr.bf16.mxu0 %v7635_v31  ;;  %5607 = vmatprep.subr.bf16.mxu1 %v7156_v5 }
 0x24a   : > { %5584 = vmatpush1.bf16.msra.mxu0 %v7646_v40  ;;  %5609 = vmatpush3.bf16.msra.mxu1 %v7677_v57 }
 0x24b   : > { %5586 = vmatprep.subr.bf16.mxu0 %v7650_v43  ;;  %5610 = vmatprep.subr.bf16.mxu1 %v7156_v5 }
 0x24e   : > { %5588 = vmatpush1.bf16.msra.mxu0 %v7662_v50  ;;  %5612 = vmatpush3.bf16.msra.mxu1 %v7685_v60 }
 0x24f   : > { %5614 = vmatprep.subr.bf16.mxu0 %v7569_v32  ;;  %5645 = vmatprep.subr.bf16.mxu1 %v7156_v5 }
 0x304   : > { %v1224_v56 = vpop.f32.mrb[2].mxu0  ;;  %v1295_v6 = vpop.f32.mrb[10].mxu1 }
 0x305   : > { %v6410_v11 = vadd.f32 %v7754_v39, %v1224_v56  ;;  %v1226_v24 = vpop.f32.mrb[3].mxu0  ;;  %v4878_v48 = vpop.f32.mrb[11].mxu1  ;;  %v1296_v7 = vadd.f32 %v1295_v6, %v7761_v3 }
 0x306   : > { %v6412_v54 = vadd.f32 %v7756_v45, %v1226_v24 }
 0x307   : > { %v4431_v49 = vmul.f32 -1.442695, %v6410_v11 }
 0x308   : > { %v4432_v55 = vmul.f32 -1.442695, %v6412_v54 }
 0x309   : > { %6645 = vpow2.f32 %v4431_v49 }
 0x30a   : > { %6647 = vpow2.f32 %v4432_v55 }
 0x313   : > { %v6646_v58 = vpop.eup %6645 }
 0x314   : > { %v1303_v59 = vadd.f32 1.0, %v6646_v58  ;;  %v6648_v63 = vpop.eup %6647 }
 0x315   : > { %v1310_v1 = vadd.f32 1.0, %v6648_v63 }
 0x316   : > { %6649 = vrcp.f32 %v1303_v59 }
 0x317   : > { %6651 = vrcp.f32 %v1310_v1 }
 0x320   : > { %v6650_v12 = vpop.eup %6649 }
 0x321   : > { %v1313_v14 = vmul.f32 %v6650_v12, %v1296_v7  ;;  %v6652_v21 = vpop.eup %6651 }
 0x322   : > { %v1316_v26 = vsub.f32 1.0, %v6652_v21  ;;  %v1318_v35 = vmul.f32 %v6652_v21, %v7765_v46 }
 0x323   : > { %v1314_v17 = vadd.f32 %v1313_v14, %v7729_v8 }
 0x325   : > { %6653 = vtanh.f32 %v1314_v17 }
 0x32f   : > { %v6654_v28 = vpop.eup %6653 }
 0x330   : > { %v1317_v34 = vmul.f32 %v6654_v28, %v1316_v26 }
 0x332   : > { %v7809_v36 = vadd.f32 %v1318_v35, %v1317_v34 }
 0x334   : > { %1389 = vmatmul.mubr.f32.vlgmr.msra.gmra.mrb[4].mxu0 %v7809_v36  ;;  %4912 = vmatmul.mubr.f32.vlgmr.msra.gmra.mrb[12].mxu1 %v7809_v36 }
 0x335   : > { %5616 = vmatpush1.bf16.msra.mxu0 %v7571_v41  ;;  %5647 = vmatpush3.bf16.msra.mxu1 %v7594_v4 }
 0x336   : > { %5618 = vmatprep.subr.bf16.mxu0 %v7574_v44  ;;  %5648 = vmatprep.subr.bf16.mxu1 %v7156_v5 }
 0x337   : > { %1554 = vmatprep.mubr.f32.mxu0 %v7155_v0  ;;  %4946 = vmatprep.mubr.msk.f32.mxu1 %vm7157_vm1, %v7155_v0 }
 0x339   : > { %5620 = vmatpush1.bf16.msra.mxu0 %v7580_v52  ;;  %5650 = vmatpush3.bf16.msra.mxu1 %v7608_v15 }
 0x33a   : > { %5622 = vmatprep.subr.bf16.mxu0 %v7583_v53  ;;  %5651 = vmatprep.subr.bf16.mxu1 %v7156_v5 }
 0x33d   : > { %5624 = vmatpush1.bf16.msra.mxu0 %v7589_v61  ;;  %5653 = vmatpush3.bf16.msra.mxu1 %v7623_v25 }
 0x33e   : > { %5626 = vmatprep.subr.bf16.mxu0 %v7592_v62  ;;  %5654 = vmatprep.subr.bf16.mxu1 %v7156_v5 }
 0x341   : > { %5628 = vmatpush1.bf16.msra.mxu0 %v7601_v9  ;;  %5656 = vmatpush3.bf16.msra.mxu1 %v7639_v37 }
 0x342   : > { %5630 = vmatprep.subr.bf16.mxu0 %v7604_v10  ;;  %5657 = vmatprep.subr.bf16.mxu1 %v7156_v5 }
 0x345   : > { %5632 = vmatpush1.bf16.msra.mxu0 %v7616_v19  ;;  %5659 = vmatpush3.bf16.msra.mxu1 %v7654_v47 }
 0x346   : > { %5634 = vmatprep.subr.bf16.mxu0 %v7619_v20  ;;  %5660 = vmatprep.subr.bf16.mxu1 %v7156_v5 }
 0x349   : > { %5636 = vmatpush1.bf16.msra.mxu0 %v7631_v29  ;;  %5662 = vmatpush3.bf16.msra.mxu1 %v7666_v51 }
 0x34a   : > { %5638 = vmatprep.subr.bf16.mxu0 %v7635_v31  ;;  %5663 = vmatprep.subr.bf16.mxu1 %v7156_v5 }
 0x34d   : > { %5640 = vmatpush1.bf16.msra.mxu0 %v7646_v40  ;;  %5665 = vmatpush3.bf16.msra.mxu1 %v7677_v57 }
 0x34e   : > { %5642 = vmatprep.subr.bf16.mxu0 %v7650_v43  ;;  %5666 = vmatprep.subr.bf16.mxu1 %v7156_v5 }
 0x351   : > { %5644 = vmatpush1.bf16.msra.mxu0 %v7662_v50  ;;  %5668 = vmatpush3.bf16.msra.mxu1 %v7685_v60 }
 0x352   : > { %5670 = vmatprep.subr.bf16.mxu0 %v7569_v32  ;;  %5701 = vmatprep.subr.bf16.mxu1 %v7156_v5 }
 0x407   : > { %v1390_v8 = vpop.f32.mrb[4].mxu0  ;;  %v1461_v38 = vpop.f32.mrb[12].mxu1 }
 0x408   : > { %v6414_v42 = vadd.f32 %v7754_v39, %v1390_v8  ;;  %v1392_v56 = vpop.f32.mrb[5].mxu0  ;;  %v4913_v6 = vpop.f32.mrb[13].mxu1  ;;  %v1462_v59 = vadd.f32 %v1461_v38, %v7761_v3 }
 0x409   : > { %v6416_v24 = vadd.f32 %v7756_v45, %v1392_v56 }
 0x40a   : > { %v4433_v11 = vmul.f32 -1.442695, %v6414_v42 }
 0x40b   : > { %v4434_v48 = vmul.f32 -1.442695, %v6416_v24 }
 0x40c   : > { %6655 = vpow2.f32 %v4433_v11 }
 0x40d   : > { %6657 = vpow2.f32 %v4434_v48 }
 0x416   : > { %v6656_v49 = vpop.eup %6655 }
 0x417   : > { %v1469_v54 = vadd.f32 1.0, %v6656_v49  ;;  %v6658_v55 = vpop.eup %6657 }
 0x418   : > { %v1476_v58 = vadd.f32 1.0, %v6658_v55 }
 0x419   : > { %6659 = vrcp.f32 %v1469_v54 }
 0x41a   : > { %6661 = vrcp.f32 %v1476_v58 }
 0x423   : > { %v6660_v63 = vpop.eup %6659 }
 0x424   : > { %v1479_v1 = vmul.f32 %v6660_v63, %v1462_v59  ;;  %v6662_v12 = vpop.eup %6661 }
 0x425   : > { %v1482_v14 = vsub.f32 1.0, %v6662_v12  ;;  %v1484_v26 = vmul.f32 %v6662_v12, %v7809_v36 }
 0x426   : > { %v1480_v7 = vadd.f32 %v1479_v1, %v7733_v16 }
 0x428   : > { %6663 = vtanh.f32 %v1480_v7 }
 0x432   : > { %v6664_v17 = vpop.eup %6663 }
 0x433   : > { %v1483_v21 = vmul.f32 %v6664_v17, %v1482_v14 }
 0x435   : > { %v7853_v28 = vadd.f32 %v1484_v26, %v1483_v21 }
 0x437   : > { %1555 = vmatmul.mubr.f32.vlgmr.msra.gmra.mrb[6].mxu0 %v7853_v28  ;;  %4947 = vmatmul.mubr.f32.vlgmr.msra.gmra.mrb[14].mxu1 %v7853_v28 }
 0x438   : > { %5672 = vmatpush1.bf16.msra.mxu0 %v7571_v41  ;;  %5703 = vmatpush3.bf16.msra.mxu1 %v7594_v4 }
 0x439   : > { %5674 = vmatprep.subr.bf16.mxu0 %v7574_v44  ;;  %5704 = vmatprep.subr.bf16.mxu1 %v7156_v5 }
 0x43a   : > { %1720 = vmatprep.mubr.f32.mxu0 %v7155_v0  ;;  %4981 = vmatprep.mubr.msk.f32.mxu1 %vm7157_vm1, %v7155_v0 }
 0x43c   : > { %5676 = vmatpush1.bf16.msra.mxu0 %v7580_v52  ;;  %5706 = vmatpush3.bf16.msra.mxu1 %v7608_v15 }
 0x43d   : > { %5678 = vmatprep.subr.bf16.mxu0 %v7583_v53  ;;  %5707 = vmatprep.subr.bf16.mxu1 %v7156_v5 }
 0x440   : > { %5680 = vmatpush1.bf16.msra.mxu0 %v7589_v61  ;;  %5709 = vmatpush3.bf16.msra.mxu1 %v7623_v25 }
 0x441   : > { %5682 = vmatprep.subr.bf16.mxu0 %v7592_v62  ;;  %5710 = vmatprep.subr.bf16.mxu1 %v7156_v5 }
 0x444   : > { %5684 = vmatpush1.bf16.msra.mxu0 %v7601_v9  ;;  %5712 = vmatpush3.bf16.msra.mxu1 %v7639_v37 }
 0x445   : > { %5686 = vmatprep.subr.bf16.mxu0 %v7604_v10  ;;  %5713 = vmatprep.subr.bf16.mxu1 %v7156_v5 }
 0x448   : > { %5688 = vmatpush1.bf16.msra.mxu0 %v7616_v19  ;;  %5715 = vmatpush3.bf16.msra.mxu1 %v7654_v47 }
 0x449   : > { %5690 = vmatprep.subr.bf16.mxu0 %v7619_v20  ;;  %5716 = vmatprep.subr.bf16.mxu1 %v7156_v5 }
 0x44c   : > { %5692 = vmatpush1.bf16.msra.mxu0 %v7631_v29  ;;  %5718 = vmatpush3.bf16.msra.mxu1 %v7666_v51 }
 0x44d   : > { %5694 = vmatprep.subr.bf16.mxu0 %v7635_v31  ;;  %5719 = vmatprep.subr.bf16.mxu1 %v7156_v5 }
 0x450   : > { %5696 = vmatpush1.bf16.msra.mxu0 %v7646_v40  ;;  %5721 = vmatpush3.bf16.msra.mxu1 %v7677_v57 }
 0x451   : > { %5698 = vmatprep.subr.bf16.mxu0 %v7650_v43  ;;  %5722 = vmatprep.subr.bf16.mxu1 %v7156_v5 }
 0x454   : > { %5700 = vmatpush1.bf16.msra.mxu0 %v7662_v50  ;;  %5724 = vmatpush3.bf16.msra.mxu1 %v7685_v60 }
 0x455   : > { %5726 = vmatprep.subr.bf16.mxu0 %v7569_v32  ;;  %5757 = vmatprep.subr.bf16.mxu1 %v7156_v5 }
 0x50a   : > { %v1556_v16 = vpop.f32.mrb[6].mxu0  ;;  %v1627_v34 = vpop.f32.mrb[14].mxu1 }
 0x50b   : > { %v6418_v35 = vadd.f32 %v7754_v39, %v1556_v16  ;;  %v1558_v8 = vpop.f32.mrb[7].mxu0  ;;  %v4948_v38 = vpop.f32.mrb[15].mxu1  ;;  %v1628_v54 = vadd.f32 %v1627_v34, %v7761_v3 }
 0x50c   : > { %v6420_v56 = vadd.f32 %v7756_v45, %v1558_v8 }
 0x50d   : > { %v4435_v42 = vmul.f32 -1.442695, %v6418_v35 }
 0x50e   : > { %v4436_v6 = vmul.f32 -1.442695, %v6420_v56 }
 0x50f   : > { %6665 = vpow2.f32 %v4435_v42 }
 0x510   : > { %6667 = vpow2.f32 %v4436_v6 }
 0x519   : > { %v6666_v11 = vpop.eup %6665 }
 0x51a   : > { %v1635_v24 = vadd.f32 1.0, %v6666_v11  ;;  %v6668_v48 = vpop.eup %6667 }
 0x51b   : > { %v1642_v49 = vadd.f32 1.0, %v6668_v48 }
 0x51c   : > { %6669 = vrcp.f32 %v1635_v24 }
 0x51d   : > { %6671 = vrcp.f32 %v1642_v49 }
 0x526   : > { %v6670_v55 = vpop.eup %6669 }
 0x527   : > { %v1645_v58 = vmul.f32 %v6670_v55, %v1628_v54  ;;  %v6672_v63 = vpop.eup %6671 }
 0x528   : > { %v1648_v1 = vsub.f32 1.0, %v6672_v63  ;;  %v1650_v14 = vmul.f32 %v6672_v63, %v7853_v28 }
 0x529   : > { %v1646_v59 = vadd.f32 %v1645_v58, %v7731_v13 }
 0x52b   : > { %6673 = vtanh.f32 %v1646_v59 }
 0x535   : > { %v6674_v7 = vpop.eup %6673 }
 0x536   : > { %v1649_v12 = vmul.f32 %v6674_v7, %v1648_v1 }
 0x538   : > { %v7897_v17 = vadd.f32 %v1650_v14, %v1649_v12 }
 0x53a   : > { %1721 = vmatmul.mubr.f32.vlgmr.msra.gmra.mrb[8].mxu0 %v7897_v17  ;;  %4982 = vmatmul.mubr.f32.vlgmr.msra.gmra.mrb[16].mxu1 %v7897_v17 }
 0x53b   : > { %5728 = vmatpush1.bf16.msra.mxu0 %v7571_v41  ;;  %5759 = vmatpush3.bf16.msra.mxu1 %v7594_v4 }
 0x53c   : > { %5730 = vmatprep.subr.bf16.mxu0 %v7574_v44  ;;  %5760 = vmatprep.subr.bf16.mxu1 %v7156_v5 }
 0x53d   : > { %1886 = vmatprep.mubr.f32.mxu0 %v7155_v0  ;;  %5016 = vmatprep.mubr.msk.f32.mxu1 %vm7157_vm1, %v7155_v0 }
 0x53f   : > { %5732 = vmatpush1.bf16.msra.mxu0 %v7580_v52  ;;  %5762 = vmatpush3.bf16.msra.mxu1 %v7608_v15 }
 0x540   : > { %5734 = vmatprep.subr.bf16.mxu0 %v7583_v53  ;;  %5763 = vmatprep.subr.bf16.mxu1 %v7156_v5 }
 0x543   : > { %5736 = vmatpush1.bf16.msra.mxu0 %v7589_v61  ;;  %5765 = vmatpush3.bf16.msra.mxu1 %v7623_v25 }
 0x544   : > { %5738 = vmatprep.subr.bf16.mxu0 %v7592_v62  ;;  %5766 = vmatprep.subr.bf16.mxu1 %v7156_v5 }
 0x547   : > { %5740 = vmatpush1.bf16.msra.mxu0 %v7601_v9  ;;  %5768 = vmatpush3.bf16.msra.mxu1 %v7639_v37 }
 0x548   : > { %5742 = vmatprep.subr.bf16.mxu0 %v7604_v10  ;;  %5769 = vmatprep.subr.bf16.mxu1 %v7156_v5 }
 0x54b   : > { %5744 = vmatpush1.bf16.msra.mxu0 %v7616_v19  ;;  %5771 = vmatpush3.bf16.msra.mxu1 %v7654_v47 }
 0x54c   : > { %5746 = vmatprep.subr.bf16.mxu0 %v7619_v20  ;;  %5772 = vmatprep.subr.bf16.mxu1 %v7156_v5 }
 0x54f   : > { %5748 = vmatpush1.bf16.msra.mxu0 %v7631_v29  ;;  %5774 = vmatpush3.bf16.msra.mxu1 %v7666_v51 }
 0x550   : > { %5750 = vmatprep.subr.bf16.mxu0 %v7635_v31  ;;  %5775 = vmatprep.subr.bf16.mxu1 %v7156_v5 }
 0x553   : > { %5752 = vmatpush1.bf16.msra.mxu0 %v7646_v40  ;;  %5777 = vmatpush3.bf16.msra.mxu1 %v7677_v57 }
 0x554   : > { %5754 = vmatprep.subr.bf16.mxu0 %v7650_v43  ;;  %5778 = vmatprep.subr.bf16.mxu1 %v7156_v5 }
 0x557   : > { %5756 = vmatpush1.bf16.msra.mxu0 %v7662_v50  ;;  %5780 = vmatpush3.bf16.msra.mxu1 %v7685_v60 }
 0x558   : > { %5782 = vmatprep.subr.bf16.mxu0 %v7569_v32  ;;  %5813 = vmatprep.subr.bf16.mxu1 %v7156_v5 }
 0x60d   : > { %v1722_v13 = vpop.f32.mrb[8].mxu0  ;;  %v1793_v21 = vpop.f32.mrb[16].mxu1 }
 0x60e   : > { %v6422_v26 = vadd.f32 %v7754_v39, %v1722_v13  ;;  %v1724_v16 = vpop.f32.mrb[9].mxu0  ;;  %v4983_v34 = vpop.f32.mrb[17].mxu1  ;;  %v1794_v24 = vadd.f32 %v1793_v21, %v7761_v3 }
 0x60f   : > { %v6424_v8 = vadd.f32 %v7756_v45, %v1724_v16 }
 0x610   : > { %v4437_v35 = vmul.f32 -1.442695, %v6422_v26 }
 0x611   : > { %v4438_v38 = vmul.f32 -1.442695, %v6424_v8 }
 0x612   : > { %6675 = vpow2.f32 %v4437_v35 }
 0x613   : > { %6677 = vpow2.f32 %v4438_v38 }
 0x61c   : > { %v6676_v42 = vpop.eup %6675 }
 0x61d   : > { %v1801_v56 = vadd.f32 1.0, %v6676_v42  ;;  %v6678_v6 = vpop.eup %6677 }
 0x61e   : > { %v1808_v11 = vadd.f32 1.0, %v6678_v6 }
 0x61f   : > { %6679 = vrcp.f32 %v1801_v56 }
 0x620   : > { %6681 = vrcp.f32 %v1808_v11 }
 0x629   : > { %v6680_v48 = vpop.eup %6679 }
 0x62a   : > { %v1811_v49 = vmul.f32 %v6680_v48, %v1794_v24  ;;  %v6682_v55 = vpop.eup %6681 }
 0x62b   : > { %v1814_v58 = vsub.f32 1.0, %v6682_v55  ;;  %v1816_v1 = vmul.f32 %v6682_v55, %v7897_v17 }
 0x62c   : > { %v1812_v54 = vadd.f32 %v1811_v49, %v7737_v22 }
 0x62e   : > { %6683 = vtanh.f32 %v1812_v54 }
 0x638   : > { %v6684_v59 = vpop.eup %6683 }
 0x639   : > { %v1815_v63 = vmul.f32 %v6684_v59, %v1814_v58  ;;  %v2318_v59 = vld [vmem:[#allocation13] sm:$0xff] }
 0x63b   : > { %v7941_v7 = vadd.f32 %v1816_v1, %v1815_v63  ;;  %v2321_v63 = vld [vmem:[#allocation13 + $0x18] sm:$0xff] }
 0x63d   : > { %1887 = vmatmul.mubr.f32.vlgmr.msra.gmra.mrb[10].mxu0 %v7941_v7  ;;  %5017 = vmatmul.mubr.f32.vlgmr.msra.gmra.mrb[18].mxu1 %v7941_v7 }
 0x63e   : > { %5784 = vmatpush1.bf16.msra.mxu0 %v7571_v41  ;;  %5815 = vmatpush3.bf16.msra.mxu1 %v7594_v4 }
 0x63f   : > { %5786 = vmatprep.subr.bf16.mxu0 %v7574_v44  ;;  %5816 = vmatprep.subr.bf16.mxu1 %v7156_v5 }
 0x640   : > { %2052 = vmatprep.mubr.f32.mxu0 %v7155_v0  ;;  %5051 = vmatprep.mubr.msk.f32.mxu1 %vm7157_vm1, %v7155_v0 }
 0x642   : > { %5788 = vmatpush1.bf16.msra.mxu0 %v7580_v52  ;;  %5818 = vmatpush3.bf16.msra.mxu1 %v7608_v15 }
 0x643   : > { %5790 = vmatprep.subr.bf16.mxu0 %v7583_v53  ;;  %5819 = vmatprep.subr.bf16.mxu1 %v7156_v5 }
 0x646   : > { %5792 = vmatpush1.bf16.msra.mxu0 %v7589_v61  ;;  %5821 = vmatpush3.bf16.msra.mxu1 %v7623_v25 }
 0x647   : > { %5794 = vmatprep.subr.bf16.mxu0 %v7592_v62  ;;  %5822 = vmatprep.subr.bf16.mxu1 %v7156_v5 }
 0x64a   : > { %5796 = vmatpush1.bf16.msra.mxu0 %v7601_v9  ;;  %5824 = vmatpush3.bf16.msra.mxu1 %v7639_v37 }
 0x64b   : > { %5798 = vmatprep.subr.bf16.mxu0 %v7604_v10  ;;  %5825 = vmatprep.subr.bf16.mxu1 %v7156_v5 }
 0x64e   : > { %5800 = vmatpush1.bf16.msra.mxu0 %v7616_v19  ;;  %5827 = vmatpush3.bf16.msra.mxu1 %v7654_v47 }
 0x64f   : > { %5802 = vmatprep.subr.bf16.mxu0 %v7619_v20  ;;  %5828 = vmatprep.subr.bf16.mxu1 %v7156_v5 }
 0x652   : > { %5804 = vmatpush1.bf16.msra.mxu0 %v7631_v29  ;;  %5830 = vmatpush3.bf16.msra.mxu1 %v7666_v51 }
 0x653   : > { %5806 = vmatprep.subr.bf16.mxu0 %v7635_v31  ;;  %5831 = vmatprep.subr.bf16.mxu1 %v7156_v5 }
 0x656   : > { %5808 = vmatpush1.bf16.msra.mxu0 %v7646_v40  ;;  %5833 = vmatpush3.bf16.msra.mxu1 %v7677_v57 }
 0x657   : > { %5810 = vmatprep.subr.bf16.mxu0 %v7650_v43  ;;  %5834 = vmatprep.subr.bf16.mxu1 %v7156_v5 }
 0x65a   : > { %5812 = vmatpush1.bf16.msra.mxu0 %v7662_v50  ;;  %5836 = vmatpush3.bf16.msra.mxu1 %v7685_v60 }
 0x65b   : > { %5838 = vmatprep.subr.bf16.mxu0 %v7569_v32  ;;  %5869 = vmatprep.subr.bf16.mxu1 %v7156_v5 }
 0x710   : > { %v1888_v22 = vpop.f32.mrb[10].mxu0  ;;  %v1959_v12 = vpop.f32.mrb[18].mxu1 }
 0x711   : > { %v6426_v14 = vadd.f32 %v7754_v39, %v1888_v22  ;;  %v1890_v13 = vpop.f32.mrb[11].mxu0  ;;  %v5018_v21 = vpop.f32.mrb[19].mxu1  ;;  %v1960_v32 = vadd.f32 %v1959_v12, %v7761_v3  ;;  %v2325_v22 = vld [vmem:[#allocation13 + $0x38] sm:$0xff]  ;;  %v2328_v12 = vld [vmem:[#allocation13 + $0x50] sm:$0xff] }
 0x712   : > { %v6428_v16 = vadd.f32 %v7756_v45, %v1890_v13  ;;  %v2326_v21 = vld [vmem:[#allocation13 + $0x40] sm:$0xff] }
 0x713   : > { %v4439_v26 = vmul.f32 -1.442695, %v6426_v14 }
 0x714   : > { %v4440_v34 = vmul.f32 -1.442695, %v6428_v16  ;;  %v5895_v16 = vpack.c.bf16 %v2321_v63, %v2318_v59  ;;  %v2348_v59 = vld [vmem:[#allocation13 + $0xf0] sm:$0xff]  ;;  %v2351_v63 = vld [vmem:[#allocation13 + $0x108] sm:$0xff] }
 0x715   : > { %6685 = vpow2.f32 %v4439_v26  ;;  %v2329_v26 = vld [vmem:[#allocation13 + $0x58] sm:$0xff] }
 0x716   : > { %6687 = vpow2.f32 %v4440_v34 }
 0x71f   : > { %v6686_v35 = vpop.eup %6685 }
 0x720   : > { %v1967_v8 = vadd.f32 1.0, %v6686_v35  ;;  %v6688_v38 = vpop.eup %6687  ;;  %v5897_v35 = vpack.c.bf16 %v2328_v12, %v2325_v22  ;;  %v2358_v22 = vld [vmem:[#allocation13 + $0x140] sm:$0xff]  ;;  %v2356_v12 = vld [vmem:[#allocation13 + $0x130] sm:$0xff] }
 0x721   : > { %v1974_v42 = vadd.f32 1.0, %v6688_v38  ;;  %v2327_v38 = vld [vmem:[#allocation13 + $0x48] sm:$0xff] }
 0x722   : > { %6689 = vrcp.f32 %v1967_v8  ;;  %v2324_v8 = vld [vmem:[#allocation13 + $0x30] sm:$0xff] }
 0x723   : > { %6691 = vrcp.f32 %v1974_v42  ;;  %v5929_v42 = vpack.c.bf16 %v2329_v26, %v2326_v21 }
 0x72c   : > { %v6690_v56 = vpop.eup %6689 }
 0x72d   : > { %v1977_v6 = vmul.f32 %v6690_v56, %v1960_v32  ;;  %v6692_v24 = vpop.eup %6691  ;;  %v2334_v32 = vld [vmem:[#allocation13 + $0x80] sm:$0xff]  ;;  %v2332_v56 = vld [vmem:[#allocation13 + $0x70] sm:$0xff] }
 0x72e   : > { %v1980_v48 = vsub.f32 1.0, %v6692_v24  ;;  %v1982_v55 = vmul.f32 %v6692_v24, %v7941_v7 }
 0x72f   : > { %v1978_v11 = vadd.f32 %v1977_v6, %v7735_v18  ;;  %v2335_v6 = vld [vmem:[#allocation13 + $0x88] sm:$0xff] }
 0x731   : > { %6693 = vtanh.f32 %v1978_v11  ;;  %v5899_v11 = vpack.c.bf16 %v2327_v38, %v2324_v8  ;;  %v2361_v8 = vld [vmem:[#allocation13 + $0x158] sm:$0xff]  ;;  %v2364_v38 = vld [vmem:[#allocation13 + $0x170] sm:$0xff] }
 0x73b   : > { %v6694_v49 = vpop.eup %6693 }
 0x73c   : > { %v1981_v54 = vmul.f32 %v6694_v49, %v1980_v48  ;;  %v5933_v48 = vpack.c.bf16 %v2335_v6, %v2332_v56  ;;  %v2330_v49 = vld [vmem:[#allocation13 + $0x60] sm:$0xff]  ;;  %v5921_v56 = vpack.c.bf16 %v2364_v38, %v2361_v8  ;;  %v2409_v38 = vld [vmem:[#allocation14 + $0x158] sm:$0xff] }
 0x73e   : > { %v7985_v58 = vadd.f32 %v1982_v55, %v1981_v54  ;;  %v2333_v54 = vld [vmem:[#allocation13 + $0x78] sm:$0xff] }
 0x73f   : > { %v2337_v55 = vld [vmem:[#allocation13 + $0x98] sm:$0xff] }
 0x740   : > { %2053 = vmatmul.mubr.f32.vlgmr.msra.gmra.mrb[12].mxu0 %v7985_v58  ;;  %5052 = vmatmul.mubr.f32.vlgmr.msra.gmra.mrb[20].mxu1 %v7985_v58 }
 0x741   : > { %5840 = vmatpush1.bf16.msra.mxu0 %v7571_v41  ;;  %5871 = vmatpush3.bf16.msra.mxu1 %v7594_v4  ;;  %v2319_v41 = vld [vmem:[#allocation13 + $0x8] sm:$0xff] }
 0x742   : > { %5842 = vmatprep.subr.bf16.mxu0 %v7574_v44  ;;  %5872 = vmatprep.subr.bf16.mxu1 %v7156_v5  ;;  %v2322_v44 = vld [vmem:[#allocation13 + $0x20] sm:$0xff] }
 0x743   : > { %2218 = vmatprep.mubr.f32.mxu0 %v7155_v0  ;;  %5086 = vmatprep.mubr.msk.f32.mxu1 %vm7157_vm1, %v7155_v0 }
 0x745   : > { %5844 = vmatpush1.bf16.msra.mxu0 %v7580_v52  ;;  %5874 = vmatpush3.bf16.msra.mxu1 %v7608_v15  ;;  %v2320_v52 = vld [vmem:[#allocation13 + $0x10] sm:$0xff] }
 0x746   : > { %5846 = vmatprep.subr.bf16.mxu0 %v7583_v53  ;;  %5875 = vmatprep.subr.bf16.mxu1 %v7156_v5  ;;  %v5893_v53 = vpack.c.bf16 %v2322_v44, %v2319_v41  ;;  %v2340_v41 = vld [vmem:[#allocation13 + $0xb0] sm:$0xff]  ;;  %v2338_v44 = vld [vmem:[#allocation13 + $0xa0] sm:$0xff] }
 0x749   : > { %5848 = vmatpush1.bf16.msra.mxu0 %v7589_v61  ;;  %5877 = vmatpush3.bf16.msra.mxu1 %v7623_v25  ;;  %v2323_v61 = vld [vmem:[#allocation13 + $0x28] sm:$0xff] }
 0x74a   : > { %5850 = vmatprep.subr.bf16.mxu0 %v7592_v62  ;;  %5878 = vmatprep.subr.bf16.mxu1 %v7156_v5  ;;  %v5925_v62 = vpack.c.bf16 %v2323_v61, %v2320_v52  ;;  %v2341_v52 = vld [vmem:[#allocation13 + $0xb8] sm:$0xff]  ;;  %v5905_v61 = vpack.c.bf16 %v2340_v41, %v2337_v55  ;;  %v2372_v41 = vld [vmem:[#allocation14 + $0x30] sm:$0xff] }
 0x74d   : > { %5852 = vmatpush1.bf16.msra.mxu0 %v7601_v9  ;;  %5880 = vmatpush3.bf16.msra.mxu1 %v7639_v37 }
 0x74e   : > { %5854 = vmatprep.subr.bf16.mxu0 %v7604_v10  ;;  %5881 = vmatprep.subr.bf16.mxu1 %v7156_v5 }
 0x751   : > { %5856 = vmatpush1.bf16.msra.mxu0 %v7616_v19  ;;  %5883 = vmatpush3.bf16.msra.mxu1 %v7654_v47 }
 0x752   : > { %5858 = vmatprep.subr.bf16.mxu0 %v7619_v20  ;;  %5884 = vmatprep.subr.bf16.mxu1 %v7156_v5 }
 0x755   : > { %5860 = vmatpush1.bf16.msra.mxu0 %v7631_v29  ;;  %5886 = vmatpush3.bf16.msra.mxu1 %v7666_v51 }
 0x756   : > { %5862 = vmatprep.subr.bf16.mxu0 %v7635_v31  ;;  %5887 = vmatprep.subr.bf16.mxu1 %v7156_v5 }
 0x759   : > { %5864 = vmatpush1.bf16.msra.mxu0 %v7646_v40  ;;  %5889 = vmatpush3.bf16.msra.mxu1 %v7677_v57 }
 0x75a   : > { %5866 = vmatprep.subr.bf16.mxu0 %v7650_v43  ;;  %5890 = vmatprep.subr.bf16.mxu1 %v7156_v5 }
 0x75d   : > { %5868 = vmatpush1.bf16.msra.mxu0 %v7662_v50  ;;  %5892 = vmatpush3.bf16.msra.mxu1 %v7685_v60 }
 0x75e   : > { %5894 = vmatprep.subr.bf16.mxu0 %v5893_v53  ;;  %5926 = vmatprep.subr.bf16.mxu1 %v5925_v62  ;;  %v5903_v53 = vpack.c.bf16 %v2333_v54, %v2330_v49  ;;  %v2366_v49 = vld [vmem:[#allocation14] sm:$0xff] }
 0x813   : > { %v2054_v4 = vpop.f32.mrb[12].mxu0  ;;  %v2125_v9 = vpop.f32.mrb[20].mxu1 }
 0x814   : > { %v6430_v10 = vadd.f32 %v7754_v39, %v2054_v4  ;;  %v2056_v15 = vpop.f32.mrb[13].mxu0  ;;  %v5053_v19 = vpop.f32.mrb[21].mxu1  ;;  %v2126_v47 = vadd.f32 %v2125_v9, %v7761_v3  ;;  %v2336_v4 = vld [vmem:[#allocation13 + $0x90] sm:$0xff]  ;;  %v2339_v9 = vld [vmem:[#allocation13 + $0xa8] sm:$0xff] }
 0x815   : > { %v6432_v25 = vadd.f32 %v7756_v45, %v2056_v15  ;;  %v2346_v15 = vld [vmem:[#allocation13 + $0xe0] sm:$0xff]  ;;  %v2344_v19 = vld [vmem:[#allocation13 + $0xd0] sm:$0xff] }
 0x816   : > { %v4441_v20 = vmul.f32 -1.442695, %v6430_v10  ;;  %v2343_v10 = vld [vmem:[#allocation13 + $0xc8] sm:$0xff] }
 0x817   : > { %v4442_v29 = vmul.f32 -1.442695, %v6432_v25  ;;  %v5907_v25 = vpack.c.bf16 %v2339_v9, %v2336_v4  ;;  %v2378_v4 = vld [vmem:[#allocation14 + $0x60] sm:$0xff]  ;;  %v2381_v9 = vld [vmem:[#allocation14 + $0x78] sm:$0xff] }
 0x818   : > { %6695 = vpow2.f32 %v4441_v20  ;;  %v2347_v20 = vld [vmem:[#allocation13 + $0xe8] sm:$0xff] }
 0x819   : > { %6697 = vpow2.f32 %v4442_v29  ;;  %v5909_v29 = vpack.c.bf16 %v2346_v15, %v2343_v10  ;;  %v8068_v10 = vpack.c.bf16 %v2381_v9, %v2378_v4  ;;  %v2385_v15 = vld [vmem:[#allocation14 + $0x98] sm:$0xff] }
 0x81a   : > { %v2401_v4 = vld [vmem:[#allocation14 + $0x118] sm:$0xff] }
 0x822   : > { %v6696_v31 = vpop.eup %6695 }
 0x823   : > { %v2133_v37 = vadd.f32 1.0, %v6696_v31  ;;  %v6698_v40 = vpop.eup %6697  ;;  %v5941_v31 = vpack.c.bf16 %v2347_v20, %v2344_v19  ;;  %v2388_v19 = vld [vmem:[#allocation14 + $0xb0] sm:$0xff] }
 0x824   : > { %v2140_v43 = vadd.f32 1.0, %v6698_v40  ;;  %v2345_v40 = vld [vmem:[#allocation13 + $0xd8] sm:$0xff]  ;;  %v8072_v20 = vpack.c.bf16 %v2388_v19, %v2385_v15  ;;  %v2404_v15 = vld [vmem:[#allocation14 + $0x130] sm:$0xff]  ;;  %v2407_v19 = vld [vmem:[#allocation14 + $0x148] sm:$0xff] }
 0x825   : > { %6699 = vrcp.f32 %v2133_v37  ;;  %v2342_v37 = vld [vmem:[#allocation13 + $0xc0] sm:$0xff] }
 0x826   : > { %6701 = vrcp.f32 %v2140_v43  ;;  %v2349_v43 = vld [vmem:[#allocation13 + $0xf8] sm:$0xff] }
 0x82f   : > { %v6700_v50 = vpop.eup %6699 }
 0x830   : > { %v2143_v51 = vmul.f32 %v6700_v50, %v2126_v47  ;;  %v6702_v60 = vpop.eup %6701  ;;  %v2352_v47 = vld [vmem:[#allocation13 + $0x110] sm:$0xff]  ;;  %v2350_v50 = vld [vmem:[#allocation13 + $0x100] sm:$0xff] }
 0x831   : > { %v2146_v18 = vsub.f32 1.0, %v6702_v60  ;;  %v2148_v13 = vmul.f32 %v6702_v60, %v7985_v58  ;;  %v5913_v60 = vpack.c.bf16 %v2352_v47, %v2349_v43  ;;  %v2390_v47 = vld [vmem:[#allocation14 + $0xc0] sm:$0xff] }
 0x832   : > { %v2144_v57 = vadd.f32 %v2143_v51, %v7748_v33  ;;  %v2331_v33 = vld [vmem:[#allocation13 + $0x68] sm:$0xff]  ;;  %v2353_v51 = vld [vmem:[#allocation13 + $0x118] sm:$0xff] }
 0x833   : > { %v5901_v24 = vpack.c.bf16 %v2334_v32, %v2331_v33  ;;  %v2362_v33 = vld [vmem:[#allocation13 + $0x160] sm:$0xff] }
 0x834   : > { %6703 = vtanh.f32 %v2144_v57  ;;  %v5911_v57 = vpack.c.bf16 %v2345_v40, %v2342_v37  ;;  %v2391_v37 = vld [vmem:[#allocation14 + $0xc8] sm:$0xff]  ;;  %v2394_v40 = vld [vmem:[#allocation14 + $0xe0] sm:$0xff] }
 0x835   : > { %v8078_v43 = vpack.c.bf16 %v2394_v40, %v2391_v37  ;;  %v2413_v37 = vld [vmem:[#allocation14 + $0x178] sm:$0xff] }
 0x83e   : > { %v6704_v1 = vpop.eup %6703 }
 0x83f   : > { %v2147_v14 = vmul.f32 %v6704_v1, %v2146_v18  ;;  %v5945_v18 = vpack.c.bf16 %v2353_v51, %v2350_v50  ;;  %v2355_v1 = vld [vmem:[#allocation13 + $0x128] sm:$0xff]  ;;  %v2393_v50 = vld [vmem:[#allocation14 + $0xd8] sm:$0xff] }
 0x840   : > { %v5917_v21 = vpack.c.bf16 %v2358_v22, %v2355_v1  ;;  %v8080_v51 = vpack.c.bf16 %v2393_v50, %v2390_v47  ;;  %v2403_v22 = vld [vmem:[#allocation14 + $0x128] sm:$0xff] }
 0x841   : > { %v8027_v34 = vadd.f32 %v2148_v13, %v2147_v14  ;;  %v2359_v14 = vld [vmem:[#allocation13 + $0x148] sm:$0xff]  ;;  %v5915_v13 = vpack.c.bf16 %v2351_v63, %v2348_v59  ;;  %v2396_v59 = vld [vmem:[#allocation14 + $0xf0] sm:$0xff] }
 0x842   : > { %v5949_v26 = vpack.c.bf16 %v2359_v14, %v2356_v12  ;;  %v2399_v63 = vld [vmem:[#allocation14 + $0x108] sm:$0xff]  ;;  %v2406_v12 = vld [vmem:[#allocation14 + $0x140] sm:$0xff] }
 0x843   : > { %2219 = vmatmul.mubr.f32.vlgmr.msra.gmra.mrb[14].mxu0 %v8027_v34  ;;  %5087 = vmatmul.mubr.f32.vlgmr.msra.gmra.mrb[22].mxu1 %v8027_v34  ;;  %v8086_v1 = vpack.c.bf16 %v2399_v63, %v2396_v59  ;;  %v2402_v14 = vld [vmem:[#allocation14 + $0x120] sm:$0xff] }
 0x844   : > { %5896 = vmatpush1.bf16.msra.mxu0 %v5895_v16  ;;  %5928 = vmatpush3.bf16.msra.mxu1 %v5925_v62  ;;  %v5937_v62 = vpack.c.bf16 %v2341_v52, %v2338_v44  ;;  %v2354_v16 = vld [vmem:[#allocation13 + $0x120] sm:$0xff]  ;;  %v2375_v44 = vld [vmem:[#allocation14 + $0x48] sm:$0xff] }
 0x845   : > { %5121 = vmatprep.mubr.f32.mxu1 %v7765_v46  ;;  %5898 = vmatprep.subr.bf16.mxu0 %v5897_v35  ;;  %v2357_v35 = vld [vmem:[#allocation13 + $0x138] sm:$0xff]  ;;  %v8062_v52 = vpack.c.bf16 %v2375_v44, %v2372_v41  ;;  %v2392_v41 = vld [vmem:[#allocation14 + $0xd0] sm:$0xff]  ;;  %v2395_v44 = vld [vmem:[#allocation14 + $0xe8] sm:$0xff] }
 0x846   : > { %5930 = vmatprep.subr.bf16.mxu1 %v5929_v42  ;;  %2504 = vmatprep.mubr.f32.mxu0 %v7155_v0  ;;  %v5919_v32 = vpack.c.bf16 %v2357_v35, %v2354_v16  ;;  %v2371_v16 = vld [vmem:[#allocation14 + $0x28] sm:$0xff] }
 0x848   : > { %5900 = vmatpush1.bf16.msra.mxu0 %v5899_v11  ;;  %5932 = vmatpush3.bf16.msra.mxu1 %v5929_v42  ;;  %v2365_v42 = vld [vmem:[#allocation13 + $0x178] sm:$0xff]  ;;  %v2360_v11 = vld [vmem:[#allocation13 + $0x150] sm:$0xff] }
 0x849   : > { %5902 = vmatprep.subr.bf16.mxu0 %v5901_v24  ;;  %5934 = vmatprep.subr.bf16.mxu1 %v5933_v48  ;;  %v5953_v6 = vpack.c.bf16 %v2365_v42, %v2362_v33  ;;  %v2363_v24 = vld [vmem:[#allocation13 + $0x168] sm:$0xff]  ;;  %v2412_v33 = vld [vmem:[#allocation14 + $0x170] sm:$0xff] }
 0x84a   : > { %v8099_v42 = vpack.c.bf16 %v2412_v33, %v2409_v38 }
 0x84c   : > { %5904 = vmatpush1.bf16.msra.mxu0 %v5903_v53  ;;  %5936 = vmatpush3.bf16.msra.mxu1 %v5933_v48  ;;  %v5923_v48 = vpack.c.bf16 %v2363_v24, %v2360_v11  ;;  %v2379_v53 = vld [vmem:[#allocation14 + $0x68] sm:$0xff]  ;;  %v2374_v11 = vld [vmem:[#allocation14 + $0x40] sm:$0xff]  ;;  %v2377_v24 = vld [vmem:[#allocation14 + $0x58] sm:$0xff] }
 0x84d   : > { %5906 = vmatprep.subr.bf16.mxu0 %v5905_v61  ;;  %5938 = vmatprep.subr.bf16.mxu1 %v5937_v62  ;;  %v2382_v61 = vld [vmem:[#allocation14 + $0x80] sm:$0xff] }
 0x850   : > { %5908 = vmatpush1.bf16.msra.mxu0 %v5907_v25  ;;  %5940 = vmatpush3.bf16.msra.mxu1 %v5937_v62  ;;  %v8066_v62 = vpack.c.bf16 %v2382_v61, %v2379_v53  ;;  %v2384_v25 = vld [vmem:[#allocation14 + $0x90] sm:$0xff]  ;;  %v8118_v53 = vpack.c.bf16 %v2395_v44, %v2392_v41  ;;  %v2398_v61 = vld [vmem:[#allocation14 + $0x100] sm:$0xff] }
 0x851   : > { %5910 = vmatprep.subr.bf16.mxu0 %v5909_v29  ;;  %5942 = vmatprep.subr.bf16.mxu1 %v5941_v31  ;;  %v2387_v29 = vld [vmem:[#allocation14 + $0xa8] sm:$0xff]  ;;  %v8122_v9 = vpack.c.bf16 %v2401_v4, %v2398_v61  ;;  %v2414_v4 = vld [vmem:[%s8712_s12] sm:$0x7] }
 0x852   : > { %v8158_v61 = vld [vmem:[%s7548_s25 + $0x8] sm:$0xff] }
 0x854   : > { %5912 = vmatpush1.bf16.msra.mxu0 %v5911_v57  ;;  %5944 = vmatpush3.bf16.msra.mxu1 %v5941_v31  ;;  %v8074_v31 = vpack.c.bf16 %v2387_v29, %v2384_v25  ;;  %v2397_v57 = vld [vmem:[#allocation14 + $0xf8] sm:$0xff]  ;;  %v8126_v25 = vpack.c.bf16 %v2407_v19, %v2404_v15  ;;  %v2410_v29 = vld [vmem:[#allocation14 + $0x160] sm:$0xff]  ;;  %v2428_v15 = vrot.slane %v2414_v4, %v7739_v23 }
 0x855   : > { %5914 = vmatprep.subr.bf16.mxu0 %v5913_v60  ;;  %5946 = vmatprep.subr.bf16.mxu1 %v5945_v18  ;;  %v2400_v60 = vld [vmem:[#allocation14 + $0x110] sm:$0xff]  ;;  %v8130_v40 = vpack.c.bf16 %v2413_v37, %v2410_v29  ;;  %v2432_v37 = vrot.slane %v2414_v4, %v7746_v30 }
 0x858   : > { %5916 = vmatpush1.bf16.msra.mxu0 %v5915_v13  ;;  %5948 = vmatpush3.bf16.msra.mxu1 %v5945_v18  ;;  %v8084_v18 = vpack.c.bf16 %v2400_v60, %v2397_v57  ;;  %v8090_v13 = vpack.c.bf16 %v2406_v12, %v2403_v22 }
 0x859   : > { %5918 = vmatprep.subr.bf16.mxu0 %v5917_v21  ;;  %5950 = vmatprep.subr.bf16.mxu1 %v5949_v26  ;;  %v2405_v21 = vld [vmem:[#allocation14 + $0x138] sm:$0xff] }
 0x85a   : > { %v8092_v35 = vpack.c.bf16 %v2405_v21, %v2402_v14 }
 0x85c   : > { %5920 = vmatpush1.bf16.msra.mxu0 %v5919_v32  ;;  %5952 = vmatpush3.bf16.msra.mxu1 %v5949_v26  ;;  %v2368_v26 = vld [vmem:[#allocation14 + $0x10] sm:$0xff] }
 0x85d   : > { %5922 = vmatprep.subr.bf16.mxu0 %v5921_v56  ;;  %5954 = vmatprep.subr.bf16.mxu1 %v5953_v6  ;;  %v8094_v8 = vpack.c.bf16 %v2371_v16, %v2368_v26  ;;  %v2408_v32 = vld [vmem:[#allocation14 + $0x150] sm:$0xff]  ;;  %v2411_v56 = vld [vmem:[#allocation14 + $0x168] sm:$0xff] }
 0x860   : > { %5924 = vmatpush1.bf16.msra.mxu0 %v5923_v48  ;;  %5956 = vmatpush3.bf16.msra.mxu1 %v5953_v6  ;;  %v8102_v6 = vpack.c.bf16 %v2411_v56, %v2408_v32  ;;  %v8105_v48 = vpack.c.bf16 %v2377_v24, %v2374_v11 }
 0x861   : > { %5989 = vmatprep.subr.bf16.mxu1 %v7156_v5 }
 0x863   : > { %2505 = vmatmul.mubr.f32.vlgmr.msra.gmra.mrb[16].mxu0 %v7765_v46  ;;  %5122 = vmatmul.mubr.f32.vlgmr.msra.gmra.mrb[24].mxu1 %v7809_v36  ;;  %v2367_v46 = vld [vmem:[#allocation14 + $0x8] sm:$0xff] }
 0x864   : > { %5124 = vmatprep.mubr.f32.mxu1 %v7853_v28  ;;  %2510 = vmatprep.mubr.f32.mxu0 %v7155_v0 }
 0x865   : > { %5991 = vmatpush3.bf16.msra.mxu1 %v8094_v8 }
 0x866   : > { %5992 = vmatprep.subr.bf16.mxu1 %v7156_v5 }
 0x867   : > { %2511 = vmatmul.mubr.f32.gmra.mrb[18].mxu0 %v7809_v36  ;;  %5125 = vmatmul.mubr.f32.gmra.mrb[26].mxu1 %v7897_v17  ;;  %v2370_v36 = vld [vmem:[#allocation14 + $0x20] sm:$0xff] }
 0x868   : > { %5127 = vmatprep.mubr.f32.mxu1 %v7941_v7  ;;  %2516 = vmatprep.mubr.f32.mxu0 %v7155_v0 }
 0x869   : > { %5994 = vmatpush3.bf16.msra.mxu1 %v8105_v48 }
 0x86a   : > { %5995 = vmatprep.subr.bf16.mxu1 %v7156_v5 }
 0x86b   : > { %2517 = vmatmul.mubr.f32.gmra.mrb[20].mxu0 %v7853_v28  ;;  %5128 = vmatmul.mubr.f32.gmra.mrb[28].mxu1 %v7985_v58  ;;  %v8054_v28 = vpack.c.bf16 %v2370_v36, %v2367_v46  ;;  %v2380_v46 = vld [vmem:[#allocation14 + $0x70] sm:$0xff]  ;;  %v2383_v36 = vld [vmem:[#allocation14 + $0x88] sm:$0xff] }
 0x86c   : > { %5130 = vmatprep.mubr.f32.mxu1 %v8027_v34  ;;  %2522 = vmatprep.mubr.f32.mxu0 %v7155_v0 }
 0x86d   : > { %5958 = vmatprep.subr.bf16.mxu0 %v8054_v28 }
 0x86f   : > { %2523 = vmatmul.mubr.f32.gmra.mrb[22].mxu0 %v7897_v17  ;;  %v2369_v17 = vld [vmem:[#allocation14 + $0x18] sm:$0xff] }
 0x870   : > { %2528 = vmatprep.mubr.f32.mxu0 %v7155_v0  ;;  %v8056_v54 = vpack.c.bf16 %v2369_v17, %v2366_v49  ;;  %v2386_v49 = vld [vmem:[#allocation14 + $0xa0] sm:$0xff]  ;;  %v8111_v17 = vpack.c.bf16 %v2383_v36, %v2380_v46 }
 0x872   : > { %5960 = vmatpush1.bf16.msra.mxu0 %v8056_v54  ;;  %5997 = vmatpush3.bf16.msra.mxu1 %v8111_v17 }
 0x873   : > { %2529 = vmatmul.mubr.f32.gmra.mrb[24].mxu0 %v7941_v7  ;;  %v2373_v7 = vld [vmem:[#allocation14 + $0x38] sm:$0xff]  ;;  %5998 = vmatprep.subr.bf16.mxu1 %v7156_v5 }
 0x874   : > { %2534 = vmatprep.mubr.f32.mxu0 %v7155_v0 }
 0x877   : > { %2535 = vmatmul.mubr.f32.gmra.mrb[26].mxu0 %v7985_v58  ;;  %v2376_v58 = vld [vmem:[#allocation14 + $0x50] sm:$0xff] }
 0x878   : > { %2540 = vmatprep.mubr.f32.mxu0 %v7155_v0  ;;  %v8060_v55 = vpack.c.bf16 %v2376_v58, %v2373_v7  ;;  %v2389_v7 = vld [vmem:[#allocation14 + $0xb8] sm:$0xff] }
 0x879   : > { %v8114_v58 = vpack.c.bf16 %v2389_v7, %v2386_v49 }
 0x87a   : > { %5962 = vmatprep.subr.bf16.mxu0 %v8060_v55 }
 0x87b   : > { %2541 = vmatmul.mubr.f32.gmra.mrb[28].mxu0 %v8027_v34  ;;  %6000 = vmatpush3.bf16.msra.mxu1 %v8114_v58 }
 0x87c   : > { %2546 = vmatprep.mubr.f32.mxu0 %v7155_v0  ;;  %5964 = vmatpush1.bf16.msra.mxu0 %v8062_v52 }
 0x87d   : > { %5966 = vmatprep.subr.bf16.mxu0 %v8066_v62  ;;  %6001 = vmatprep.subr.bf16.mxu1 %v7156_v5 }
 0x87f   : > { %6003 = vmatpush3.bf16.msra.mxu1 %v8118_v53 }
 0x880   : > { %5968 = vmatpush1.bf16.msra.mxu0 %v8068_v10  ;;  %6004 = vmatprep.subr.bf16.mxu1 %v7156_v5 }
 0x881   : > { %5970 = vmatprep.subr.bf16.mxu0 %v8072_v20 }
 0x883   : > { %6006 = vmatpush3.bf16.msra.mxu1 %v8122_v9 }
 0x884   : > { %5972 = vmatpush1.bf16.msra.mxu0 %v8074_v31  ;;  %6007 = vmatprep.subr.bf16.mxu1 %v7156_v5 }
 0x885   : > { %5974 = vmatprep.subr.bf16.mxu0 %v8078_v43 }
 0x887   : > { %6009 = vmatpush3.bf16.msra.mxu1 %v8126_v25 }
 0x888   : > { %5976 = vmatpush1.bf16.msra.mxu0 %v8080_v51  ;;  %6010 = vmatprep.subr.bf16.mxu1 %v7156_v5 }
 0x889   : > { %5978 = vmatprep.subr.bf16.mxu0 %v8084_v18 }
 0x88b   : > { %6012 = vmatpush3.bf16.msra.mxu1 %v8130_v40 }
 0x88c   : > { %5980 = vmatpush1.bf16.msra.mxu0 %v8086_v1  ;;  %6045 = vmatprep.subr.bf16.mxu1 %v7156_v5 }
 0x88d   : > { %5982 = vmatprep.subr.bf16.mxu0 %v8090_v13 }
 0x890   : > { %5984 = vmatpush1.bf16.msra.mxu0 %v8092_v35 }
 0x891   : > { %5986 = vmatprep.subr.bf16.mxu0 %v8099_v42 }
 0x894   : > { %5988 = vmatpush1.bf16.msra.mxu0 %v8102_v6 }
 0x895   : > { %6014 = vmatprep.subr.bf16.mxu0 %v8054_v28 }
 0x916   : > { %v2220_v47 = vpop.f32.mrb[14].mxu0  ;;  %v2291_v50 = vpop.f32.mrb[22].mxu1 }
 0x917   : > { %v6434_v57 = vadd.f32 %v7754_v39, %v2220_v47  ;;  %v2222_v60 = vpop.f32.mrb[15].mxu0  ;;  %v5088_v59 = vpop.f32.mrb[23].mxu1  ;;  %v2292_v38 = vadd.f32 %v2291_v50, %v7761_v3 }
 0x918   : > { %v6436_v22 = vadd.f32 %v7756_v45, %v2222_v60 }
 0x919   : > { %v4443_v63 = vmul.f32 -1.442695, %v6434_v57 }
 0x91a   : > { %v4444_v12 = vmul.f32 -1.442695, %v6436_v22 }
 0x91b   : > { %6705 = vpow2.f32 %v4443_v63 }
 0x91c   : > { %6707 = vpow2.f32 %v4444_v12 }
 0x925   : > { %v6706_v14 = vpop.eup %6705 }
 0x926   : > { %v2299_v21 = vadd.f32 1.0, %v6706_v14  ;;  %v6708_v26 = vpop.eup %6707 }
 0x927   : > { %v2306_v16 = vadd.f32 1.0, %v6708_v26 }
 0x928   : > { %6709 = vrcp.f32 %v2299_v21 }
 0x929   : > { %6711 = vrcp.f32 %v2306_v16 }
 0x932   : > { %v6710_v33 = vpop.eup %6709 }
 0x933   : > { %v2309_v32 = vmul.f32 %v6710_v33, %v2292_v38  ;;  %v6712_v46 = vpop.eup %6711 }
 0x934   : > { %v2312_v3 = vsub.f32 1.0, %v6712_v46 }
 0x935   : > { %v2310_v39 = vadd.f32 %v2309_v32, %v7744_v27  ;;  %v2314_v27 = vmul.f32 %v6712_v46, %v8027_v34  ;;  %v2415_v34 = vld [vmem:[%s8711_s0] sm:$0x7]  ;;  %v8223_v32 = vrot.slane %v2414_v4, %v7723_v2  ;;  %s7017_s0 = scalar_lea.vmem %s7016_s22, 256 }
 0x936   : > { %v8139_v56 = vpop.f32.mrb[24].mxu1  ;;  %v2686_v19 = vrot.slane %v2415_v34, %v7739_v23  ;;  %v2690_v47 = vrot.slane %v2415_v34, %v7746_v30  ;;  %v8220_v38 = vrot.slane %v2415_v34, %v7723_v2  ;;  %p7019_p11 = scmp.lt.s32.totalorder %s7017_s0, %s7011_s8 }
 0x937   : > { %6713 = vtanh.f32 %v2310_v39  ;;  %v8141_v45 = vpop.f32.mrb[25].mxu1 }
 0x938   : > { %v8213_v57 = vadd.f32 %v2686_v19, %v2428_v15  ;;  %v8215_v59 = vadd.f32 %v2690_v47, %v2432_v37  ;;  %p7020_p12 = por %p7019_p11, %p7018_p5 }
 0x93a   : > { %v8143_v11 = vpop.f32.mrb[26].mxu1  ;;  %p7021_p6 = pnand %p7020_p12, %p7014_p3 }
 0x93b   : > { %v8145_v24 = vpop.f32.mrb[27].mxu1 }
 0x93e   : > { %v8147_v36 = vpop.f32.mrb[28].mxu1 }
 0x93f   : > { %v8149_v49 = vpop.f32.mrb[29].mxu1 }
 0x941   : > { %v6714_v7 = vpop.eup %6713 }
 0x942   : > { %v2313_v41 = vmul.f32 %v6714_v7, %v2312_v3  ;;  %v2620_v7 = vadd.f32 %v8141_v45, %v8223_v32 }
 0x944   : > { %v2315_v44 = vadd.f32 %v2314_v27, %v2313_v41 }
 0x946   : > { %2547 = vmatmul.mubr.f32.gmra.mrb[30].mxu0 %v2315_v44  ;;  %5131 = vmatmul.mubr.f32.gmra.mrb[30].mxu1 %v2315_v44  ;;  %4168 = vst [vmem:[%s8153_s20] sm:$0xff] %v2315_v44 }
 0x947   : > { %2767 = vmatprep.mubr.f32.mxu0 %v7155_v0  ;;  %5165 = vmatprep.mubr.msk.f32.mxu1 %vm7157_vm1, %v7155_v0 }
 0x94a   : > { %2768 = vmatmul.mubr.f32.vlgmr.msra.gmra.mrb[16].mxu0 %v8158_v61  ;;  %5166 = vmatmul.mubr.f32.vlgmr.msra.gmra.mrb[32].mxu1 %v8158_v61 }
 0x94b   : > { %6016 = vmatpush1.bf16.msra.mxu0 %v8056_v54  ;;  %6047 = vmatpush3.bf16.msra.mxu1 %v8094_v8 }
 0x94c   : > { %6018 = vmatprep.subr.bf16.mxu0 %v8060_v55  ;;  %6048 = vmatprep.subr.bf16.mxu1 %v7156_v5 }
 0x94d   : > { %2933 = vmatprep.mubr.f32.mxu0 %v7155_v0  ;;  %5200 = vmatprep.mubr.msk.f32.mxu1 %vm7157_vm1, %v7155_v0 }
 0x94f   : > { %6020 = vmatpush1.bf16.msra.mxu0 %v8062_v52  ;;  %6050 = vmatpush3.bf16.msra.mxu1 %v8105_v48 }
 0x950   : > { %6022 = vmatprep.subr.bf16.mxu0 %v8066_v62  ;;  %6051 = vmatprep.subr.bf16.mxu1 %v7156_v5 }
 0x953   : > { %6024 = vmatpush1.bf16.msra.mxu0 %v8068_v10  ;;  %6053 = vmatpush3.bf16.msra.mxu1 %v8111_v17 }
 0x954   : > { %6026 = vmatprep.subr.bf16.mxu0 %v8072_v20  ;;  %6054 = vmatprep.subr.bf16.mxu1 %v7156_v5 }
 0x957   : > { %6028 = vmatpush1.bf16.msra.mxu0 %v8074_v31  ;;  %6056 = vmatpush3.bf16.msra.mxu1 %v8114_v58 }
 0x958   : > { %6030 = vmatprep.subr.bf16.mxu0 %v8078_v43  ;;  %6057 = vmatprep.subr.bf16.mxu1 %v7156_v5 }
 0x95b   : > { %6032 = vmatpush1.bf16.msra.mxu0 %v8080_v51  ;;  %6059 = vmatpush3.bf16.msra.mxu1 %v8118_v53 }
 0x95c   : > { %6034 = vmatprep.subr.bf16.mxu0 %v8084_v18  ;;  %6060 = vmatprep.subr.bf16.mxu1 %v7156_v5 }
 0x95f   : > { %6036 = vmatpush1.bf16.msra.mxu0 %v8086_v1  ;;  %6062 = vmatpush3.bf16.msra.mxu1 %v8122_v9 }
 0x960   : > { %6038 = vmatprep.subr.bf16.mxu0 %v8090_v13  ;;  %6063 = vmatprep.subr.bf16.mxu1 %v7156_v5 }
 0x963   : > { %6040 = vmatpush1.bf16.msra.mxu0 %v8092_v35  ;;  %6065 = vmatpush3.bf16.msra.mxu1 %v8126_v25 }
 0x964   : > { %6042 = vmatprep.subr.bf16.mxu0 %v8099_v42  ;;  %6066 = vmatprep.subr.bf16.mxu1 %v7156_v5 }
 0x967   : > { %6044 = vmatpush1.bf16.msra.mxu0 %v8102_v6  ;;  %6068 = vmatpush3.bf16.msra.mxu1 %v8130_v40 }
 0x968   : > { %6070 = vmatprep.subr.bf16.mxu0 %v8054_v28  ;;  %6101 = vmatprep.subr.bf16.mxu1 %v7156_v5 }
 0xa19   : > { %v8207_v29 = vpop.f32.mrb[30].mxu1 }
 0xa1a   : > { %v8211_v50 = vpop.f32.mrb[31].mxu1 }
 0xa1d   : > { %v2769_v60 = vpop.f32.mrb[16].mxu0  ;;  %v2840_v63 = vpop.f32.mrb[32].mxu1 }
 0xa1e   : > { %v6438_v22 = vadd.f32 %v8213_v57, %v2769_v60  ;;  %v2771_v12 = vpop.f32.mrb[17].mxu0  ;;  %v5167_v14 = vpop.f32.mrb[33].mxu1  ;;  %v2841_v46 = vadd.f32 %v2840_v63, %v8220_v38 }
 0xa1f   : > { %v6440_v23 = vadd.f32 %v8215_v59, %v2771_v12 }
 0xa20   : > { %v4445_v21 = vmul.f32 -1.442695, %v6438_v22 }
 0xa21   : > { %v4446_v26 = vmul.f32 -1.442695, %v6440_v23 }
 0xa22   : > { %6715 = vpow2.f32 %v4445_v21 }
 0xa23   : > { %6717 = vpow2.f32 %v4446_v26 }
 0xa2c   : > { %v6716_v16 = vpop.eup %6715 }
 0xa2d   : > { %v2848_v30 = vadd.f32 1.0, %v6716_v16  ;;  %v6718_v33 = vpop.eup %6717 }
 0xa2e   : > { %v2855_v39 = vadd.f32 1.0, %v6718_v33  ;;  %v2625_v33 = vadd.f32 %v8139_v56, %v8223_v32 }
 0xa2f   : > { %6719 = vrcp.f32 %v2848_v30 }
 0xa30   : > { %6721 = vrcp.f32 %v2855_v39 }
 0xa39   : > { %v6720_v3 = vpop.eup %6719 }
 0xa3a   : > { %v2858_v41 = vmul.f32 %v6720_v3, %v2841_v46  ;;  %v6722_v44 = vpop.eup %6721 }
 0xa3b   : > { %v2861_v15 = vsub.f32 1.0, %v6722_v44  ;;  %v2863_v37 = vmul.f32 %v6722_v44, %v8158_v61 }
 0xa3c   : > { %v2859_v27 = vadd.f32 %v2858_v41, %v2620_v7 }
 0xa3e   : > { %6723 = vtanh.f32 %v2859_v27 }
 0xa48   : > { %v6724_v19 = vpop.eup %6723 }
 0xa49   : > { %v2862_v34 = vmul.f32 %v6724_v19, %v2861_v15 }
 0xa4b   : > { %v8229_v47 = vadd.f32 %v2863_v37, %v2862_v34 }
 0xa4d   : > { %4037 = vadd.xlane.f32.xlu0 %v8229_v47  ;;  %2934 = vmatmul.mubr.f32.vlgmr.msra.gmra.mrb[18].mxu0 %v8229_v47 }
 0xa4e   : > { %5201 = vmatmul.mubr.f32.vlgmr.msra.gmra.mrb[34].mxu1 %v8229_v47  ;;  %6072 = vmatpush1.bf16.msra.mxu0 %v8056_v54 }
 0xa4f   : > { %6103 = vmatpush3.bf16.msra.mxu1 %v8094_v8  ;;  %6074 = vmatprep.subr.bf16.mxu0 %v8060_v55 }
 0xa50   : > { %6104 = vmatprep.subr.bf16.mxu1 %v7156_v5  ;;  %3099 = vmatprep.mubr.f32.mxu0 %v7155_v0 }
 0xa51   : > { %5235 = vmatprep.mubr.msk.f32.mxu1 %vm7157_vm1, %v7155_v0 }
 0xa52   : > { %6076 = vmatpush1.bf16.msra.mxu0 %v8062_v52 }
 0xa53   : > { %6106 = vmatpush3.bf16.msra.mxu1 %v8105_v48  ;;  %6078 = vmatprep.subr.bf16.mxu0 %v8066_v62 }
 0xa54   : > { %6107 = vmatprep.subr.bf16.mxu1 %v7156_v5 }
 0xa56   : > { %6080 = vmatpush1.bf16.msra.mxu0 %v8068_v10 }
 0xa57   : > { %6109 = vmatpush3.bf16.msra.mxu1 %v8111_v17  ;;  %6082 = vmatprep.subr.bf16.mxu0 %v8072_v20 }
 0xa58   : > { %6110 = vmatprep.subr.bf16.mxu1 %v7156_v5 }
 0xa5a   : > { %6084 = vmatpush1.bf16.msra.mxu0 %v8074_v31 }
 0xa5b   : > { %6112 = vmatpush3.bf16.msra.mxu1 %v8114_v58  ;;  %6086 = vmatprep.subr.bf16.mxu0 %v8078_v43 }
 0xa5c   : > { %6113 = vmatprep.subr.bf16.mxu1 %v7156_v5 }
 0xa5e   : > { %6088 = vmatpush1.bf16.msra.mxu0 %v8080_v51 }
 0xa5f   : > { %6115 = vmatpush3.bf16.msra.mxu1 %v8118_v53  ;;  %6090 = vmatprep.subr.bf16.mxu0 %v8084_v18 }
 0xa60   : > { %6116 = vmatprep.subr.bf16.mxu1 %v7156_v5 }
 0xa62   : > { %6092 = vmatpush1.bf16.msra.mxu0 %v8086_v1 }
 0xa63   : > { %6118 = vmatpush3.bf16.msra.mxu1 %v8122_v9  ;;  %6094 = vmatprep.subr.bf16.mxu0 %v8090_v13 }
 0xa64   : > { %6119 = vmatprep.subr.bf16.mxu1 %v7156_v5 }
 0xa66   : > { %6096 = vmatpush1.bf16.msra.mxu0 %v8092_v35 }
 0xa67   : > { %6121 = vmatpush3.bf16.msra.mxu1 %v8126_v25  ;;  %6098 = vmatprep.subr.bf16.mxu0 %v8099_v42 }
 0xa68   : > { %6122 = vmatprep.subr.bf16.mxu1 %v7156_v5 }
 0xa6a   : > { %6100 = vmatpush1.bf16.msra.mxu0 %v8102_v6 }
 0xa6b   : > { %6124 = vmatpush3.bf16.msra.mxu1 %v8130_v40  ;;  %6126 = vmatprep.subr.bf16.mxu0 %v8054_v28 }
 0xa6c   : > { %6157 = vmatprep.subr.bf16.mxu1 %v7156_v5 }
 0xb20   : > { %v2935_v2 = vpop.f32.mrb[18].mxu0 }
 0xb21   : > { %v6442_v45 = vadd.f32 %v8213_v57, %v2935_v2  ;;  %v3006_v61 = vpop.f32.mrb[34].mxu1  ;;  %v2937_v4 = vpop.f32.mrb[19].mxu0 }
 0xb22   : > { %v5202_v60 = vpop.f32.mrb[35].mxu1  ;;  %v6444_v22 = vadd.f32 %v8215_v59, %v2937_v4  ;;  %v3007_v16 = vadd.f32 %v3006_v61, %v8220_v38 }
 0xb23   : > { %v4447_v63 = vmul.f32 -1.442695, %v6442_v45 }
 0xb24   : > { %v4448_v12 = vmul.f32 -1.442695, %v6444_v22 }
 0xb25   : > { %6725 = vpow2.f32 %v4447_v63 }
 0xb26   : > { %6727 = vpow2.f32 %v4448_v12 }
 0xb2f   : > { %v6726_v14 = vpop.eup %6725 }
 0xb30   : > { %v3014_v21 = vadd.f32 1.0, %v6726_v14  ;;  %v6728_v23 = vpop.eup %6727 }
 0xb31   : > { %v3021_v26 = vadd.f32 1.0, %v6728_v23  ;;  %v2630_v23 = vadd.f32 %v8145_v24, %v8223_v32 }
 0xb32   : > { %6729 = vrcp.f32 %v3014_v21 }
 0xb33   : > { %6731 = vrcp.f32 %v3021_v26 }
 0xb3c   : > { %v6730_v30 = vpop.eup %6729 }
 0xb3d   : > { %v3024_v39 = vmul.f32 %v6730_v30, %v3007_v16  ;;  %v6732_v3 = vpop.eup %6731 }
 0xb3e   : > { %v3027_v7 = vsub.f32 1.0, %v6732_v3  ;;  %v3029_v44 = vmul.f32 %v6732_v3, %v8229_v47 }
 0xb3f   : > { %v3025_v46 = vadd.f32 %v3024_v39, %v2625_v33 }
 0xb41   : > { %6733 = vtanh.f32 %v3025_v46 }
 0xb4b   : > { %v6734_v41 = vpop.eup %6733 }
 0xb4c   : > { %v3028_v27 = vmul.f32 %v6734_v41, %v3027_v7 }
 0xb4e   : > { %v8275_v15 = vadd.f32 %v3029_v44, %v3028_v27 }
 0xb50   : > { %4039 = vadd.xlane.f32.xlu0 %v8275_v15  ;;  %3100 = vmatmul.mubr.f32.vlgmr.msra.gmra.mrb[20].mxu0 %v8275_v15 }
 0xb51   : > { %5236 = vmatmul.mubr.f32.vlgmr.msra.gmra.mrb[36].mxu1 %v8275_v15  ;;  %6128 = vmatpush1.bf16.msra.mxu0 %v8056_v54 }
 0xb52   : > { %6159 = vmatpush3.bf16.msra.mxu1 %v8094_v8  ;;  %6130 = vmatprep.subr.bf16.mxu0 %v8060_v55 }
 0xb53   : > { %6160 = vmatprep.subr.bf16.mxu1 %v7156_v5  ;;  %3265 = vmatprep.mubr.f32.mxu0 %v7155_v0 }
 0xb54   : > { %5270 = vmatprep.mubr.msk.f32.mxu1 %vm7157_vm1, %v7155_v0 }
 0xb55   : > { %6132 = vmatpush1.bf16.msra.mxu0 %v8062_v52 }
 0xb56   : > { %6162 = vmatpush3.bf16.msra.mxu1 %v8105_v48  ;;  %6134 = vmatprep.subr.bf16.mxu0 %v8066_v62 }
 0xb57   : > { %6163 = vmatprep.subr.bf16.mxu1 %v7156_v5 }
 0xb59   : > { %6136 = vmatpush1.bf16.msra.mxu0 %v8068_v10 }
 0xb5a   : > { %6165 = vmatpush3.bf16.msra.mxu1 %v8111_v17  ;;  %6138 = vmatprep.subr.bf16.mxu0 %v8072_v20 }
 0xb5b   : > { %6166 = vmatprep.subr.bf16.mxu1 %v7156_v5 }
 0xb5d   : > { %6140 = vmatpush1.bf16.msra.mxu0 %v8074_v31 }
 0xb5e   : > { %6168 = vmatpush3.bf16.msra.mxu1 %v8114_v58  ;;  %6142 = vmatprep.subr.bf16.mxu0 %v8078_v43 }
 0xb5f   : > { %6169 = vmatprep.subr.bf16.mxu1 %v7156_v5 }
 0xb61   : > { %6144 = vmatpush1.bf16.msra.mxu0 %v8080_v51 }
 0xb62   : > { %6171 = vmatpush3.bf16.msra.mxu1 %v8118_v53  ;;  %6146 = vmatprep.subr.bf16.mxu0 %v8084_v18 }
 0xb63   : > { %6172 = vmatprep.subr.bf16.mxu1 %v7156_v5 }
 0xb65   : > { %6148 = vmatpush1.bf16.msra.mxu0 %v8086_v1 }
 0xb66   : > { %6174 = vmatpush3.bf16.msra.mxu1 %v8122_v9  ;;  %6150 = vmatprep.subr.bf16.mxu0 %v8090_v13 }
 0xb67   : > { %6175 = vmatprep.subr.bf16.mxu1 %v7156_v5 }
 0xb69   : > { %6152 = vmatpush1.bf16.msra.mxu0 %v8092_v35 }
 0xb6a   : > { %6177 = vmatpush3.bf16.msra.mxu1 %v8126_v25  ;;  %6154 = vmatprep.subr.bf16.mxu0 %v8099_v42 }
 0xb6b   : > { %6178 = vmatprep.subr.bf16.mxu1 %v7156_v5 }
 0xb6d   : > { %6156 = vmatpush1.bf16.msra.mxu0 %v8102_v6 }
 0xb6e   : > { %6180 = vmatpush3.bf16.msra.mxu1 %v8130_v40  ;;  %6182 = vmatprep.subr.bf16.mxu0 %v8054_v28 }
 0xb6f   : > { %6213 = vmatprep.subr.bf16.mxu1 %v7156_v5 }
 0xc23   : > { %v3101_v56 = vpop.f32.mrb[20].mxu0 }
 0xc24   : > { %v6446_v19 = vadd.f32 %v8213_v57, %v3101_v56  ;;  %v3172_v34 = vpop.f32.mrb[36].mxu1  ;;  %v3103_v37 = vpop.f32.mrb[21].mxu0 }
 0xc25   : > { %v5237_v2 = vpop.f32.mrb[37].mxu1  ;;  %v6448_v61 = vadd.f32 %v8215_v59, %v3103_v37  ;;  %v3173_v14 = vadd.f32 %v3172_v34, %v8220_v38 }
 0xc26   : > { %v4449_v45 = vmul.f32 -1.442695, %v6446_v19 }
 0xc27   : > { %v4450_v4 = vmul.f32 -1.442695, %v6448_v61 }
 0xc28   : > { %6735 = vpow2.f32 %v4449_v45 }
 0xc29   : > { %6737 = vpow2.f32 %v4450_v4 }
 0xc32   : > { %v6736_v60 = vpop.eup %6735 }
 0xc33   : > { %v3180_v63 = vadd.f32 1.0, %v6736_v60  ;;  %v6738_v22 = vpop.eup %6737 }
 0xc34   : > { %v3187_v12 = vadd.f32 1.0, %v6738_v22  ;;  %v2635_v22 = vadd.f32 %v8143_v11, %v8223_v32 }
 0xc35   : > { %6739 = vrcp.f32 %v3180_v63 }
 0xc36   : > { %6741 = vrcp.f32 %v3187_v12 }
 0xc3f   : > { %v6740_v21 = vpop.eup %6739 }
 0xc40   : > { %v3190_v26 = vmul.f32 %v6740_v21, %v3173_v14  ;;  %v6742_v30 = vpop.eup %6741 }
 0xc41   : > { %v3193_v33 = vsub.f32 1.0, %v6742_v30  ;;  %v3195_v3 = vmul.f32 %v6742_v30, %v8275_v15 }
 0xc42   : > { %v3191_v16 = vadd.f32 %v3190_v26, %v2630_v23 }
 0xc44   : > { %6743 = vtanh.f32 %v3191_v16 }
 0xc4e   : > { %v6744_v39 = vpop.eup %6743 }
 0xc4f   : > { %v3194_v46 = vmul.f32 %v6744_v39, %v3193_v33 }
 0xc51   : > { %v8321_v7 = vadd.f32 %v3195_v3, %v3194_v46 }
 0xc53   : > { %4041 = vadd.xlane.f32.xlu1 %v8321_v7  ;;  %3266 = vmatmul.mubr.f32.vlgmr.msra.gmra.mrb[22].mxu0 %v8321_v7 }
 0xc54   : > { %5271 = vmatmul.mubr.f32.vlgmr.msra.gmra.mrb[38].mxu1 %v8321_v7  ;;  %6184 = vmatpush1.bf16.msra.mxu0 %v8056_v54 }
 0xc55   : > { %6215 = vmatpush3.bf16.msra.mxu1 %v8094_v8  ;;  %6186 = vmatprep.subr.bf16.mxu0 %v8060_v55 }
 0xc56   : > { %6216 = vmatprep.subr.bf16.mxu1 %v7156_v5  ;;  %3431 = vmatprep.mubr.f32.mxu0 %v7155_v0 }
 0xc57   : > { %5305 = vmatprep.mubr.msk.f32.mxu1 %vm7157_vm1, %v7155_v0 }
 0xc58   : > { %6188 = vmatpush1.bf16.msra.mxu0 %v8062_v52 }
 0xc59   : > { %6218 = vmatpush3.bf16.msra.mxu1 %v8105_v48  ;;  %6190 = vmatprep.subr.bf16.mxu0 %v8066_v62 }
 0xc5a   : > { %6219 = vmatprep.subr.bf16.mxu1 %v7156_v5 }
 0xc5c   : > { %6192 = vmatpush1.bf16.msra.mxu0 %v8068_v10 }
 0xc5d   : > { %6221 = vmatpush3.bf16.msra.mxu1 %v8111_v17  ;;  %6194 = vmatprep.subr.bf16.mxu0 %v8072_v20 }
 0xc5e   : > { %6222 = vmatprep.subr.bf16.mxu1 %v7156_v5 }
 0xc60   : > { %6196 = vmatpush1.bf16.msra.mxu0 %v8074_v31 }
 0xc61   : > { %6224 = vmatpush3.bf16.msra.mxu1 %v8114_v58  ;;  %6198 = vmatprep.subr.bf16.mxu0 %v8078_v43 }
 0xc62   : > { %6225 = vmatprep.subr.bf16.mxu1 %v7156_v5 }
 0xc64   : > { %6200 = vmatpush1.bf16.msra.mxu0 %v8080_v51 }
 0xc65   : > { %6227 = vmatpush3.bf16.msra.mxu1 %v8118_v53  ;;  %6202 = vmatprep.subr.bf16.mxu0 %v8084_v18 }
 0xc66   : > { %6228 = vmatprep.subr.bf16.mxu1 %v7156_v5 }
 0xc68   : > { %6204 = vmatpush1.bf16.msra.mxu0 %v8086_v1 }
 0xc69   : > { %6230 = vmatpush3.bf16.msra.mxu1 %v8122_v9  ;;  %6206 = vmatprep.subr.bf16.mxu0 %v8090_v13 }
 0xc6a   : > { %6231 = vmatprep.subr.bf16.mxu1 %v7156_v5 }
 0xc6c   : > { %6208 = vmatpush1.bf16.msra.mxu0 %v8092_v35 }
 0xc6d   : > { %6233 = vmatpush3.bf16.msra.mxu1 %v8126_v25  ;;  %6210 = vmatprep.subr.bf16.mxu0 %v8099_v42 }
 0xc6e   : > { %6234 = vmatprep.subr.bf16.mxu1 %v7156_v5 }
 0xc70   : > { %6212 = vmatpush1.bf16.msra.mxu0 %v8102_v6 }
 0xc71   : > { %6236 = vmatpush3.bf16.msra.mxu1 %v8130_v40  ;;  %6238 = vmatprep.subr.bf16.mxu0 %v8054_v28 }
 0xc72   : > { %6269 = vmatprep.subr.bf16.mxu1 %v7156_v5 }
 0xd26   : > { %v3267_v24 = vpop.f32.mrb[22].mxu0 }
 0xd27   : > { %v6450_v41 = vadd.f32 %v8213_v57, %v3267_v24  ;;  %v3338_v27 = vpop.f32.mrb[38].mxu1  ;;  %v3269_v44 = vpop.f32.mrb[23].mxu0 }
 0xd28   : > { %v5272_v56 = vpop.f32.mrb[39].mxu1  ;;  %v6452_v34 = vadd.f32 %v8215_v59, %v3269_v44  ;;  %v3339_v60 = vadd.f32 %v3338_v27, %v8220_v38 }
 0xd29   : > { %v4451_v19 = vmul.f32 -1.442695, %v6450_v41 }
 0xd2a   : > { %v4452_v37 = vmul.f32 -1.442695, %v6452_v34 }
 0xd2b   : > { %6745 = vpow2.f32 %v4451_v19 }
 0xd2c   : > { %6747 = vpow2.f32 %v4452_v37 }
 0xd35   : > { %v6746_v2 = vpop.eup %6745 }
 0xd36   : > { %v3346_v45 = vadd.f32 1.0, %v6746_v2  ;;  %v6748_v61 = vpop.eup %6747 }
 0xd37   : > { %v3353_v4 = vadd.f32 1.0, %v6748_v61  ;;  %v2640_v61 = vadd.f32 %v8149_v49, %v8223_v32 }
 0xd38   : > { %6749 = vrcp.f32 %v3346_v45 }
 0xd39   : > { %6751 = vrcp.f32 %v3353_v4 }
 0xd42   : > { %v6750_v63 = vpop.eup %6749 }
 0xd43   : > { %v3356_v12 = vmul.f32 %v6750_v63, %v3339_v60  ;;  %v6752_v21 = vpop.eup %6751 }
 0xd44   : > { %v3359_v23 = vsub.f32 1.0, %v6752_v21  ;;  %v3361_v30 = vmul.f32 %v6752_v21, %v8321_v7 }
 0xd45   : > { %v3357_v14 = vadd.f32 %v3356_v12, %v2635_v22 }
 0xd47   : > { %6753 = vtanh.f32 %v3357_v14 }
 0xd51   : > { %v6754_v26 = vpop.eup %6753 }
 0xd52   : > { %v3360_v16 = vmul.f32 %v6754_v26, %v3359_v23 }
 0xd54   : > { %v8367_v33 = vadd.f32 %v3361_v30, %v3360_v16 }
 0xd56   : > { %4043 = vadd.xlane.f32.xlu1 %v8367_v33  ;;  %3432 = vmatmul.mubr.f32.vlgmr.msra.gmra.mrb[24].mxu0 %v8367_v33 }
 0xd57   : > { %5306 = vmatmul.mubr.f32.vlgmr.msra.gmra.mrb[40].mxu1 %v8367_v33  ;;  %6240 = vmatpush1.bf16.msra.mxu0 %v8056_v54 }
 0xd58   : > { %6271 = vmatpush3.bf16.msra.mxu1 %v8094_v8  ;;  %6242 = vmatprep.subr.bf16.mxu0 %v8060_v55 }
 0xd59   : > { %6272 = vmatprep.subr.bf16.mxu1 %v7156_v5  ;;  %3597 = vmatprep.mubr.f32.mxu0 %v7155_v0 }
 0xd5a   : > { %5340 = vmatprep.mubr.msk.f32.mxu1 %vm7157_vm1, %v7155_v0 }
 0xd5b   : > { %6244 = vmatpush1.bf16.msra.mxu0 %v8062_v52 }
 0xd5c   : > { %6274 = vmatpush3.bf16.msra.mxu1 %v8105_v48  ;;  %6246 = vmatprep.subr.bf16.mxu0 %v8066_v62 }
 0xd5d   : > { %6275 = vmatprep.subr.bf16.mxu1 %v7156_v5 }
 0xd5f   : > { %6248 = vmatpush1.bf16.msra.mxu0 %v8068_v10 }
 0xd60   : > { %6277 = vmatpush3.bf16.msra.mxu1 %v8111_v17  ;;  %6250 = vmatprep.subr.bf16.mxu0 %v8072_v20 }
 0xd61   : > { %6278 = vmatprep.subr.bf16.mxu1 %v7156_v5 }
 0xd63   : > { %6252 = vmatpush1.bf16.msra.mxu0 %v8074_v31 }
 0xd64   : > { %6280 = vmatpush3.bf16.msra.mxu1 %v8114_v58  ;;  %6254 = vmatprep.subr.bf16.mxu0 %v8078_v43 }
 0xd65   : > { %6281 = vmatprep.subr.bf16.mxu1 %v7156_v5 }
 0xd67   : > { %6256 = vmatpush1.bf16.msra.mxu0 %v8080_v51 }
 0xd68   : > { %6283 = vmatpush3.bf16.msra.mxu1 %v8118_v53  ;;  %6258 = vmatprep.subr.bf16.mxu0 %v8084_v18 }
 0xd69   : > { %6284 = vmatprep.subr.bf16.mxu1 %v7156_v5 }
 0xd6b   : > { %6260 = vmatpush1.bf16.msra.mxu0 %v8086_v1 }
 0xd6c   : > { %6286 = vmatpush3.bf16.msra.mxu1 %v8122_v9  ;;  %6262 = vmatprep.subr.bf16.mxu0 %v8090_v13 }
 0xd6d   : > { %6287 = vmatprep.subr.bf16.mxu1 %v7156_v5 }
 0xd6f   : > { %6264 = vmatpush1.bf16.msra.mxu0 %v8092_v35 }
 0xd70   : > { %6289 = vmatpush3.bf16.msra.mxu1 %v8126_v25  ;;  %6266 = vmatprep.subr.bf16.mxu0 %v8099_v42 }
 0xd71   : > { %6290 = vmatprep.subr.bf16.mxu1 %v7156_v5 }
 0xd73   : > { %6268 = vmatpush1.bf16.msra.mxu0 %v8102_v6 }
 0xd74   : > { %6292 = vmatpush3.bf16.msra.mxu1 %v8130_v40  ;;  %6294 = vmatprep.subr.bf16.mxu0 %v8054_v28 }
 0xd75   : > { %6325 = vmatprep.subr.bf16.mxu1 %v7156_v5 }
 0xe29   : > { %v3433_v11 = vpop.f32.mrb[24].mxu0 }
 0xe2a   : > { %v6454_v39 = vadd.f32 %v8213_v57, %v3433_v11  ;;  %v3504_v46 = vpop.f32.mrb[40].mxu1  ;;  %v3435_v3 = vpop.f32.mrb[25].mxu0 }
 0xe2b   : > { %v5307_v24 = vpop.f32.mrb[41].mxu1  ;;  %v6456_v27 = vadd.f32 %v8215_v59, %v3435_v3  ;;  %v3505_v2 = vadd.f32 %v3504_v46, %v8220_v38 }
 0xe2c   : > { %v4453_v41 = vmul.f32 -1.442695, %v6454_v39 }
 0xe2d   : > { %v4454_v44 = vmul.f32 -1.442695, %v6456_v27 }
 0xe2e   : > { %6755 = vpow2.f32 %v4453_v41 }
 0xe2f   : > { %6757 = vpow2.f32 %v4454_v44 }
 0xe38   : > { %v6756_v56 = vpop.eup %6755 }
 0xe39   : > { %v3512_v19 = vadd.f32 1.0, %v6756_v56  ;;  %v6758_v34 = vpop.eup %6757 }
 0xe3a   : > { %v3519_v37 = vadd.f32 1.0, %v6758_v34 }
 0xe3b   : > { %6759 = vrcp.f32 %v3512_v19  ;;  %v2645_v19 = vadd.f32 %v8147_v36, %v8223_v32 }
 0xe3c   : > { %6761 = vrcp.f32 %v3519_v37 }
 0xe45   : > { %v6760_v45 = vpop.eup %6759 }
 0xe46   : > { %v3522_v4 = vmul.f32 %v6760_v45, %v3505_v2  ;;  %v6762_v63 = vpop.eup %6761 }
 0xe47   : > { %v3525_v22 = vsub.f32 1.0, %v6762_v63  ;;  %v3527_v21 = vmul.f32 %v6762_v63, %v8367_v33 }
 0xe48   : > { %v3523_v60 = vadd.f32 %v3522_v4, %v2640_v61 }
 0xe4a   : > { %6763 = vtanh.f32 %v3523_v60 }
 0xe54   : > { %v6764_v12 = vpop.eup %6763 }
 0xe55   : > { %v3526_v14 = vmul.f32 %v6764_v12, %v3525_v22 }
 0xe57   : > { %v8413_v23 = vadd.f32 %v3527_v21, %v3526_v14 }
 0xe59   : > { %4045 = vadd.xlane.f32.xlu0 %v8413_v23  ;;  %3598 = vmatmul.mubr.f32.vlgmr.msra.gmra.mrb[26].mxu0 %v8413_v23 }
 0xe5a   : > { %5341 = vmatmul.mubr.f32.vlgmr.msra.gmra.mrb[42].mxu1 %v8413_v23  ;;  %6296 = vmatpush1.bf16.msra.mxu0 %v8056_v54 }
 0xe5b   : > { %6327 = vmatpush3.bf16.msra.mxu1 %v8094_v8  ;;  %6298 = vmatprep.subr.bf16.mxu0 %v8060_v55 }
 0xe5c   : > { %6328 = vmatprep.subr.bf16.mxu1 %v7156_v5  ;;  %3763 = vmatprep.mubr.f32.mxu0 %v7155_v0 }
 0xe5d   : > { %5375 = vmatprep.mubr.msk.f32.mxu1 %vm7157_vm1, %v7155_v0 }
 0xe5e   : > { %6300 = vmatpush1.bf16.msra.mxu0 %v8062_v52 }
 0xe5f   : > { %6330 = vmatpush3.bf16.msra.mxu1 %v8105_v48  ;;  %6302 = vmatprep.subr.bf16.mxu0 %v8066_v62 }
 0xe60   : > { %6331 = vmatprep.subr.bf16.mxu1 %v7156_v5 }
 0xe62   : > { %6304 = vmatpush1.bf16.msra.mxu0 %v8068_v10 }
 0xe63   : > { %6333 = vmatpush3.bf16.msra.mxu1 %v8111_v17  ;;  %6306 = vmatprep.subr.bf16.mxu0 %v8072_v20 }
 0xe64   : > { %6334 = vmatprep.subr.bf16.mxu1 %v7156_v5 }
 0xe66   : > { %6308 = vmatpush1.bf16.msra.mxu0 %v8074_v31 }
 0xe67   : > { %6336 = vmatpush3.bf16.msra.mxu1 %v8114_v58  ;;  %6310 = vmatprep.subr.bf16.mxu0 %v8078_v43 }
 0xe68   : > { %6337 = vmatprep.subr.bf16.mxu1 %v7156_v5 }
 0xe6a   : > { %6312 = vmatpush1.bf16.msra.mxu0 %v8080_v51 }
 0xe6b   : > { %6339 = vmatpush3.bf16.msra.mxu1 %v8118_v53  ;;  %6314 = vmatprep.subr.bf16.mxu0 %v8084_v18 }
 0xe6c   : > { %6340 = vmatprep.subr.bf16.mxu1 %v7156_v5 }
 0xe6e   : > { %6316 = vmatpush1.bf16.msra.mxu0 %v8086_v1 }
 0xe6f   : > { %6342 = vmatpush3.bf16.msra.mxu1 %v8122_v9  ;;  %6318 = vmatprep.subr.bf16.mxu0 %v8090_v13 }
 0xe70   : > { %6343 = vmatprep.subr.bf16.mxu1 %v7156_v5 }
 0xe72   : > { %6320 = vmatpush1.bf16.msra.mxu0 %v8092_v35 }
 0xe73   : > { %6345 = vmatpush3.bf16.msra.mxu1 %v8126_v25  ;;  %6322 = vmatprep.subr.bf16.mxu0 %v8099_v42 }
 0xe74   : > { %6346 = vmatprep.subr.bf16.mxu1 %v7156_v5 }
 0xe76   : > { %6324 = vmatpush1.bf16.msra.mxu0 %v8102_v6 }
 0xe77   : > { %6348 = vmatpush3.bf16.msra.mxu1 %v8130_v40  ;;  %6350 = vmatprep.subr.bf16.mxu0 %v8054_v28 }
 0xe78   : > { %6381 = vmatprep.subr.bf16.mxu1 %v7156_v5 }
 0xf2c   : > { %v3599_v49 = vpop.f32.mrb[26].mxu0 }
 0xf2d   : > { %v6458_v26 = vadd.f32 %v8213_v57, %v3599_v49  ;;  %v3670_v16 = vpop.f32.mrb[42].mxu1  ;;  %v3601_v30 = vpop.f32.mrb[27].mxu0 }
 0xf2e   : > { %v5342_v11 = vpop.f32.mrb[43].mxu1  ;;  %v6460_v46 = vadd.f32 %v8215_v59, %v3601_v30  ;;  %v3671_v28 = vadd.f32 %v3670_v16, %v8220_v38 }
 0xf2f   : > { %v4455_v39 = vmul.f32 -1.442695, %v6458_v26 }
 0xf30   : > { %v4456_v3 = vmul.f32 -1.442695, %v6460_v46 }
 0xf31   : > { %6765 = vpow2.f32 %v4455_v39 }
 0xf32   : > { %6767 = vpow2.f32 %v4456_v3 }
 0xf3b   : > { %v6766_v24 = vpop.eup %6765 }
 0xf3c   : > { %v3678_v41 = vadd.f32 1.0, %v6766_v24  ;;  %v6768_v27 = vpop.eup %6767 }
 0xf3d   : > { %v3685_v44 = vadd.f32 1.0, %v6768_v27 }
 0xf3e   : > { %6769 = vrcp.f32 %v3678_v41 }
 0xf3f   : > { %6771 = vrcp.f32 %v3685_v44 }
 0xf48   : > { %v6770_v56 = vpop.eup %6769 }
 0xf49   : > { %v3688_v34 = vmul.f32 %v6770_v56, %v3671_v28  ;;  %v6772_v2 = vpop.eup %6771 }
 0xf4a   : > { %v3691_v45 = vsub.f32 1.0, %v6772_v2  ;;  %v3693_v60 = vmul.f32 %v6772_v2, %v8413_v23 }
 0xf4b   : > { %v3689_v37 = vadd.f32 %v3688_v34, %v2645_v19 }
 0xf4d   : > { %6773 = vtanh.f32 %v3689_v37  ;;  %v8521_v37 = vld [vmem:[%s8713_s3] ss:$0 sm:$0xff] }
 0xf57   : > { %v6774_v61 = vpop.eup %6773 }
 0xf58   : > { %v3692_v4 = vmul.f32 %v6774_v61, %v3691_v45  ;;  %v8523_v45 = vld [vmem:[#allocation16] ss:$0 sm:$0xff] }
 0xf5a   : > { %v8459_v63 = vadd.f32 %v3693_v60, %v3692_v4 }
 0xf5c   : > { %4047 = vadd.xlane.f32.xlu1 %v8459_v63  ;;  %3764 = vmatmul.mubr.f32.vlgmr.msra.gmra.mrb[28].mxu0 %v8459_v63 }
 0xf5d   : > { %5376 = vmatmul.mubr.f32.vlgmr.msra.gmra.mrb[44].mxu1 %v8459_v63  ;;  %6352 = vmatpush1.bf16.msra.mxu0 %v8056_v54 }
 0xf5e   : > { %6383 = vmatpush3.bf16.msra.mxu1 %v8094_v8  ;;  %6354 = vmatprep.subr.bf16.mxu0 %v8060_v55 }
 0xf5f   : > { %6384 = vmatprep.subr.bf16.mxu1 %v7156_v5  ;;  %3929 = vmatprep.mubr.f32.mxu0 %v7155_v0 }
 0xf60   : > { %5410 = vmatprep.mubr.msk.f32.mxu1 %vm7157_vm1, %v7155_v0 }
 0xf61   : > { %6356 = vmatpush1.bf16.msra.mxu0 %v8062_v52 }
 0xf62   : > { %6386 = vmatpush3.bf16.msra.mxu1 %v8105_v48  ;;  %6358 = vmatprep.subr.bf16.mxu0 %v8066_v62  ;;  %v4038_v48 = vpop.xlane.xlu0 %4037 }
 0xf63   : > { %6387 = vmatprep.subr.bf16.mxu1 %v7156_v5 }
 0xf65   : > { %6360 = vmatpush1.bf16.msra.mxu0 %v8068_v10 }
 0xf66   : > { %6389 = vmatpush3.bf16.msra.mxu1 %v8111_v17  ;;  %6362 = vmatprep.subr.bf16.mxu0 %v8072_v20  ;;  %v4054_v17 = vmul.f32 0.0078125, %v4038_v48 }
 0xf67   : > { %6390 = vmatprep.subr.bf16.mxu1 %v7156_v5 }
 0xf68   : > { %v4062_v22 = vsub.f32 %v8229_v47, %v4054_v17 }
 0xf69   : > { %6364 = vmatpush1.bf16.msra.mxu0 %v8074_v31 }
 0xf6a   : > { %6392 = vmatpush3.bf16.msra.mxu1 %v8114_v58  ;;  %6366 = vmatprep.subr.bf16.mxu0 %v8078_v43  ;;  %v4070_v26 = vmul.f32 %v4062_v22, %v4062_v22 }
 0xf6b   : > { %6393 = vmatprep.subr.bf16.mxu1 %v7156_v5 }
 0xf6d   : > { %6368 = vmatpush1.bf16.msra.mxu0 %v8080_v51 }
 0xf6e   : > { %6395 = vmatpush3.bf16.msra.mxu1 %v8118_v53  ;;  %6370 = vmatprep.subr.bf16.mxu0 %v8084_v18 }
 0xf6f   : > { %6396 = vmatprep.subr.bf16.mxu1 %v7156_v5 }
 0xf71   : > { %6372 = vmatpush1.bf16.msra.mxu0 %v8086_v1 }
 0xf72   : > { %6398 = vmatpush3.bf16.msra.mxu1 %v8122_v9  ;;  %6374 = vmatprep.subr.bf16.mxu0 %v8090_v13  ;;  %v8502_v9 = vpop.xlane.xlu0 %4039 }
 0xf73   : > { %6399 = vmatprep.subr.bf16.mxu1 %v7156_v5 }
 0xf75   : > { %6376 = vmatpush1.bf16.msra.mxu0 %v8092_v35  ;;  %v2650_v35 = vadd.f32 %v8211_v50, %v8223_v32 }
 0xf76   : > { %6401 = vmatpush3.bf16.msra.mxu1 %v8126_v25  ;;  %6378 = vmatprep.subr.bf16.mxu0 %v8099_v42  ;;  %v4042_v25 = vpop.xlane.xlu1 %4041  ;;  %v4046_v50 = vpop.xlane.xlu0 %4045 }
 0xf77   : > { %6402 = vmatprep.subr.bf16.mxu1 %v7156_v5  ;;  %v4056_v12 = vmul.f32 0.0078125, %v4042_v25  ;;  %v4058_v49 = vmul.f32 0.0078125, %v4046_v50 }
 0xf79   : > { %6380 = vmatpush1.bf16.msra.mxu0 %v8102_v6  ;;  %v4064_v21 = vsub.f32 %v8321_v7, %v4056_v12  ;;  %v4066_v16 = vsub.f32 %v8413_v23, %v4058_v49 }
 0xf7a   : > { %6404 = vmatpush3.bf16.msra.mxu1 %v8130_v40  ;;  %v4044_v12 = vpop.xlane.xlu1 %4043 }
 0xf7b   : > { %v4072_v30 = vmul.f32 %v4064_v21, %v4064_v21  ;;  %v4074_v47 = vmul.f32 %v4066_v16, %v4066_v16 }
0x102f   : > { %v3765_v0 = vpop.f32.mrb[28].mxu0 }
0x1030   : > { %v6462_v54 = vadd.f32 %v8213_v57, %v3765_v0  ;;  %v3836_v55 = vpop.f32.mrb[44].mxu1  ;;  %v3767_v52 = vpop.f32.mrb[29].mxu0 }
0x1031   : > { %v5377_v62 = vpop.f32.mrb[45].mxu1  ;;  %v6464_v20 = vadd.f32 %v8215_v59, %v3767_v52  ;;  %v3837_v1 = vadd.f32 %v3836_v55, %v8220_v38 }
0x1032   : > { %v4457_v10 = vmul.f32 -1.442695, %v6462_v54 }
0x1033   : > { %v4458_v31 = vmul.f32 -1.442695, %v6464_v20 }
0x1034   : > { %6775 = vpow2.f32 %v4457_v10 }
0x1035   : > { %6777 = vpow2.f32 %v4458_v31 }
0x103e   : > { %v6776_v43 = vpop.eup %6775 }
0x103f   : > { %v3844_v51 = vadd.f32 1.0, %v6776_v43  ;;  %v6778_v5 = vpop.eup %6777 }
0x1040   : > { %v3851_v18 = vadd.f32 1.0, %v6778_v5 }
0x1041   : > { %6779 = vrcp.f32 %v3844_v51 }
0x1042   : > { %6781 = vrcp.f32 %v3851_v18 }
0x104b   : > { %v6780_v13 = vpop.eup %6779 }
0x104c   : > { %v3854_v8 = vmul.f32 %v6780_v13, %v3837_v1  ;;  %v6782_v6 = vpop.eup %6781 }
0x104d   : > { %v3857_v58 = vsub.f32 1.0, %v6782_v6  ;;  %v3859_v36 = vmul.f32 %v6782_v6, %v8459_v63 }
0x104e   : > { %v3855_v42 = vadd.f32 %v3854_v8, %v2650_v35 }
0x1050   : > { %6783 = vtanh.f32 %v3855_v42 }
0x105a   : > { %v6784_v53 = vpop.eup %6783 }
0x105b   : > { %v3858_v40 = vmul.f32 %v6784_v53, %v3857_v58 }
0x105d   : > { %v8506_v14 = vadd.f32 %v3859_v36, %v3858_v40 }
0x105f   : > { %4049 = vadd.xlane.f32.xlu0 %v8506_v14  ;;  %3930 = vmatmul.mubr.f32.vlgmr.msra.gmra.mrb[30].mxu0 %v8506_v14 }
0x1060   : > { %5411 = vmatmul.mubr.f32.vlgmr.msra.gmra.mrb[46].mxu1 %v8506_v14 }
0x1063   : > { %4078 = vadd.xlane.f32.xlu0 %v4070_v26 }
0x1067   : > { %4082 = vadd.xlane.f32.xlu0 %v4072_v30 }
0x106b   : > { %4086 = vadd.xlane.f32.xlu0 %v4074_v47 }
0x10ec   : > { %v4050_v11 = vpop.xlane.xlu0 %4049 }
0x10ed   : > { %v4060_v39 = vmul.f32 0.0078125, %v4050_v11 }
0x10ef   : > { %v8514_v46 = vsub.f32 %v8506_v14, %v4060_v39 }
0x10f0   : > { %v4079_v3 = vpop.xlane.xlu0 %4078 }
0x10f1   : > { %v4094_v24 = vmul.f32 0.0078125, %v4079_v3  ;;  %v4076_v41 = vmul.f32 %v8514_v46, %v8514_v46 }
0x10f3   : > { %v4102_v7 = vadd.f32 1e-05, %v4094_v24  ;;  %4090 = vadd.xlane.f32.xlu0 %v4076_v41 }
0x10f4   : > { %v4083_v27 = vpop.xlane.xlu0 %4082 }
0x10f5   : > { %6785 = vrsqrt.f32 %v4102_v7  ;;  %v4096_v23 = vmul.f32 0.0078125, %v4083_v27 }
0x10f7   : > { %v4104_v44 = vadd.f32 1e-05, %v4096_v23 }
0x10f8   : > { %v4087_v28 = vpop.xlane.xlu0 %4086 }
0x10f9   : > { %6787 = vrsqrt.f32 %v4104_v44  ;;  %v4098_v56 = vmul.f32 0.0078125, %v4087_v28 }
0x10fb   : > { %v4106_v19 = vadd.f32 1e-05, %v4098_v56 }
0x10fd   : > { %6789 = vrsqrt.f32 %v4106_v19 }
0x10ff   : > { %v6786_v34 = vpop.eup %6785 }
0x1100   : > { %v4118_v2 = vmul.f32 %v6786_v34, %v4062_v22 }
0x1102   : > { %v4133_v61 = vmul.f32 %v8521_v37, %v4118_v2 }
0x1103   : > { %v6788_v4 = vpop.eup %6787 }
0x1104   : > { %v4148_v60 = vadd.f32 %v8523_v45, %v4133_v61  ;;  %v4120_v0 = vmul.f32 %v6788_v4, %v4064_v21 }
0x1106   : > { %4156 = vst [vmem:[%s8529_s6] sm:$0xff] %v4148_v60  ;;  %v4135_v54 = vmul.f32 %v8521_v37, %v4120_v0 }
0x1107   : > { %v6790_v55 = vpop.eup %6789 }
0x1108   : > { %v4150_v52 = vadd.f32 %v8523_v45, %v4135_v54  ;;  %v4122_v62 = vmul.f32 %v6790_v55, %v4066_v16  ;;  %v4048_v16 = vpop.xlane.xlu1 %4047 }
0x110a   : > { %4158 = vst [vmem:[%s8529_s6 + $0x10] sm:$0xff] %v4150_v52  ;;  %v4137_v10 = vmul.f32 %v8521_v37, %v4122_v62 }
0x110c   : > { %v4152_v20 = vadd.f32 %v8523_v45, %v4137_v10 }
0x110e   : > { %4160 = vst [vmem:[%s8529_s6 + $0x20] sm:$0xff] %v4152_v20 }
0x1132   : > { %v3931_v31 = vpop.f32.mrb[30].mxu0 }
0x1133   : > { %v6466_v43 = vadd.f32 %v8213_v57, %v3931_v31  ;;  %v4002_v51 = vpop.f32.mrb[46].mxu1  ;;  %v3933_v5 = vpop.f32.mrb[31].mxu0  ;;  %v2655_v57 = vadd.f32 %v8207_v29, %v8223_v32  ;;  %v4059_v32 = vmul.f32 0.0078125, %v4048_v16 }
0x1134   : > { %v5412_v18 = vpop.f32.mrb[47].mxu1  ;;  %v6468_v13 = vadd.f32 %v8215_v59, %v3933_v5  ;;  %v4003_v17 = vadd.f32 %v4002_v51, %v8220_v38  ;;  %v4055_v59 = vmul.f32 0.0078125, %v8502_v9  ;;  %v4057_v38 = vmul.f32 0.0078125, %v4044_v12 }
0x1135   : > { %v4459_v1 = vmul.f32 -1.442695, %v6466_v43  ;;  %v4067_v9 = vsub.f32 %v8459_v63, %v4059_v32 }
0x1136   : > { %v4460_v35 = vmul.f32 -1.442695, %v6468_v13  ;;  %v4063_v49 = vsub.f32 %v8275_v15, %v4055_v59  ;;  %v4065_v29 = vsub.f32 %v8367_v33, %v4057_v38 }
0x1137   : > { %6791 = vpow2.f32 %v4459_v1  ;;  %v4075_v11 = vmul.f32 %v4067_v9, %v4067_v9 }
0x1138   : > { %6793 = vpow2.f32 %v4460_v35  ;;  %v4071_v30 = vmul.f32 %v4063_v49, %v4063_v49  ;;  %v4073_v47 = vmul.f32 %v4065_v29, %v4065_v29 }
0x1141   : > { %v6792_v8 = vpop.eup %6791 }
0x1142   : > { %v4010_v42 = vadd.f32 1.0, %v6792_v8  ;;  %v6794_v6 = vpop.eup %6793 }
0x1143   : > { %v4017_v48 = vadd.f32 1.0, %v6794_v6 }
0x1144   : > { %6795 = vrcp.f32 %v4010_v42 }
0x1145   : > { %6797 = vrcp.f32 %v4017_v48 }
0x114e   : > { %v6796_v58 = vpop.eup %6795 }
0x114f   : > { %v4020_v53 = vmul.f32 %v6796_v58, %v4003_v17  ;;  %v6798_v40 = vpop.eup %6797 }
0x1150   : > { %v4023_v36 = vsub.f32 1.0, %v6798_v40  ;;  %v4025_v21 = vmul.f32 %v6798_v40, %v8506_v14 }
0x1151   : > { %v4021_v25 = vadd.f32 %v4020_v53, %v2655_v57 }
0x1153   : > { %6799 = vtanh.f32 %v4021_v25 }
0x115d   : > { %v6800_v22 = vpop.eup %6799 }
0x115e   : > { %v4024_v50 = vmul.f32 %v6800_v22, %v4023_v36 }
0x1160   : > { %v4026_v26 = vadd.f32 %v4025_v21, %v4024_v50 }
0x1162   : > { %4051 = vadd.xlane.f32.xlu1 %v4026_v26 }
0x1166   : > { %4080 = vadd.xlane.f32.xlu1 %v4071_v30 }
0x116a   : > { %4084 = vadd.xlane.f32.xlu1 %v4073_v47 }
0x116e   : > { %4088 = vadd.xlane.f32.xlu1 %v4075_v11 }
0x1180   : > { %v4091_v39 = vpop.xlane.xlu0 %4090 }
0x1181   : > { %v4100_v14 = vmul.f32 0.0078125, %v4091_v39 }
0x1183   : > { %v4108_v3 = vadd.f32 1e-05, %v4100_v14 }
0x1185   : > { %6801 = vrsqrt.f32 %v4108_v3 }
0x118f   : > { %v6802_v15 = vpop.eup %6801 }
0x1190   : > { %v4124_v24 = vmul.f32 %v6802_v15, %v8514_v46 }
0x1192   : > { %v4139_v41 = vmul.f32 %v8521_v37, %v4124_v24 }
0x1194   : > { %v4154_v33 = vadd.f32 %v8523_v45, %v4139_v41 }
0x1196   : > { %4162 = vst [vmem:[%s8529_s6 + $0x30] sm:$0xff] %v4154_v33 }
0x11ef   : > { %v4052_v7 = vpop.xlane.xlu1 %4051 }
0x11f0   : > { %v4061_v27 = vmul.f32 0.0078125, %v4052_v7 }
0x11f2   : > { %v8552_v23 = vsub.f32 %v4026_v26, %v4061_v27 }
0x11f3   : > { %v4081_v63 = vpop.xlane.xlu1 %4080 }
0x11f4   : > { %v4095_v44 = vmul.f32 0.0078125, %v4081_v63  ;;  %v4077_v28 = vmul.f32 %v8552_v23, %v8552_v23 }
0x11f6   : > { %v4103_v56 = vadd.f32 1e-05, %v4095_v44  ;;  %4092 = vadd.xlane.f32.xlu1 %v4077_v28 }
0x11f7   : > { %v4085_v19 = vpop.xlane.xlu1 %4084 }
0x11f8   : > { %6803 = vrsqrt.f32 %v4103_v56  ;;  %v4097_v46 = vmul.f32 0.0078125, %v4085_v19 }
0x11fa   : > { %v4105_v34 = vadd.f32 1e-05, %v4097_v46 }
0x11fb   : > { %v4089_v2 = vpop.xlane.xlu1 %4088 }
0x11fc   : > { %6805 = vrsqrt.f32 %v4105_v34  ;;  %v4099_v61 = vmul.f32 0.0078125, %v4089_v2 }
0x11fe   : > { %v4107_v4 = vadd.f32 1e-05, %v4099_v61 }
0x1200   : > { %6807 = vrsqrt.f32 %v4107_v4 }
0x1202   : > { %v6804_v60 = vpop.eup %6803 }
0x1203   : > { %v4119_v0 = vmul.f32 %v6804_v60, %v4063_v49 }
0x1205   : > { %v4134_v54 = vmul.f32 %v8521_v37, %v4119_v0 }
0x1206   : > { %v6806_v55 = vpop.eup %6805 }
0x1207   : > { %v4149_v52 = vadd.f32 %v8523_v45, %v4134_v54  ;;  %v4121_v62 = vmul.f32 %v6806_v55, %v4065_v29 }
0x1209   : > { %4157 = vst [vmem:[%s8529_s6 + $0x8] sm:$0xff] %v4149_v52  ;;  %v4136_v10 = vmul.f32 %v8521_v37, %v4121_v62 }
0x120a   : > { %v6808_v20 = vpop.eup %6807 }
0x120b   : > { %v4151_v31 = vadd.f32 %v8523_v45, %v4136_v10  ;;  %v4123_v43 = vmul.f32 %v6808_v20, %v4067_v9 }
0x120d   : > { %4159 = vst [vmem:[%s8529_s6 + $0x18] sm:$0xff] %v4151_v31  ;;  %v4138_v51 = vmul.f32 %v8521_v37, %v4123_v43 }
0x120f   : > { %v4153_v5 = vadd.f32 %v8523_v45, %v4138_v51 }
0x1211   : > { %4161 = vst [vmem:[%s8529_s6 + $0x28] sm:$0xff] %v4153_v5 }
0x1212   : > { %7024 = shalt.err (!%p7021_p6)
}
0x1213   : > { %s7025_s20 = scalar_lea.hbm %s8571_s17, 128  ;;  %s7029_s12 = scalar_lea.hbm %s8715_s16, 256 }
0x1214   : > { %p7026_p7 = scmp.ne.s32.totalorder %s8571_s17, %s7025_s20  ;;  %p7030_p2 = scmp.lt.u32.totalorder %s8571_s17, %s8715_s16 }
0x1215   : > { %p7031_p13 = scmp.lt.u32.totalorder %s7029_s12, %s7025_s20  ;;  %p7033_p1 = scmp.lt.u32.totalorder %s7025_s20, %s8571_s17 }
0x1216   : > { %p7027_p9 = pnand %p7026_p7, %p7428_p10 }
0x1217   : > { %p7032_p4 = por %p7031_p13, %p7030_p2 }
0x1218   : > { %p7028_p0 = pneg %p7027_p9 }
0x1219   : > { %p7034_p8 = por %p7033_p1, %p7032_p4 }
0x121b   : > { %p7035_p3 = pnand %p7034_p8, %p7028_p0 }
0x121d   : > { %7038 = shalt.err (!%p7035_p3)
}
0x121e   : > { %6526 = dma.vmem_to_hbm [thread:$0]  (%p7428_p10), %s4207_s5, 128, %s8571_s17, %s4175_s9  }
0x121f   : > { %s4190_s3 = sshll.u32 %s8529_s6, 4  ;;  %s8716_s8 = sld [smem:[#allocation39_spill]]  ;;  %s8602_s3 = int_to_ptr.vmem [resolvable:$true] %s4190_s3 }
0x1220   : > { %s4170_s17 = scalar_lea.sflag [#allocation7], %s7534_s7  ;;  %s7039_s5 = scalar_lea.vmem %s8602_s3, 1024 }
0x1221   : > { %p7040_p5 = scmp.ne.s32.totalorder %s8602_s3, %s7039_s5  ;;  %s7159_s28 = smov [#allocation17]  }
0x1222   : > { %s7043_s9 = sshll.u32 %s7159_s28, 4  ;;  %s7044_s9 = int_to_ptr.vmem [resolvable:$false] %s7043_s9 }
0x1223   : > { %p7041_p11 = pnand %p7040_p5, %p7428_p10  ;;  %s7045_s22 = scalar_lea.vmem %s7044_s9, 2048 }
0x1224   : > { %p7046_p6 = scmp.lt.s32.totalorder %s8602_s3, %s7044_s9  ;;  %p7047_p7 = scmp.lt.s32.totalorder %s7045_s22, %s7039_s5 }
0x1225   : > { %s8600_s13 = scalar_lea.hbm %s8716_s8, %s4465_s18  ;;  %p7042_p12 = pneg %p7041_p11 }
0x1226   : > { %p7048_p9 = por %p7047_p7, %p7046_p6 }
0x1228   : > { %p7049_p0 = pnand %p7048_p9, %p7042_p12 }
0x1283   : > { %v4093_v18 = vpop.xlane.xlu1 %4092 }
0x1284   : > { %v4101_v1 = vmul.f32 0.0078125, %v4093_v18 }
0x1286   : > { %v4109_v13 = vadd.f32 1e-05, %v4101_v1 }
0x1288   : > { %6809 = vrsqrt.f32 %v4109_v13 }
0x1292   : > { %v6810_v35 = vpop.eup %6809 }
0x1293   : > { %v4125_v8 = vmul.f32 %v6810_v35, %v8552_v23 }
0x1295   : > { %v4140_v42 = vmul.f32 %v8521_v37, %v4125_v8 }
0x1297   : > { %v4155_v6 = vadd.f32 %v8523_v45, %v4140_v42 }
0x1299   : > { %4163 = vst [vmem:[%s8529_s6 + $0x38] sm:$0xff] %v4155_v6 }
0x129a   : > { %7052 = shalt.err (!%p7049_p0)
}
0x129b   : > { %s7053_s6 = scalar_lea.hbm %s8600_s13, 1024  ;;  %s7057_s20 = scalar_lea.hbm %s8716_s8, 2048 }
0x129c   : > { %p7054_p2 = scmp.ne.s32.totalorder %s8600_s13, %s7053_s6  ;;  %p7058_p1 = scmp.lt.u32.totalorder %s8600_s13, %s8716_s8 }
0x129d   : > { %p7059_p8 = scmp.lt.u32.totalorder %s7057_s20, %s7053_s6  ;;  %p7061_p5 = scmp.lt.u32.totalorder %s7053_s6, %s8600_s13 }
0x129e   : > { %p7055_p13 = pnand %p7054_p2, %p7428_p10 }
0x129f   : > { %p7060_p3 = por %p7059_p8, %p7058_p1 }
0x12a0   : > { %p7056_p4 = pneg %p7055_p13 }
0x12a1   : > { %p7062_p11 = por %p7061_p5, %p7060_p3 }
0x12a3   : > { %p7063_p12 = pnand %p7062_p11, %p7056_p4 }
0x12a5   : > { %7066 = shalt.err (!%p7063_p12)
}
0x12a6   : > { %s7160_s12 = smov 128   ;;  %s7161_s24 = smov 256  }
0x12a7   : > { %s7162_s23 = smov 8  }
0x12a8   : > { %6525 = dma.vmem_to_hbm [thread:$0]  (%p7428_p10), %s8602_s3, 1024, %s8600_s13, %s4170_s17, %s7160_s12, %s7161_s24, %s7162_s23  }
0x12a9 PF: > { %s8717_s25 = sld [smem:[#allocation27_spill]]  ;;  %s8718_s14 = sld [smem:[#allocation29_spill]] }
0x12aa   : > { %p8720_p7 = scmp.ge.s32.totalorder %s7141_s30, 2 }
0x12af   : > { %s4218_s5 = sand.u32 1, %s8717_s25   ;;  %p8719_p6 = scmp.ne.s32.totalorder %s8718_s14, 0 }
0x12b0   : > { %s4219_s28 = scalar_lea.sflag [#allocation7], %s4218_s5 }
0x12b1   : > { %p6553_p9 = pnand %p8720_p7, %p8719_p6 }
0x12b3   : > { %7112 = dma.done.wait (!%p6553_p9), %s4219_s28, 1024  }
0x12b4   : > { %7114 = vsyncadd (!%p6553_p9), %s4219_s28, 4294966272  ;;  %s4228_s9 = scalar_lea.sflag [#allocation19], %s4218_s5 }
0x12b5   : > { %7116 = dma.done.wait (!%p6553_p9), %s4228_s9, 128  }
0x12b6   : > { %7118 = vsyncadd (!%p6553_p9), %s4228_s9, 4294967168  ;;  %s38_s30 = sadd.s32 1, %s7141_s30   ;;  %s8721_s25 = smov %s7125_s26 }
0x12b7   : > { %p35_p0 = scmp.ge.s32.totalorder %s38_s30, 4   ;;  %s8722_s26 = smov %s7129_s27 }
0x12b8   : > { %s8723_s27 = smov %s7443_s10  ;;  %s8724_s28 = smov %s7137_s29 }
0x12b9   : > { %s8725_s29 = smov %s8727_s15  ;;  %37 = sbr.rel (!%p35_p0) target bundleno = 24 (0x18), region = 172 }
0x12c0   :  { %4233 = vsyncpa [#allocation6], 1 }
0x12c1   :  { %4235 = vsyncpa [#allocation6 + $0x1], 1 }
0x12c2   :  { %4236 = vsyncpa [#allocation9], 1 }
0x12c3   :  { %4238 = vsyncpa [#allocation9 + $0x1], 1 }
0x12c4   :  { %4239 = vsyncpa [#allocation12], 1 }
0x12c5   :  { %4240 = vsyncpa [#allocation15], 1 }
0x12c6   :  { %4241 = vsyncpa [#allocation7], 1 }
0x12c7   :  { %4243 = vsyncpa [#allocation7 + $0x1], 1 }
0x12c8   :  { %4244 = vsyncpa [#allocation19], 1 }
0x12c9   :  { %4246 = vsyncpa [#allocation19 + $0x1], 1 }

</bundles_post_ra>
